<compile_context>
chip_gen: v7x
topology: tpu7x:2x2x1
jax: 0.10.0
libtpu: 0.0.40
codegen_flags: <defaults>
</compile_context>

<pallas_src>
import functools
import math

import numpy as np
import jax
import jax.numpy as jnp
from jax import lax
from jax.experimental import pallas as pl
from jax.experimental.pallas import tpu as pltpu


def _round_up(x, m):
    return ((x + m - 1) // m) * m


def _hardswish(z):
    return z * jnp.clip(z + 3.0, 0.0, 6.0) * (1.0 / 6.0)


def _resblock_kernel(xp_ref, mask_ref, w1_ref, s1_ref, b1_ref, wdw_ref,
                     sm_ref, bm_ref, w2_ref, s2_ref, b2_ref,
                     o_ref, y1_scr, *, H, Wp, k, mxu_dtype):
    """One image per grid step.

    xp_ref  : (1, Hp*Wp, Cin_p) spatially+channel padded NHWC image, spatial dims flattened
    mask_ref: (Hp*Wp, 1)        1.0 on interior pixels, 0.0 on the halo
    w1_ref  : (Cin_p, Ch_p)     conv1 1x1 weight, transposed (y = x @ w1)
    s1/b1   : (1, Ch_p)         folded BN1 scale / shift
    wdw_ref : (k*k, 1, Ch_p)    depthwise 3x3 weight per tap / channel
    sm/bm   : (1, Ch_p)         folded mid-BN scale / shift
    w2_ref  : (Ch_p, Cout_p)    conv2 1x1 weight, transposed
    s2/b2   : (1, Cout_p)       folded BN2 scale / shift
    o_ref   : (1, H*Wp, Cout_p) output span (interior rows, padded columns)
    y1_scr  : (Hp*Wp, Ch_p) f32 VMEM scratch holding the conv1 output
    """
    span = H * Wp          # flat length of the rows we emit
    base = 2 * Wp          # flat offset of the first interior row (2 halo rows on top)

    x = xp_ref[0]                                            # (Hp*Wp, Cin_p)

    # ---- conv1 (1x1) on the MXU: bf16 operands, f32 accumulation ----------------
    z1 = jnp.dot(x.astype(mxu_dtype), w1_ref[...].astype(mxu_dtype),
                 preferred_element_type=jnp.float32)
    z1 = z1 * s1_ref[...] + b1_ref[...]
    y1 = _hardswish(z1)
    # PyTorch zero-pads the conv1 *output* before the depthwise conv, so halo pixels
    # (where conv1(0) would give hardswish(shift1) != 0) are forced back to zero.
    y1_scr[...] = y1 * mask_ref[...]

    # ---- depthwise 3x3 on the VPU: taps = static shifted slices in VMEM ---------
    # (no im2col copy in HBM; tap weights are loaded once per tap from SMEM/VMEM)
    acc = None
    for kh in range(k):
        for kw in range(k):
            start = (kh + 1) * Wp + (kw - 1)                 # flat tap offset
            tap = y1_scr[pl.ds(start, span), :]              # (span, Ch_p), f32
            w_t = wdw_ref[kh * k + kw]                       # (1, Ch_p)
            contrib = tap * w_t
            acc = contrib if acc is None else acc + contrib

    # ---- mid BatchNorm + Hardswish ----------------------------------------------
    y2 = _hardswish(acc * sm_ref[...] + bm_ref[...])

    # ---- conv2 (1x1) on the MXU + folded BN (no activation) ---------------------
    z3 = jnp.dot(y2.astype(mxu_dtype), w2_ref[...].astype(mxu_dtype),
                 preferred_element_type=jnp.float32)
    z3 = z3 * s2_ref[...] + b2_ref[...]

    # ---- residual add -------------------------------------------------------------
    ident = x[base:base + span, :]          # original x on interior pixels (aligned slice)
    o_ref[0] = (ident + z3).astype(o_ref.dtype)


def resblock_forward(x_nchw, params, *, eps=1e-5, mxu_dtype=jnp.bfloat16, lane=128):
    """ResBlock forward (inference-mode BN), NCHW in / NCHW out."""
    (w1, g1, be1, m1, v1,
     wdw, gm, bem, mm, vm,
     w2, g2, be2, m2, v2) = params

    N, C, H, W = x_nchw.shape
    Ch = w1.shape[0]
    Cout = w2.shape[0]
    assert Cout == C, "residual add requires in_features == out_features"
    k = wdw.shape[-1]
    assert wdw.shape == (Ch, 1, k, k) and k == 3

    Cp = _round_up(C, lane)         # padded in/out channels (C == Cout)
    Chp = _round_up(Ch, lane)       # padded hidden channels
    Wp = _round_up(W + 2, 8)        # padded width: 1 left halo col + >=1 right, 8-aligned
    Hp = H + 4                      # 2 halo rows top & bottom keep every tap slice in-bounds
    cl, rt = 1, 2                   # left / top offsets of the interior

    # ---- layout glue (pure data movement, no arithmetic) -------------------------
    x_nhwc = jnp.transpose(x_nchw, (0, 2, 3, 1))
    xp = jnp.pad(x_nhwc, ((0, 0), (rt, Hp - H - rt), (cl, Wp - W - cl), (0, Cp - C)))
    xp = xp.reshape(N, Hp * Wp, Cp)

    mask_np = np.zeros((Hp, Wp, 1), np.float32)
    mask_np[rt:rt + H, cl:cl + W, :] = 1.0
    mask = jnp.asarray(mask_np.reshape(Hp * Wp, 1))

    # ---- fold BN and pack weights into lane-padded, kernel-friendly layouts ------
    def fold_bn(gamma, beta, mean, var, cpad):
        s = gamma / jnp.sqrt(var + eps)
        b = beta - mean * s
        sp = jnp.zeros((1, cpad), jnp.float32).at[0, :s.shape[0]].set(s)
        bp = jnp.zeros((1, cpad), jnp.float32).at[0, :b.shape[0]].set(b)
        return sp, bp

    w1t = jnp.zeros((Cp, Chp), jnp.float32).at[:C, :Ch].set(w1[:, :, 0, 0].T)
    s1p, b1p = fold_bn(g1, be1, m1, v1, Chp)

    wdw_t = jnp.zeros((k * k, 1, Chp), jnp.float32).at[:, 0, :Ch].set(
        wdw[:, 0, :, :].reshape(Ch, k * k).T)
    smp, bmp = fold_bn(gm, bem, mm, vm, Chp)

    w2t = jnp.zeros((Chp, Cp), jnp.float32).at[:Ch, :C].set(w2[:, :, 0, 0].T)
    s2p, b2p = fold_bn(g2, be2, m2, v2, Cp)

    kernel = functools.partial(_resblock_kernel, H=H, Wp=Wp, k=k, mxu_dtype=mxu_dtype)

    out_flat = pl.pallas_call(
        kernel,
        out_shape=jax.ShapeDtypeStruct((N, H * Wp, Cp), x_nchw.dtype),
        grid_spec=pltpu.PrefetchScalarGridSpec(
            num_scalar_prefetch=0,
            grid=(N,),
            in_specs=[
                pl.BlockSpec((1, Hp * Wp, Cp), lambda n: (n, 0, 0)),   # padded image
                pl.BlockSpec((Hp * Wp, 1), lambda n: (0, 0)),          # interior mask
                pl.BlockSpec((Cp, Chp), lambda n: (0, 0)),             # conv1 weight
                pl.BlockSpec((1, Chp), lambda n: (0, 0)),              # BN1 scale
                pl.BlockSpec((1, Chp), lambda n: (0, 0)),              # BN1 shift
                pl.BlockSpec((k * k, 1, Chp), lambda n: (0, 0, 0)),    # depthwise weight
                pl.BlockSpec((1, Chp), lambda n: (0, 0)),              # mid-BN scale
                pl.BlockSpec((1, Chp), lambda n: (0, 0)),              # mid-BN shift
                pl.BlockSpec((Chp, Cp), lambda n: (0, 0)),             # conv2 weight
                pl.BlockSpec((1, Cp), lambda n: (0, 0)),               # BN2 scale
                pl.BlockSpec((1, Cp), lambda n: (0, 0)),               # BN2 shift
            ],
            out_specs=pl.BlockSpec((1, H * Wp, Cp), lambda n: (n, 0, 0)),
            scratch_shapes=[pltpu.VMEM((Hp * Wp, Chp), jnp.float32)],
        ),
        compiler_params=pltpu.CompilerParams(
            dimension_semantics=("parallel",),
            # above the 16/32 MiB scoped defaults, below v7x's 64 MiB physical VMEM
            vmem_limit_bytes=48 * 1024 * 1024,
        ),
    )(xp, mask, w1t, s1p, b1p, wdw_t, smp, bmp, w2t, s2p, b2p)

    out = out_flat.reshape(N, H, Wp, Cp)[:, :, cl:cl + W, :C]
    return jnp.transpose(out, (0, 3, 1, 2))                  # back to NCHW


def init_resblock_params(key, in_ch, hidden_ch):
    """Parameters following ResBlock._init_weights (conv std = sqrt(2/fan_out)),
    with mildly randomized BN affine / running stats so the BN fold is exercised."""
    kw1, kdw, kw2, kb1, kbm, kb2 = jax.random.split(key, 6)

    def bn_params(kk, c):
        ka, kb, kc, kd = jax.random.split(kk, 4)
        gamma = 1.0 + 0.1 * jax.random.normal(ka, (c,), jnp.float32)
        beta = 0.1 * jax.random.normal(kb, (c,), jnp.float32)
        mean = 0.1 * jax.random.normal(kc, (c,), jnp.float32)
        var = 1.0 + 0.1 * jax.random.uniform(kd, (c,), jnp.float32)
        return gamma, beta, mean, var

    w1 = jax.random.normal(kw1, (hidden_ch, in_ch, 1, 1), jnp.float32) * math.sqrt(2.0 / hidden_ch)
    wdw = jax.random.normal(kdw, (hidden_ch, 1, 3, 3), jnp.float32) * math.sqrt(2.0 / 9.0)
    w2 = jax.random.normal(kw2, (in_ch, hidden_ch, 1, 1), jnp.float32) * math.sqrt(2.0 / in_ch)

    g1, be1, m1, v1 = bn_params(kb1, hidden_ch)
    gm, bem, mm, vm = bn_params(kbm, hidden_ch)
    g2, be2, m2, v2 = bn_params(kb2, in_ch)
    return (w1, g1, be1, m1, v1, wdw, gm, bem, mm, vm, w2, g2, be2, m2, v2)


def resblock_reference(x, params, eps=1e-5):
    """Pure-JAX f32 reference of ResBlock.forward (inference-mode BN)."""
    (w1, g1, be1, m1, v1, wdw, gm, bem, mm, vm, w2, g2, be2, m2, v2) = params

    def bn(y, g, b, m, v):
        s = (g / jnp.sqrt(v + eps)).reshape(1, -1, 1, 1)
        return y * s + (b - m * g / jnp.sqrt(v + eps)).reshape(1, -1, 1, 1)

    def hswish(z):
        return z * jnp.clip(z + 3.0, 0.0, 6.0) / 6.0

    dn = ("NCHW", "OIHW", "NCHW")
    y = lax.conv_general_dilated(x, w1, (1, 1), [(0, 0), (0, 0)], dimension_numbers=dn)
    y = hswish(bn(y, g1, be1, m1, v1))
    y = lax.conv_general_dilated(y, wdw, (1, 1), [(1, 1), (1, 1)], dimension_numbers=dn,
                                 feature_group_count=wdw.shape[0])
    y = hswish(bn(y, gm, bem, mm, vm))
    y = lax.conv_general_dilated(y, w2, (1, 1), [(0, 0), (0, 0)], dimension_numbers=dn)
    y = bn(y, g2, be2, m2, v2)
    return x + y


if __name__ == "__main__":
    key = jax.random.PRNGKey(0)
    kx, kp = jax.random.split(key)

    N, C, H, W = 2, 4, 16, 16          # in_features == out_features == 4
    hidden = 8                         # hidden_features

    x = jax.random.normal(kx, (N, C, H, W), jnp.float32)
    params = init_resblock_params(kp, C, hidden)

    y = resblock_forward(x, params)
    jax.block_until_ready(y)

    y_ref = resblock_reference(x, params)
    err = float(jnp.max(jnp.abs(y - y_ref)))
    # bf16 MXU operands (f32 accumulation) -> loosened tolerance vs the f32 reference.
    assert jnp.allclose(y, y_ref, atol=5e-2, rtol=5e-2), f"max abs err = {err}"
    print("KERNEL_OK")
</pallas_src>

<mosaic_0001>
module attributes {stable_mosaic.version = 11 : i64} {
  func.func @_resblock_kernel(%arg0: i32, %arg1: memref<1x480x128xf32, #tpu.memory_space<vmem>>, %arg2: memref<480x1xf32, #tpu.memory_space<vmem>>, %arg3: memref<128x128xf32, #tpu.memory_space<vmem>>, %arg4: memref<1x128xf32, #tpu.memory_space<vmem>>, %arg5: memref<1x128xf32, #tpu.memory_space<vmem>>, %arg6: memref<9x1x128xf32, #tpu.memory_space<vmem>>, %arg7: memref<1x128xf32, #tpu.memory_space<vmem>>, %arg8: memref<1x128xf32, #tpu.memory_space<vmem>>, %arg9: memref<128x128xf32, #tpu.memory_space<vmem>>, %arg10: memref<1x128xf32, #tpu.memory_space<vmem>>, %arg11: memref<1x128xf32, #tpu.memory_space<vmem>>, %arg12: memref<1x384x128xf32, #tpu.memory_space<vmem>>, %arg13: memref<480x128xf32, #tpu.memory_space<vmem>>) attributes {dimension_semantics = [#tpu.dimension_semantics<parallel>], iteration_bounds = array<i64: 2>, scalar_prefetch = 0 : i64, scratch_operands = 1 : i64, tpu.core_type = #tpu.core_type<tc>, window_params = [{transform_indices = @transform_0, window_bounds = array<i64: 1, 480, 128>}, {pipeline_mode = #tpu.pipeline_mode<synchronous>, transform_indices = @transform_1, window_bounds = array<i64: 480, 1>}, {pipeline_mode = #tpu.pipeline_mode<synchronous>, transform_indices = @transform_2, window_bounds = array<i64: 128, 128>}, {pipeline_mode = #tpu.pipeline_mode<synchronous>, transform_indices = @transform_3, window_bounds = array<i64: 1, 128>}, {pipeline_mode = #tpu.pipeline_mode<synchronous>, transform_indices = @transform_4, window_bounds = array<i64: 1, 128>}, {pipeline_mode = #tpu.pipeline_mode<synchronous>, transform_indices = @transform_5, window_bounds = array<i64: 9, 1, 128>}, {pipeline_mode = #tpu.pipeline_mode<synchronous>, transform_indices = @transform_6, window_bounds = array<i64: 1, 128>}, {pipeline_mode = #tpu.pipeline_mode<synchronous>, transform_indices = @transform_7, window_bounds = array<i64: 1, 128>}, {pipeline_mode = #tpu.pipeline_mode<synchronous>, transform_indices = @transform_8, window_bounds = array<i64: 128, 128>}, {pipeline_mode = #tpu.pipeline_mode<synchronous>, transform_indices = @transform_9, window_bounds = array<i64: 1, 128>}, {pipeline_mode = #tpu.pipeline_mode<synchronous>, transform_indices = @transform_10, window_bounds = array<i64: 1, 128>}, {transform_indices = @transform_11, window_bounds = array<i64: 1, 384, 128>}]} {
    %c0 = arith.constant 0 : index
    %c0_0 = arith.constant 0 : index
    %c0_1 = arith.constant 0 : index
    %0 = vector.load %arg1[%c0, %c0_0, %c0_1] : memref<1x480x128xf32, #tpu.memory_space<vmem>>, vector<1x480x128xf32>
    %1 = vector.shape_cast %0 : vector<1x480x128xf32> to vector<480x128xf32>
    %2 = arith.truncf %1 : vector<480x128xf32> to vector<480x128xbf16>
    %c0_2 = arith.constant 0 : index
    %c0_3 = arith.constant 0 : index
    %3 = vector.load %arg3[%c0_2, %c0_3] : memref<128x128xf32, #tpu.memory_space<vmem>>, vector<128x128xf32>
    %4 = arith.truncf %3 : vector<128x128xf32> to vector<128x128xbf16>
    %cst = arith.constant dense<0.000000e+00> : vector<480x128xf32>
    %5 = tpu.matmul %2, %4, %cst {dimension_numbers = #tpu.dot_dimension_numbers<[1], [0], [0], [1], [0, 0, 1, 1], [], []>} : vector<480x128xbf16>, vector<128x128xbf16>, vector<480x128xf32> -> vector<480x128xf32>
    %c0_4 = arith.constant 0 : index
    %c0_5 = arith.constant 0 : index
    %6 = vector.load %arg4[%c0_4, %c0_5] : memref<1x128xf32, #tpu.memory_space<vmem>>, vector<1x128xf32>
    %7 = vector.broadcast %6 : vector<1x128xf32> to vector<480x128xf32>
    %8 = arith.mulf %5, %7 : vector<480x128xf32>
    %c0_6 = arith.constant 0 : index
    %c0_7 = arith.constant 0 : index
    %9 = vector.load %arg5[%c0_6, %c0_7] : memref<1x128xf32, #tpu.memory_space<vmem>>, vector<1x128xf32>
    %10 = vector.broadcast %9 : vector<1x128xf32> to vector<480x128xf32>
    %11 = arith.addf %8, %10 : vector<480x128xf32>
    %cst_8 = arith.constant 3.000000e+00 : f32
    %12 = vector.broadcast %cst_8 : f32 to vector<480x128xf32>
    %13 = arith.addf %11, %12 : vector<480x128xf32>
    %cst_9 = arith.constant 0.000000e+00 : f32
    %cst_10 = arith.constant 6.000000e+00 : f32
    %14 = vector.broadcast %cst_9 : f32 to vector<480x128xf32>
    %15 = arith.maximumf %14, %13 : vector<480x128xf32>
    %16 = vector.broadcast %cst_10 : f32 to vector<480x128xf32>
    %17 = arith.minimumf %16, %15 : vector<480x128xf32>
    %18 = arith.mulf %11, %17 : vector<480x128xf32>
    %cst_11 = arith.constant 0.166666672 : f32
    %19 = vector.broadcast %cst_11 : f32 to vector<480x128xf32>
    %20 = arith.mulf %18, %19 : vector<480x128xf32>
    %c0_12 = arith.constant 0 : index
    %c0_13 = arith.constant 0 : index
    %21 = vector.load %arg2[%c0_12, %c0_13] : memref<480x1xf32, #tpu.memory_space<vmem>>, vector<480x1xf32>
    %22 = vector.broadcast %21 : vector<480x1xf32> to vector<480x128xf32>
    %23 = arith.mulf %20, %22 : vector<480x128xf32>
    %c0_14 = arith.constant 0 : index
    %c0_15 = arith.constant 0 : index
    %24 = vector.load %arg13[%c0_14, %c0_15] : memref<480x128xf32, #tpu.memory_space<vmem>>, vector<480x128xf32>
    tpu.vector_store %arg13[%c0_14, %c0_15], %23 {strides = array<i32>} : memref<480x128xf32, #tpu.memory_space<vmem>>, vector<480x128xf32>,
    %c23 = arith.constant 23 : index
    %c0_16 = arith.constant 0 : index
    %25 = vector.load %arg13[%c23, %c0_16] : memref<480x128xf32, #tpu.memory_space<vmem>>, vector<384x128xf32>
    %c0_17 = arith.constant 0 : index
    %c0_18 = arith.constant 0 : index
    %c0_19 = arith.constant 0 : index
    %26 = vector.load %arg6[%c0_17, %c0_18, %c0_19] : memref<9x1x128xf32, #tpu.memory_space<vmem>>, vector<1x1x128xf32>
    %27 = vector.shape_cast %26 : vector<1x1x128xf32> to vector<1x128xf32>
    %28 = vector.broadcast %27 : vector<1x128xf32> to vector<384x128xf32>
    %29 = arith.mulf %25, %28 : vector<384x128xf32>
    %c24 = arith.constant 24 : index
    %c0_20 = arith.constant 0 : index
    %30 = vector.load %arg13[%c24, %c0_20] : memref<480x128xf32, #tpu.memory_space<vmem>>, vector<384x128xf32>
    %c1 = arith.constant 1 : index
    %c0_21 = arith.constant 0 : index
    %c0_22 = arith.constant 0 : index
    %31 = vector.load %arg6[%c1, %c0_21, %c0_22] : memref<9x1x128xf32, #tpu.memory_space<vmem>>, vector<1x1x128xf32>
    %32 = vector.shape_cast %31 : vector<1x1x128xf32> to vector<1x128xf32>
    %33 = vector.broadcast %32 : vector<1x128xf32> to vector<384x128xf32>
    %34 = arith.mulf %30, %33 : vector<384x128xf32>
    %35 = arith.addf %29, %34 : vector<384x128xf32>
    %c25 = arith.constant 25 : index
    %c0_23 = arith.constant 0 : index
    %36 = vector.load %arg13[%c25, %c0_23] : memref<480x128xf32, #tpu.memory_space<vmem>>, vector<384x128xf32>
    %c2 = arith.constant 2 : index
    %c0_24 = arith.constant 0 : index
    %c0_25 = arith.constant 0 : index
    %37 = vector.load %arg6[%c2, %c0_24, %c0_25] : memref<9x1x128xf32, #tpu.memory_space<vmem>>, vector<1x1x128xf32>
    %38 = vector.shape_cast %37 : vector<1x1x128xf32> to vector<1x128xf32>
    %39 = vector.broadcast %38 : vector<1x128xf32> to vector<384x128xf32>
    %40 = arith.mulf %36, %39 : vector<384x128xf32>
    %41 = arith.addf %35, %40 : vector<384x128xf32>
    %c47 = arith.constant 47 : index
    %c0_26 = arith.constant 0 : index
    %42 = vector.load %arg13[%c47, %c0_26] : memref<480x128xf32, #tpu.memory_space<vmem>>, vector<384x128xf32>
    %c3 = arith.constant 3 : index
    %c0_27 = arith.constant 0 : index
    %c0_28 = arith.constant 0 : index
    %43 = vector.load %arg6[%c3, %c0_27, %c0_28] : memref<9x1x128xf32, #tpu.memory_space<vmem>>, vector<1x1x128xf32>
    %44 = vector.shape_cast %43 : vector<1x1x128xf32> to vector<1x128xf32>
    %45 = vector.broadcast %44 : vector<1x128xf32> to vector<384x128xf32>
    %46 = arith.mulf %42, %45 : vector<384x128xf32>
    %47 = arith.addf %41, %46 : vector<384x128xf32>
    %c48 = arith.constant 48 : index
    %c0_29 = arith.constant 0 : index
    %48 = vector.load %arg13[%c48, %c0_29] : memref<480x128xf32, #tpu.memory_space<vmem>>, vector<384x128xf32>
    %c4 = arith.constant 4 : index
    %c0_30 = arith.constant 0 : index
    %c0_31 = arith.constant 0 : index
    %49 = vector.load %arg6[%c4, %c0_30, %c0_31] : memref<9x1x128xf32, #tpu.memory_space<vmem>>, vector<1x1x128xf32>
    %50 = vector.shape_cast %49 : vector<1x1x128xf32> to vector<1x128xf32>
    %51 = vector.broadcast %50 : vector<1x128xf32> to vector<384x128xf32>
    %52 = arith.mulf %48, %51 : vector<384x128xf32>
    %53 = arith.addf %47, %52 : vector<384x128xf32>
    %c49 = arith.constant 49 : index
    %c0_32 = arith.constant 0 : index
    %54 = vector.load %arg13[%c49, %c0_32] : memref<480x128xf32, #tpu.memory_space<vmem>>, vector<384x128xf32>
    %c5 = arith.constant 5 : index
    %c0_33 = arith.constant 0 : index
    %c0_34 = arith.constant 0 : index
    %55 = vector.load %arg6[%c5, %c0_33, %c0_34] : memref<9x1x128xf32, #tpu.memory_space<vmem>>, vector<1x1x128xf32>
    %56 = vector.shape_cast %55 : vector<1x1x128xf32> to vector<1x128xf32>
    %57 = vector.broadcast %56 : vector<1x128xf32> to vector<384x128xf32>
    %58 = arith.mulf %54, %57 : vector<384x128xf32>
    %59 = arith.addf %53, %58 : vector<384x128xf32>
    %c71 = arith.constant 71 : index
    %c0_35 = arith.constant 0 : index
    %60 = vector.load %arg13[%c71, %c0_35] : memref<480x128xf32, #tpu.memory_space<vmem>>, vector<384x128xf32>
    %c6 = arith.constant 6 : index
    %c0_36 = arith.constant 0 : index
    %c0_37 = arith.constant 0 : index
    %61 = vector.load %arg6[%c6, %c0_36, %c0_37] : memref<9x1x128xf32, #tpu.memory_space<vmem>>, vector<1x1x128xf32>
    %62 = vector.shape_cast %61 : vector<1x1x128xf32> to vector<1x128xf32>
    %63 = vector.broadcast %62 : vector<1x128xf32> to vector<384x128xf32>
    %64 = arith.mulf %60, %63 : vector<384x128xf32>
    %65 = arith.addf %59, %64 : vector<384x128xf32>
    %c72 = arith.constant 72 : index
    %c0_38 = arith.constant 0 : index
    %66 = vector.load %arg13[%c72, %c0_38] : memref<480x128xf32, #tpu.memory_space<vmem>>, vector<384x128xf32>
    %c7 = arith.constant 7 : index
    %c0_39 = arith.constant 0 : index
    %c0_40 = arith.constant 0 : index
    %67 = vector.load %arg6[%c7, %c0_39, %c0_40] : memref<9x1x128xf32, #tpu.memory_space<vmem>>, vector<1x1x128xf32>
    %68 = vector.shape_cast %67 : vector<1x1x128xf32> to vector<1x128xf32>
    %69 = vector.broadcast %68 : vector<1x128xf32> to vector<384x128xf32>
    %70 = arith.mulf %66, %69 : vector<384x128xf32>
    %71 = arith.addf %65, %70 : vector<384x128xf32>
    %c73 = arith.constant 73 : index
    %c0_41 = arith.constant 0 : index
    %72 = vector.load %arg13[%c73, %c0_41] : memref<480x128xf32, #tpu.memory_space<vmem>>, vector<384x128xf32>
    %c8 = arith.constant 8 : index
    %c0_42 = arith.constant 0 : index
    %c0_43 = arith.constant 0 : index
    %73 = vector.load %arg6[%c8, %c0_42, %c0_43] : memref<9x1x128xf32, #tpu.memory_space<vmem>>, vector<1x1x128xf32>
    %74 = vector.shape_cast %73 : vector<1x1x128xf32> to vector<1x128xf32>
    %75 = vector.broadcast %74 : vector<1x128xf32> to vector<384x128xf32>
    %76 = arith.mulf %72, %75 : vector<384x128xf32>
    %77 = arith.addf %71, %76 : vector<384x128xf32>
    %c0_44 = arith.constant 0 : index
    %c0_45 = arith.constant 0 : index
    %78 = vector.load %arg7[%c0_44, %c0_45] : memref<1x128xf32, #tpu.memory_space<vmem>>, vector<1x128xf32>
    %79 = vector.broadcast %78 : vector<1x128xf32> to vector<384x128xf32>
    %80 = arith.mulf %77, %79 : vector<384x128xf32>
    %c0_46 = arith.constant 0 : index
    %c0_47 = arith.constant 0 : index
    %81 = vector.load %arg8[%c0_46, %c0_47] : memref<1x128xf32, #tpu.memory_space<vmem>>, vector<1x128xf32>
    %82 = vector.broadcast %81 : vector<1x128xf32> to vector<384x128xf32>
    %83 = arith.addf %80, %82 : vector<384x128xf32>
    %cst_48 = arith.constant 3.000000e+00 : f32
    %84 = vector.broadcast %cst_48 : f32 to vector<384x128xf32>
    %85 = arith.addf %83, %84 : vector<384x128xf32>
    %cst_49 = arith.constant 0.000000e+00 : f32
    %cst_50 = arith.constant 6.000000e+00 : f32
    %86 = vector.broadcast %cst_49 : f32 to vector<384x128xf32>
    %87 = arith.maximumf %86, %85 : vector<384x128xf32>
    %88 = vector.broadcast %cst_50 : f32 to vector<384x128xf32>
    %89 = arith.minimumf %88, %87 : vector<384x128xf32>
    %90 = arith.mulf %83, %89 : vector<384x128xf32>
    %cst_51 = arith.constant 0.166666672 : f32
    %91 = vector.broadcast %cst_51 : f32 to vector<384x128xf32>
    %92 = arith.mulf %90, %91 : vector<384x128xf32>
    %93 = arith.truncf %92 : vector<384x128xf32> to vector<384x128xbf16>
    %c0_52 = arith.constant 0 : index
    %c0_53 = arith.constant 0 : index
    %94 = vector.load %arg9[%c0_52, %c0_53] : memref<128x128xf32, #tpu.memory_space<vmem>>, vector<128x128xf32>
    %95 = arith.truncf %94 : vector<128x128xf32> to vector<128x128xbf16>
    %cst_54 = arith.constant dense<0.000000e+00> : vector<384x128xf32>
    %96 = tpu.matmul %93, %95, %cst_54 {dimension_numbers = #tpu.dot_dimension_numbers<[1], [0], [0], [1], [0, 0, 1, 1], [], []>} : vector<384x128xbf16>, vector<128x128xbf16>, vector<384x128xf32> -> vector<384x128xf32>
    %c0_55 = arith.constant 0 : index
    %c0_56 = arith.constant 0 : index
    %97 = vector.load %arg10[%c0_55, %c0_56] : memref<1x128xf32, #tpu.memory_space<vmem>>, vector<1x128xf32>
    %98 = vector.broadcast %97 : vector<1x128xf32> to vector<384x128xf32>
    %99 = arith.mulf %96, %98 : vector<384x128xf32>
    %c0_57 = arith.constant 0 : index
    %c0_58 = arith.constant 0 : index
    %100 = vector.load %arg11[%c0_57, %c0_58] : memref<1x128xf32, #tpu.memory_space<vmem>>, vector<1x128xf32>
    %101 = vector.broadcast %100 : vector<1x128xf32> to vector<384x128xf32>
    %102 = arith.addf %99, %101 : vector<384x128xf32>
    %103 = vector.extract_strided_slice %1 {offsets = [48, 0], sizes = [384, 128], strides = [1, 1]} : vector<480x128xf32> to vector<384x128xf32>
    %104 = arith.addf %103, %102 : vector<384x128xf32>
    %c0_59 = arith.constant 0 : index
    %c0_60 = arith.constant 0 : index
    %c0_61 = arith.constant 0 : index
    %105 = vector.load %arg12[%c0_59, %c0_60, %c0_61] : memref<1x384x128xf32, #tpu.memory_space<vmem>>, vector<1x384x128xf32>
    %106 = vector.shape_cast %105 : vector<1x384x128xf32> to vector<384x128xf32>
    %107 = vector.shape_cast %104 : vector<384x128xf32> to vector<1x384x128xf32>
    tpu.vector_store %arg12[%c0_59, %c0_60, %c0_61], %107 {strides = array<i32>} : memref<1x384x128xf32, #tpu.memory_space<vmem>>, vector<1x384x128xf32>,
    return
  }
  func.func @transform_0(%arg0: i32) -> (i32, i32, i32) {
    %c0_i32 = arith.constant 0 : i32
    %c0_i32_0 = arith.constant 0 : i32
    %c0_i32_1 = arith.constant 0 : i32
    return %arg0, %c0_i32, %c0_i32_0 : i32, i32, i32
  }
  func.func @transform_1(%arg0: i32) -> (i32, i32) {
    %c0_i32 = arith.constant 0 : i32
    %c0_i32_0 = arith.constant 0 : i32
    %c0_i32_1 = arith.constant 0 : i32
    return %c0_i32, %c0_i32_0 : i32, i32
  }
  func.func @transform_2(%arg0: i32) -> (i32, i32) {
    %c0_i32 = arith.constant 0 : i32
    %c0_i32_0 = arith.constant 0 : i32
    %c0_i32_1 = arith.constant 0 : i32
    return %c0_i32, %c0_i32_0 : i32, i32
  }
  func.func @transform_3(%arg0: i32) -> (i32, i32) {
    %c0_i32 = arith.constant 0 : i32
    %c0_i32_0 = arith.constant 0 : i32
    %c0_i32_1 = arith.constant 0 : i32
    return %c0_i32, %c0_i32_0 : i32, i32
  }
  func.func @transform_4(%arg0: i32) -> (i32, i32) {
    %c0_i32 = arith.constant 0 : i32
    %c0_i32_0 = arith.constant 0 : i32
    %c0_i32_1 = arith.constant 0 : i32
    return %c0_i32, %c0_i32_0 : i32, i32
  }
  func.func @transform_5(%arg0: i32) -> (i32, i32, i32) {
    %c0_i32 = arith.constant 0 : i32
    %c0_i32_0 = arith.constant 0 : i32
    %c0_i32_1 = arith.constant 0 : i32
    %c0_i32_2 = arith.constant 0 : i32
    return %c0_i32, %c0_i32_0, %c0_i32_1 : i32, i32, i32
  }
  func.func @transform_6(%arg0: i32) -> (i32, i32) {
    %c0_i32 = arith.constant 0 : i32
    %c0_i32_0 = arith.constant 0 : i32
    %c0_i32_1 = arith.constant 0 : i32
    return %c0_i32, %c0_i32_0 : i32, i32
  }
  func.func @transform_7(%arg0: i32) -> (i32, i32) {
    %c0_i32 = arith.constant 0 : i32
    %c0_i32_0 = arith.constant 0 : i32
    %c0_i32_1 = arith.constant 0 : i32
    return %c0_i32, %c0_i32_0 : i32, i32
  }
  func.func @transform_8(%arg0: i32) -> (i32, i32) {
    %c0_i32 = arith.constant 0 : i32
    %c0_i32_0 = arith.constant 0 : i32
    %c0_i32_1 = arith.constant 0 : i32
    return %c0_i32, %c0_i32_0 : i32, i32
  }
  func.func @transform_9(%arg0: i32) -> (i32, i32) {
    %c0_i32 = arith.constant 0 : i32
    %c0_i32_0 = arith.constant 0 : i32
    %c0_i32_1 = arith.constant 0 : i32
    return %c0_i32, %c0_i32_0 : i32, i32
  }
  func.func @transform_10(%arg0: i32) -> (i32, i32) {
    %c0_i32 = arith.constant 0 : i32
    %c0_i32_0 = arith.constant 0 : i32
    %c0_i32_1 = arith.constant 0 : i32
    return %c0_i32, %c0_i32_0 : i32, i32
  }
  func.func @transform_11(%arg0: i32) -> (i32, i32, i32) {
    %c0_i32 = arith.constant 0 : i32
    %c0_i32_0 = arith.constant 0 : i32
    %c0_i32_1 = arith.constant 0 : i32
    return %arg0, %c0_i32, %c0_i32_0 : i32, i32, i32
  }
}

</mosaic_0001>

<bundles_post_ra>
// kernel: tpu_custom_call.1
= control target key start
LH: loop header
LB: loop body
LE: loop exit
PB: predicated region body
PF: predicated region fallthrough
CT: control target
= control target key end

     0   :  { %16 = vsyncpa [#allocation4], 0  ;;  %s6655_s0 = inlined_call_operand.hbm [shape: f32[2,480,128], index: 0, kind: input, shape index: {}]   ;;  %s6656_s1 = inlined_call_operand.vmem [shape: f32[480,1], index: 1, kind: input, shape index: {}]   ;;  %s6657_s2 = inlined_call_operand.vmem [shape: f32[128,128], index: 2, kind: input, shape index: {}]   ;;  %s6658_s3 = inlined_call_operand.vmem [shape: f32[1,128], index: 3, kind: input, shape index: {}]   ;;  %s6659_s4 = inlined_call_operand.vmem [shape: f32[1,128], index: 4, kind: input, shape index: {}]   ;;  %s6660_s5 = inlined_call_operand.vmem [shape: f32[9,1,128], index: 5, kind: input, shape index: {}]   ;;  %s6661_s6 = inlined_call_operand.vmem [shape: f32[1,128], index: 6, kind: input, shape index: {}]   ;;  %s6662_s7 = inlined_call_operand.vmem [shape: f32[1,128], index: 7, kind: input, shape index: {}]   ;;  %s6663_s8 = inlined_call_operand.vmem [shape: f32[128,128], index: 8, kind: input, shape index: {}]   ;;  %s6664_s9 = inlined_call_operand.vmem [shape: f32[1,128], index: 9, kind: input, shape index: {}]   ;;  %s6665_s10 = inlined_call_operand.vmem [shape: f32[1,128], index: 10, kind: input, shape index: {}]   ;;  %s6666_s11 = inlined_call_operand.hbm [shape: f32[2,384,128], index: 11, kind: output, shape index: {}]  }
   0x1   :  { %18 = vsyncpa [#allocation4 + $0x1], 0 }
   0x2   :  { %19 = vsyncpa [#allocation5], 0 }
   0x3   :  { %21 = vsyncpa [#allocation5 + $0x1], 0  ;;  %s4210_s17 = smov 0   ;;  %s4212_s18 = smov 0  }
   0x4   :  { %s4214_s19 = smov 0   ;;  %s4216_s20 = smov 0  }
   0x5 LB: > { %6672 = sst [smem:[#allocation9_spill]] %s4137_s19  ;;  %s4231_s21 = sadd.s32 4294967295, %s4141_s20   ;;  %s4141_s20 = sphi %s4216_s20, %s6750_s20   ;;  %s4137_s19 = sphi %s4214_s19, %s6752_s19   ;;  %s4133_s18 = sphi %s4212_s18, %s6754_s18   ;;  %s4129_s17 = sphi %s4210_s17, %s6753_s17  }
   0x6   : > { %s3672_s22 = sadd.s32 4294967294, %s4141_s20   ;;  %s4235_s23 = sadd.s32 1, %s4141_s20  }
   0x7   : > { %6673 = sst [smem:[#allocation10_spill]] %s4235_s23  ;;  %s34_s24 = sadd.s32 1, %s4137_s19 }
   0x8   : > { %s31_s25 = ssub.s32 %s4141_s20, %s4235_s23  ;;  %p41_p0 = scmp.ne.s32.totalorder %s4137_s19, %s4133_s18 }
   0x9   : > { %p32_p1 = scmp.eq.s32.totalorder %s31_s25, 0  ;;  %p42_p2 = scmp.eq.s32.totalorder %s4141_s20, 0 }
   0xa   : > { %p47_p3 = scmp.ne.s32.totalorder %s4133_s18, %s4129_s17  ;;  %p48_p4 = scmp.eq.s32.totalorder %s4231_s21, 0 }
   0xb   : > { %s4247_s26 = scalar_select %p32_p1, %s4137_s19, %s34_s24  }
   0xc   : > { %p43_p5 = por %p42_p2, %p41_p0  ;;  %p4249_p6 = por %p48_p4, %p47_p3 }
   0xd   : > { %6674 = sst [smem:[#allocation11_spill]] %s4247_s26  ;;  %p281_p7 = scmp.eq.s32.totalorder %s4231_s21, 1 }
   0xe   : > { %p287_p8 = scmp.eq.s32.totalorder %s3672_s22, 1  ;;  %p3930_p10 = scmp.lt.s32.totalorder %s4141_s20, 2 }
   0xf   : > { %p4256_p11 = por %p281_p7, %p41_p0  ;;  %s337_s30 = sand.u32 1, %s4137_s19  }
  0x10   : > { %p4260_p12 = por %p287_p8, %p47_p3  ;;  %s3914_s12 = smul.u32 7680, %s4141_s20 }
  0x11   : > { %s6676_s28 = scalar_select %p4256_p11, 1, 0 }
  0x12   : > { %s6677_s29 = scalar_select %p4260_p12, 1, 0 }
  0x13   : > { %s3913_s13 = smul.u32 480, %s337_s30  ;;  %s4269_s16 = scalar_lea.hbm %s6655_s0, %s3914_s12 }
  0x14   : > { %6678 = sst [smem:[#allocation12_spill]] %s6677_s29  ;;  %p4271_p13 = pnand %p3930_p10, %p43_p5 }
  0x15   : > { %s341_s24 = scalar_lea.vmem [#allocation3], %s3913_s13  ;;  %s4277_s26 = scalar_lea.sflag [#allocation4], %s337_s30 }
  0x16   : > { %s348_s25 = sshll.u32 %s341_s24, 4  ;;  %s4045_s19 = scalar_lea.hbm %s4269_s16, 7680  ;;  %s4275_s25 = int_to_ptr.vmem [resolvable:$true] %s348_s25 }
  0x17   : > { %p4046_p0 = scmp.ne.s32.totalorder %s4269_s16, %s4045_s19  ;;  %p4047_p1 = pneg %p4271_p13 }
  0x18   : > { %s4050_s15 = scalar_lea.hbm %s6655_s0, 15360  ;;  %p4051_p4 = scmp.lt.u32.totalorder %s4269_s16, %s6655_s0 }
  0x19   : > { %p4048_p2 = pnand %p4047_p1, %p4046_p0  ;;  %p4052_p5 = scmp.lt.u32.totalorder %s4050_s15, %s4045_s19 }
  0x1a   : > { %p4054_p8 = scmp.lt.u32.totalorder %s4045_s19, %s4269_s16 }
  0x1b   : > { %p4049_p3 = pneg %p4048_p2  ;;  %p4053_p7 = por %p4052_p5, %p4051_p4 }
  0x1d   : > { %p4055_p10 = por %p4054_p8, %p4053_p7 }
  0x1f   : > { %p4056_p9 = pnand %p4055_p10, %p4049_p3 }
  0x21   : > { %4059 = shalt.err (!%p4056_p9)
}
  0x22   : > { %s4060_s30 = scalar_lea.vmem %s4275_s25, 7680  ;;  %s4143_s13 = smov [#allocation3]  }
  0x23   : > { %p4061_p0 = scmp.ne.s32.totalorder %s4275_s25, %s4060_s30  ;;  %s4065_s24 = sshll.u32 %s4143_s13, 4  ;;  %s4066_s24 = int_to_ptr.vmem [resolvable:$false] %s4065_s24 }
  0x24   : > { %s4067_s23 = scalar_lea.vmem %s4066_s24, 15360  ;;  %p4068_p11 = scmp.lt.s32.totalorder %s4275_s25, %s4066_s24 }
  0x25   : > { %p4063_p2 = pnand %p4061_p0, %p4047_p1  ;;  %p4069_p4 = scmp.lt.s32.totalorder %s4067_s23, %s4060_s30 }
  0x27   : > { %p4064_p12 = pneg %p4063_p2  ;;  %p4070_p5 = por %p4069_p4, %p4068_p11 }
  0x29   : > { %p4071_p7 = pnand %p4070_p5, %p4064_p12 }
  0x2b   : > { %4074 = shalt.err (!%p4071_p7)
}
  0x2c   : > { %s4144_s19 = smov 128   ;;  %s4145_s29 = smov 8  }
  0x2d   : > { %3925 = dma.hbm_to_vmem [thread:$0]  (!%p4271_p13), %s4269_s16, 7680, %s4275_s25, %s4277_s26, %s4144_s19, %s4144_s19, %s4145_s29  }
  0x2e   : > { %p3676_p9 = scmp.ge.s32.totalorder %s4141_s20, 1  ;;  %p356_p1 = scmp.lt.s32.totalorder %s4141_s20, 3 }
  0x30   : > { %p357_p3 = pnand %p3676_p9, %p356_p1 }
  0x32   : > { %360 = sbr.rel (%p357_p3) target bundleno = 974 (0x3ce), region = 64 }
  0x39   : > { %s4308_s12 = sand.u32 1, %s4133_s18  }
  0x3a   : > { %s3915_s14 = smul.u32 480, %s4308_s12  ;;  %s363_s15 = scalar_lea.sflag [#allocation4], %s4308_s12 }
  0x3c   : > { %s4312_s30 = scalar_lea.vmem [#allocation3], %s3915_s14 }
  0x3d   : > { %4120 = dma.done.wait (%p4249_p6), %s363_s15, 7680  }
  0x3e   : > { %4122 = vsyncadd (%p4249_p6), %s363_s15, 4294959616  ;;  %v4146_v0 = vmov 0   ;;  %v496_v1 = vld [vmem:[%s6657_s2] sm:$0xff]  ;;  %v497_v2 = vld [vmem:[%s6657_s2 + $0x8] sm:$0xff]  ;;  %s3916_s26 = smul.u32 384, %s4308_s12  ;;  %s3586_s27 = scalar_lea.sflag [#allocation5], %s4308_s12 }
  0x3f   : > { %3969 = vset.pattern.permute.xlu0 %v4146_v0  ;;  %3970 = vset.pattern.permute.xlu1 %v4146_v0  ;;  %v498_v3 = vld [vmem:[%s6657_s2 + $0x10] sm:$0xff]  ;;  %v512_v4 = vpack.c.bf16 %v497_v2, %v496_v1  ;;  %v499_v5 = vld [vmem:[%s6657_s2 + $0x18] sm:$0xff]  ;;  %v500_v7 = vld [vmem:[%s6657_s2 + $0x20] sm:$0xff]  ;;  %s3917_s13 = smul.u32 6144, %s4231_s21  ;;  %p6746_p11 = scmp.ne.s32.totalorder %s6676_s28, 0 }
  0x40   : > { %v513_v6 = vpack.c.bf16 %v499_v5, %v498_v3  ;;  %v501_v8 = vld [vmem:[%s6657_s2 + $0x28] sm:$0xff]  ;;  %v1229_v9 = vld [vmem:[%s6656_s1 + $0x10] sm:$0xff]  ;;  %v1231_v10 = vld [vmem:[%s6656_s1 + $0x20] sm:$0xff]  ;;  %s6413_s25 = scalar_lea.vmem [#allocation6], %s3916_s26  ;;  %s4147_s14 = smov [#allocation6]  }
  0x41   : > { %3773 = vmatprep.subr.bf16.mxu0 %v512_v4  ;;  %1299 = vperm.xlu0 %3969, %v1229_v9   ;;  %v514_v11 = vpack.c.bf16 %v501_v8, %v500_v7  ;;  %v1230_v12 = vld [vmem:[%s6656_s1 + $0x18] sm:$0xff]  ;;  %v502_v13 = vld [vmem:[%s6657_s2 + $0x30] sm:$0xff]  ;;  %v1232_v15 = vld [vmem:[%s6656_s1 + $0x28] sm:$0xff]  ;;  %s3599_s24 = sshll.u32 %s6413_s25, 4  ;;  %s6605_s19 = scalar_lea.hbm %s6666_s11, %s3917_s13  ;;  %s6609_s24 = int_to_ptr.vmem [resolvable:$true] %s3599_s24 }
  0x42   : > { %3774 = vmatpush3.bf16.msra.mxu0 %v512_v4  ;;  %1309 = vperm.xlu1 %3970, %v1231_v10   ;;  %v503_v14 = vld [vmem:[%s6657_s2 + $0x38] sm:$0xff]  ;;  %v406_v16 = vld [vmem:[%s4312_s30] sm:$0xff]  ;;  %v407_v17 = vld [vmem:[%s4312_s30 + $0x8] sm:$0xff]  ;;  %s4075_s29 = scalar_lea.vmem %s6609_s24, 6144  ;;  %s4079_s15 = sshll.u32 %s4147_s14, 4  ;;  %s4080_s15 = int_to_ptr.vmem [resolvable:$false] %s4079_s15 }
  0x43   : > { %3775 = vmatprep.subr.bf16.mxu0 %v513_v6  ;;  %v515_v18 = vpack.c.bf16 %v503_v14, %v502_v13  ;;  %v1233_v19 = vld [vmem:[%s6656_s1 + $0x30] sm:$0xff]  ;;  %v466_v20 = vpack.c.bf16 %v407_v17, %v406_v16  ;;  %v504_v21 = vld [vmem:[%s6657_s2 + $0x40] sm:$0xff]  ;;  %v505_v22 = vld [vmem:[%s6657_s2 + $0x48] sm:$0xff]  ;;  %p4076_p6 = scmp.ne.s32.totalorder %s6609_s24, %s4075_s29  ;;  %s4081_s26 = scalar_lea.vmem %s4080_s15, 12288 }
  0x44   : > { %v1234_v23 = vld [vmem:[%s6656_s1 + $0x38] sm:$0xff]  ;;  %v516_v24 = vpack.c.bf16 %v505_v22, %v504_v21  ;;  %v1235_v25 = vld [vmem:[%s6656_s1 + $0x40] sm:$0xff]  ;;  %v506_v26 = vld [vmem:[%s6657_s2 + $0x50] sm:$0xff]  ;;  %p4082_p8 = scmp.lt.s32.totalorder %s6609_s24, %s4080_s15  ;;  %p4083_p10 = scmp.lt.s32.totalorder %s4081_s26, %s4075_s29 }
  0x45   : > { %1304 = vperm.xlu0 %3969, %v1230_v12   ;;  %3789 = vmatprep.mubr.bf16.mxu0 %v466_v20  ;;  %v507_v27 = vld [vmem:[%s6657_s2 + $0x58] sm:$0xff]  ;;  %v1236_v28 = vld [vmem:[%s6656_s1 + $0x48] sm:$0xff]  ;;  %v1237_v30 = vld [vmem:[%s6656_s1 + $0x50] sm:$0xff]  ;;  %p4077_p12 = pnand %p4076_p6, %p6746_p11 }
  0x46   : > { %3776 = vmatpush3.bf16.msra.mxu0 %v513_v6  ;;  %1314 = vperm.xlu1 %3970, %v1232_v15   ;;  %v517_v29 = vpack.c.bf16 %v507_v27, %v506_v26  ;;  %v508_v31 = vld [vmem:[%s6657_s2 + $0x60] sm:$0xff]  ;;  %v509_v32 = vld [vmem:[%s6657_s2 + $0x68] sm:$0xff]  ;;  %v1238_v33 = vld [vmem:[%s6656_s1 + $0x58] sm:$0xff]  ;;  %p4084_p0 = por %p4083_p10, %p4082_p8 }
  0x47   : > { %3777 = vmatprep.subr.bf16.mxu0 %v514_v11  ;;  %v518_v34 = vpack.c.bf16 %v509_v32, %v508_v31  ;;  %v1239_v35 = vld [vmem:[%s6656_s1 + $0x60] sm:$0xff]  ;;  %v510_v36 = vld [vmem:[%s6657_s2 + $0x70] sm:$0xff]  ;;  %v511_v37 = vld [vmem:[%s6657_s2 + $0x78] sm:$0xff]  ;;  %p4078_p13 = pneg %p4077_p12 }
  0x48   : > { %v1240_v38 = vld [vmem:[%s6656_s1 + $0x68] sm:$0xff]  ;;  %v519_v39 = vpack.c.bf16 %v511_v37, %v510_v36  ;;  %v1241_v40 = vld [vmem:[%s6656_s1 + $0x70] sm:$0xff]  ;;  %v1242_v41 = vld [vmem:[%s6656_s1 + $0x78] sm:$0xff] }
  0x49   : > { %1319 = vperm.xlu0 %3969, %v1233_v19   ;;  %v408_v42 = vld [vmem:[%s4312_s30 + $0x10] sm:$0xff]  ;;  %v409_v43 = vld [vmem:[%s4312_s30 + $0x18] sm:$0xff]  ;;  %v410_v44 = vld [vmem:[%s4312_s30 + $0x20] sm:$0xff]  ;;  %p4085_p2 = pnand %p4084_p0, %p4078_p13 }
  0x4a   : > { %3778 = vmatpush3.bf16.msra.mxu0 %v514_v11  ;;  %1324 = vperm.xlu1 %3970, %v1234_v23   ;;  %v411_v45 = vld [vmem:[%s4312_s30 + $0x28] sm:$0xff]  ;;  %v1243_v46 = vld [vmem:[%s6656_s1 + $0x80] sm:$0xff]  ;;  %v467_v48 = vpack.c.bf16 %v409_v43, %v408_v42  ;;  %v1245_v50 = vld [vmem:[%s6656_s1 + $0x90] sm:$0xff] }
  0x4b   : > { %3779 = vmatprep.subr.bf16.mxu0 %v515_v18  ;;  %v1244_v47 = vld [vmem:[%s6656_s1 + $0x88] sm:$0xff]  ;;  %v468_v49 = vpack.c.bf16 %v411_v45, %v410_v44  ;;  %v1246_v51 = vld [vmem:[%s6656_s1 + $0x98] sm:$0xff]  ;;  %v412_v52 = vld [vmem:[%s4312_s30 + $0x30] sm:$0xff] }
  0x4c   : > { %v413_v53 = vld [vmem:[%s4312_s30 + $0x38] sm:$0xff]  ;;  %v414_v54 = vld [vmem:[%s4312_s30 + $0x40] sm:$0xff]  ;;  %v415_v55 = vld [vmem:[%s4312_s30 + $0x48] sm:$0xff] }
  0x4d   : > { %1329 = vperm.xlu0 %3969, %v1235_v25   ;;  %v1247_v56 = vld [vmem:[%s6656_s1 + $0xa0] sm:$0xff]  ;;  %v1248_v57 = vld [vmem:[%s6656_s1 + $0xa8] sm:$0xff]  ;;  %v469_v58 = vpack.c.bf16 %v413_v53, %v412_v52  ;;  %v470_v59 = vpack.c.bf16 %v415_v55, %v414_v54  ;;  %v1249_v60 = vld [vmem:[%s6656_s1 + $0xb0] sm:$0xff] }
  0x4e   : > { %3780 = vmatpush3.bf16.msra.mxu0 %v515_v18  ;;  %1334 = vperm.xlu1 %3970, %v1236_v28   ;;  %v1250_v61 = vld [vmem:[%s6656_s1 + $0xb8] sm:$0xff]  ;;  %v416_v62 = vld [vmem:[%s4312_s30 + $0x50] sm:$0xff]  ;;  %v418_v0 = vld [vmem:[%s4312_s30 + $0x60] sm:$0xff] }
  0x4f   : > { %3781 = vmatprep.subr.bf16.mxu0 %v516_v24  ;;  %v417_v63 = vld [vmem:[%s4312_s30 + $0x58] sm:$0xff]  ;;  %v419_v1 = vld [vmem:[%s4312_s30 + $0x68] sm:$0xff]  ;;  %v1251_v2 = vld [vmem:[%s6656_s1 + $0xc0] sm:$0xff] }
  0x50   : > { %v1252_v3 = vld [vmem:[%s6656_s1 + $0xc8] sm:$0xff]  ;;  %v471_v4 = vpack.c.bf16 %v417_v63, %v416_v62  ;;  %v472_v5 = vpack.c.bf16 %v419_v1, %v418_v0  ;;  %v1253_v6 = vld [vmem:[%s6656_s1 + $0xd0] sm:$0xff]  ;;  %v1254_v7 = vld [vmem:[%s6656_s1 + $0xd8] sm:$0xff] }
  0x51   : > { %1339 = vperm.xlu0 %3969, %v1237_v30   ;;  %v420_v8 = vld [vmem:[%s4312_s30 + $0x70] sm:$0xff]  ;;  %v421_v9 = vld [vmem:[%s4312_s30 + $0x78] sm:$0xff]  ;;  %v422_v10 = vld [vmem:[%s4312_s30 + $0x80] sm:$0xff] }
  0x52   : > { %3782 = vmatpush3.bf16.msra.mxu0 %v516_v24  ;;  %1344 = vperm.xlu1 %3970, %v1238_v33   ;;  %v423_v11 = vld [vmem:[%s4312_s30 + $0x88] sm:$0xff]  ;;  %v1255_v12 = vld [vmem:[%s6656_s1 + $0xe0] sm:$0xff]  ;;  %v473_v14 = vpack.c.bf16 %v421_v9, %v420_v8  ;;  %v1257_v16 = vld [vmem:[%s6656_s1 + $0xf0] sm:$0xff] }
  0x53   : > { %3783 = vmatprep.subr.bf16.mxu0 %v517_v29  ;;  %v1256_v13 = vld [vmem:[%s6656_s1 + $0xe8] sm:$0xff]  ;;  %v474_v15 = vpack.c.bf16 %v423_v11, %v422_v10  ;;  %v1258_v17 = vld [vmem:[%s6656_s1 + $0xf8] sm:$0xff]  ;;  %v424_v18 = vld [vmem:[%s4312_s30 + $0x90] sm:$0xff] }
  0x54   : > { %v425_v19 = vld [vmem:[%s4312_s30 + $0x98] sm:$0xff]  ;;  %v426_v20 = vld [vmem:[%s4312_s30 + $0xa0] sm:$0xff]  ;;  %v427_v21 = vld [vmem:[%s4312_s30 + $0xa8] sm:$0xff] }
  0x55   : > { %1349 = vperm.xlu0 %3969, %v1239_v35   ;;  %v1259_v22 = vld [vmem:[%s6656_s1 + $0x100] sm:$0xff]  ;;  %v1260_v23 = vld [vmem:[%s6656_s1 + $0x108] sm:$0xff]  ;;  %v475_v24 = vpack.c.bf16 %v425_v19, %v424_v18  ;;  %v476_v25 = vpack.c.bf16 %v427_v21, %v426_v20  ;;  %v1261_v26 = vld [vmem:[%s6656_s1 + $0x110] sm:$0xff] }
  0x56   : > { %3784 = vmatpush3.bf16.msra.mxu0 %v517_v29  ;;  %1354 = vperm.xlu1 %3970, %v1240_v38   ;;  %v1262_v27 = vld [vmem:[%s6656_s1 + $0x118] sm:$0xff]  ;;  %v428_v28 = vld [vmem:[%s4312_s30 + $0xb0] sm:$0xff]  ;;  %v430_v30 = vld [vmem:[%s4312_s30 + $0xc0] sm:$0xff] }
  0x57   : > { %3785 = vmatprep.subr.bf16.mxu0 %v518_v34  ;;  %v429_v29 = vld [vmem:[%s4312_s30 + $0xb8] sm:$0xff]  ;;  %v431_v31 = vld [vmem:[%s4312_s30 + $0xc8] sm:$0xff]  ;;  %v1263_v32 = vld [vmem:[%s6656_s1 + $0x120] sm:$0xff] }
  0x58   : > { %v1264_v33 = vld [vmem:[%s6656_s1 + $0x128] sm:$0xff]  ;;  %v478_v35 = vpack.c.bf16 %v431_v31, %v430_v30  ;;  %v1265_v36 = vld [vmem:[%s6656_s1 + $0x130] sm:$0xff]  ;;  %v1266_v37 = vld [vmem:[%s6656_s1 + $0x138] sm:$0xff] }
  0x59   : > { %1359 = vperm.xlu0 %3969, %v1241_v40   ;;  %v432_v38 = vld [vmem:[%s4312_s30 + $0xd0] sm:$0xff]  ;;  %v434_v40 = vld [vmem:[%s4312_s30 + $0xe0] sm:$0xff]  ;;  %v1268_v43 = vld [vmem:[%s6656_s1 + $0x148] sm:$0xff] }
  0x5a   : > { %3786 = vmatpush3.bf16.msra.mxu0 %v518_v34  ;;  %1364 = vperm.xlu1 %3970, %v1242_v41   ;;  %v477_v34 = vpack.c.bf16 %v429_v29, %v428_v28  ;;  %v435_v41 = vld [vmem:[%s4312_s30 + $0xe8] sm:$0xff]  ;;  %v1267_v42 = vld [vmem:[%s6656_s1 + $0x140] sm:$0xff]  ;;  %v1285_v28 = vld [vmem:[%s6656_s1 + $0x1d0] sm:$0xff] }
  0x5b   : > { %3787 = vmatprep.subr.bf16.mxu0 %v519_v39  ;;  %v480_v45 = vpack.c.bf16 %v435_v41, %v434_v40  ;;  %v1271_v52 = vld [vmem:[%s6656_s1 + $0x160] sm:$0xff]  ;;  %v1272_v53 = vld [vmem:[%s6656_s1 + $0x168] sm:$0xff]  ;;  %v1286_v29 = vld [vmem:[%s6656_s1 + $0x1d8] sm:$0xff] }
  0x5c   : > { %v1275_v62 = vld [vmem:[%s6656_s1 + $0x180] sm:$0xff]  ;;  %v1276_v63 = vld [vmem:[%s6656_s1 + $0x188] sm:$0xff]  ;;  %v461_v40 = vld [vmem:[%s4312_s30 + $0x1b8] sm:$0xff] }
  0x5d   : > { %1369 = vperm.xlu0 %3969, %v1243_v46   ;;  %v1269_v46 = vld [vmem:[%s6656_s1 + $0x150] sm:$0xff]  ;;  %v1279_v8 = vld [vmem:[%s6656_s1 + $0x1a0] sm:$0xff]  ;;  %v1280_v9 = vld [vmem:[%s6656_s1 + $0x1a8] sm:$0xff] }
  0x5e   : > { %3788 = vmatpush3.bf16.msra.mxu0 %v519_v39  ;;  %1374 = vperm.xlu1 %3970, %v1244_v47   ;;  %v433_v39 = vld [vmem:[%s4312_s30 + $0xd8] sm:$0xff]  ;;  %v1283_v18 = vld [vmem:[%s6656_s1 + $0x1c0] sm:$0xff]  ;;  %v1284_v19 = vld [vmem:[%s6656_s1 + $0x1c8] sm:$0xff] }
  0x5f   : > { %v479_v44 = vpack.c.bf16 %v433_v39, %v432_v38  ;;  %v1270_v47 = vld [vmem:[%s6656_s1 + $0x158] sm:$0xff]  ;;  %v460_v39 = vld [vmem:[%s4312_s30 + $0x1b0] sm:$0xff] }
  0x61   : > { %3790 = vmatmul.mubr.bf16.vlgmr.msra.gmra.mrb[0].mxu0 %v467_v48  ;;  %1379 = vperm.xlu0 %3969, %v1245_v50   ;;  %v436_v48 = vld [vmem:[%s4312_s30 + $0xf0] sm:$0xff]  ;;  %v438_v50 = vld [vmem:[%s4312_s30 + $0x100] sm:$0xff] }
  0x62   : > { %3793 = vmatprep.mubr.bf16.mxu0 %v468_v49  ;;  %1384 = vperm.xlu1 %3970, %v1246_v51   ;;  %v437_v49 = vld [vmem:[%s4312_s30 + $0xf8] sm:$0xff]  ;;  %v439_v51 = vld [vmem:[%s4312_s30 + $0x108] sm:$0xff] }
  0x63   : > { %v481_v54 = vpack.c.bf16 %v437_v49, %v436_v48  ;;  %v482_v55 = vpack.c.bf16 %v439_v51, %v438_v50  ;;  %v464_v49 = vld [vmem:[%s4312_s30 + $0x1d0] sm:$0xff]  ;;  %v465_v50 = vld [vmem:[%s4312_s30 + $0x1d8] sm:$0xff] }
  0x65   : > { %1389 = vperm.xlu0 %3969, %v1247_v56   ;;  %v1273_v56 = vld [vmem:[%s6656_s1 + $0x170] sm:$0xff] }
  0x66   : > { %1394 = vperm.xlu1 %3970, %v1248_v57   ;;  %v1274_v57 = vld [vmem:[%s6656_s1 + $0x178] sm:$0xff] }
  0x69   : > { %3794 = vmatmul.mubr.bf16.gmra.mrb[4].mxu0 %v469_v58  ;;  %1399 = vperm.xlu0 %3969, %v1249_v60   ;;  %v440_v58 = vld [vmem:[%s4312_s30 + $0x110] sm:$0xff]  ;;  %v442_v60 = vld [vmem:[%s4312_s30 + $0x120] sm:$0xff] }
  0x6a   : > { %3797 = vmatprep.mubr.bf16.mxu0 %v470_v59  ;;  %1404 = vperm.xlu1 %3970, %v1250_v61   ;;  %v441_v59 = vld [vmem:[%s4312_s30 + $0x118] sm:$0xff]  ;;  %v443_v61 = vld [vmem:[%s4312_s30 + $0x128] sm:$0xff] }
  0x6b   : > { %v483_v0 = vpack.c.bf16 %v441_v59, %v440_v58  ;;  %v484_v1 = vpack.c.bf16 %v443_v61, %v442_v60  ;;  %v3130_v61 = vld [vmem:[%s6663_s8] sm:$0xff] }
  0x6d   : > { %1409 = vperm.xlu0 %3969, %v1251_v2   ;;  %v1277_v2 = vld [vmem:[%s6656_s1 + $0x190] sm:$0xff] }
  0x6e   : > { %1414 = vperm.xlu1 %3970, %v1252_v3   ;;  %v1278_v3 = vld [vmem:[%s6656_s1 + $0x198] sm:$0xff] }
  0x71   : > { %3798 = vmatmul.mubr.bf16.gmra.mrb[8].mxu0 %v471_v4  ;;  %1419 = vperm.xlu0 %3969, %v1253_v6   ;;  %v444_v4 = vld [vmem:[%s4312_s30 + $0x130] sm:$0xff]  ;;  %v446_v6 = vld [vmem:[%s4312_s30 + $0x140] sm:$0xff] }
  0x72   : > { %3801 = vmatprep.mubr.bf16.mxu0 %v472_v5  ;;  %1424 = vperm.xlu1 %3970, %v1254_v7   ;;  %v445_v5 = vld [vmem:[%s4312_s30 + $0x138] sm:$0xff]  ;;  %v447_v7 = vld [vmem:[%s4312_s30 + $0x148] sm:$0xff] }
  0x73   : > { %v485_v10 = vpack.c.bf16 %v445_v5, %v444_v4  ;;  %v486_v11 = vpack.c.bf16 %v447_v7, %v446_v6  ;;  %v3134_v7 = vld [vmem:[%s6663_s8 + $0x20] sm:$0xff] }
  0x75   : > { %1429 = vperm.xlu0 %3969, %v1255_v12   ;;  %v1281_v12 = vld [vmem:[%s6656_s1 + $0x1b0] sm:$0xff] }
  0x76   : > { %1434 = vperm.xlu1 %3970, %v1256_v13   ;;  %v1282_v13 = vld [vmem:[%s6656_s1 + $0x1b8] sm:$0xff] }
  0x79   : > { %3802 = vmatmul.mubr.bf16.gmra.mrb[12].mxu0 %v473_v14  ;;  %1439 = vperm.xlu0 %3969, %v1257_v16   ;;  %v448_v14 = vld [vmem:[%s4312_s30 + $0x150] sm:$0xff]  ;;  %v450_v16 = vld [vmem:[%s4312_s30 + $0x160] sm:$0xff] }
  0x7a   : > { %3805 = vmatprep.mubr.bf16.mxu0 %v474_v15  ;;  %1444 = vperm.xlu1 %3970, %v1258_v17   ;;  %v449_v15 = vld [vmem:[%s4312_s30 + $0x158] sm:$0xff]  ;;  %v451_v17 = vld [vmem:[%s4312_s30 + $0x168] sm:$0xff] }
  0x7b   : > { %v487_v20 = vpack.c.bf16 %v449_v15, %v448_v14  ;;  %v488_v21 = vpack.c.bf16 %v451_v17, %v450_v16  ;;  %v3138_v17 = vld [vmem:[%s6663_s8 + $0x40] sm:$0xff] }
  0x7d   : > { %1449 = vperm.xlu0 %3969, %v1259_v22   ;;  %v1227_v22 = vld [vmem:[%s6656_s1] sm:$0xff] }
  0x7e   : > { %1454 = vperm.xlu1 %3970, %v1260_v23   ;;  %v1228_v23 = vld [vmem:[%s6656_s1 + $0x8] sm:$0xff] }
  0x81   : > { %3806 = vmatmul.mubr.bf16.gmra.mrb[16].mxu0 %v475_v24  ;;  %1459 = vperm.xlu0 %3969, %v1261_v26   ;;  %v452_v24 = vld [vmem:[%s4312_s30 + $0x170] sm:$0xff]  ;;  %v454_v26 = vld [vmem:[%s4312_s30 + $0x180] sm:$0xff] }
  0x82   : > { %3809 = vmatprep.mubr.bf16.mxu0 %v476_v25  ;;  %1464 = vperm.xlu1 %3970, %v1262_v27   ;;  %v453_v25 = vld [vmem:[%s4312_s30 + $0x178] sm:$0xff]  ;;  %v455_v27 = vld [vmem:[%s4312_s30 + $0x188] sm:$0xff] }
  0x83   : > { %v489_v30 = vpack.c.bf16 %v453_v25, %v452_v24  ;;  %v490_v31 = vpack.c.bf16 %v455_v27, %v454_v26  ;;  %v3142_v27 = vld [vmem:[%s6663_s8 + $0x60] sm:$0xff] }
  0x85   : > { %1469 = vperm.xlu0 %3969, %v1263_v32   ;;  %v456_v32 = vld [vmem:[%s4312_s30 + $0x190] sm:$0xff] }
  0x86   : > { %1474 = vperm.xlu1 %3970, %v1264_v33   ;;  %v457_v33 = vld [vmem:[%s4312_s30 + $0x198] sm:$0xff] }
  0x89   : > { %3810 = vmatmul.mubr.bf16.gmra.mrb[20].mxu0 %v477_v34  ;;  %1479 = vperm.xlu0 %3969, %v1265_v36   ;;  %v458_v34 = vld [vmem:[%s4312_s30 + $0x1a0] sm:$0xff]  ;;  %v491_v36 = vpack.c.bf16 %v457_v33, %v456_v32 }
  0x8a   : > { %3813 = vmatprep.mubr.bf16.mxu0 %v478_v35  ;;  %1484 = vperm.xlu1 %3970, %v1266_v37   ;;  %v459_v35 = vld [vmem:[%s4312_s30 + $0x1a8] sm:$0xff] }
  0x8b   : > { %v492_v37 = vpack.c.bf16 %v459_v35, %v458_v34 }
  0x8d   : > { %1489 = vperm.xlu0 %3969, %v1267_v42   ;;  %v462_v42 = vld [vmem:[%s4312_s30 + $0x1c0] sm:$0xff] }
  0x8e   : > { %1494 = vperm.xlu1 %3970, %v1268_v43   ;;  %v463_v43 = vld [vmem:[%s4312_s30 + $0x1c8] sm:$0xff] }
  0x91   : > { %3814 = vmatmul.mubr.bf16.gmra.mrb[24].mxu0 %v479_v44  ;;  %1499 = vperm.xlu0 %3969, %v1269_v46   ;;  %v493_v44 = vpack.c.bf16 %v461_v40, %v460_v39  ;;  %v494_v46 = vpack.c.bf16 %v463_v43, %v462_v42 }
  0x92   : > { %3817 = vmatprep.mubr.bf16.mxu0 %v480_v45  ;;  %1504 = vperm.xlu1 %3970, %v1270_v47  }
  0x95   : > { %1509 = vperm.xlu0 %3969, %v1271_v52   ;;  %v495_v52 = vpack.c.bf16 %v465_v50, %v464_v49 }
  0x96   : > { %1514 = vperm.xlu1 %3970, %v1272_v53  }
  0x99   : > { %3818 = vmatmul.mubr.bf16.gmra.mrb[28].mxu0 %v481_v54  ;;  %1519 = vperm.xlu0 %3969, %v1273_v56  }
  0x9a   : > { %3821 = vmatprep.mubr.bf16.mxu0 %v482_v55  ;;  %1524 = vperm.xlu1 %3970, %v1274_v57  }
  0x9d   : > { %1529 = vperm.xlu0 %3969, %v1275_v62   ;;  %v3131_v62 = vld [vmem:[%s6663_s8 + $0x8] sm:$0xff] }
  0x9e   : > { %1534 = vperm.xlu1 %3970, %v1276_v63   ;;  %v3146_v63 = vpack.c.bf16 %v3131_v62, %v3130_v61 }
  0xa0   : > { %3849 = vmatprep.subr.bf16.mxu1 %v3146_v63 }
  0xa1   : > { %3822 = vmatmul.mubr.bf16.gmra.mrb[32].mxu0 %v483_v0  ;;  %1539 = vperm.xlu0 %3969, %v1277_v2   ;;  %v3132_v2 = vld [vmem:[%s6663_s8 + $0x10] sm:$0xff] }
  0xa2   : > { %3825 = vmatprep.mubr.bf16.mxu0 %v484_v1  ;;  %1544 = vperm.xlu1 %3970, %v1278_v3   ;;  %v3133_v3 = vld [vmem:[%s6663_s8 + $0x18] sm:$0xff] }
  0xa3   : > { %3850 = vmatpush3.bf16.msra.mxu1 %v3146_v63  ;;  %v3147_v4 = vpack.c.bf16 %v3133_v3, %v3132_v2 }
  0xa5   : > { %1549 = vperm.xlu0 %3969, %v1279_v8   ;;  %3851 = vmatprep.subr.bf16.mxu1 %v3147_v4  ;;  %v3135_v8 = vld [vmem:[%s6663_s8 + $0x28] sm:$0xff] }
  0xa6   : > { %1554 = vperm.xlu1 %3970, %v1280_v9   ;;  %v3148_v9 = vpack.c.bf16 %v3135_v8, %v3134_v7  ;;  %v3145_v7 = vld [vmem:[%s6663_s8 + $0x78] sm:$0xff] }
  0xa7   : > { %3852 = vmatpush3.bf16.msra.mxu1 %v3147_v4  ;;  %v3144_v4 = vld [vmem:[%s6663_s8 + $0x70] sm:$0xff] }
  0xa8   : > { %3853 = vmatprep.subr.bf16.mxu1 %v3148_v9 }
  0xa9   : > { %3826 = vmatmul.mubr.bf16.gmra.mrb[36].mxu0 %v485_v10  ;;  %1559 = vperm.xlu0 %3969, %v1281_v12   ;;  %v3136_v12 = vld [vmem:[%s6663_s8 + $0x30] sm:$0xff] }
  0xaa   : > { %3829 = vmatprep.mubr.bf16.mxu0 %v486_v11  ;;  %1564 = vperm.xlu1 %3970, %v1282_v13   ;;  %v3137_v13 = vld [vmem:[%s6663_s8 + $0x38] sm:$0xff] }
  0xab   : > { %3854 = vmatpush3.bf16.msra.mxu1 %v3148_v9  ;;  %v3149_v14 = vpack.c.bf16 %v3137_v13, %v3136_v12  ;;  %v3153_v9 = vpack.c.bf16 %v3145_v7, %v3144_v4 }
  0xad   : > { %1569 = vperm.xlu0 %3969, %v1283_v18   ;;  %3855 = vmatprep.subr.bf16.mxu1 %v3149_v14  ;;  %v3139_v18 = vld [vmem:[%s6663_s8 + $0x48] sm:$0xff] }
  0xae   : > { %1574 = vperm.xlu1 %3970, %v1284_v19   ;;  %v3150_v19 = vpack.c.bf16 %v3139_v18, %v3138_v17  ;;  %v4761_v17 = vld [vmem:[%s6658_s3] ss:$0 sm:$0xff] }
  0xaf   : > { %3856 = vmatpush3.bf16.msra.mxu1 %v3149_v14 }
  0xb0   : > { %3857 = vmatprep.subr.bf16.mxu1 %v3150_v19 }
  0xb1   : > { %3830 = vmatmul.mubr.bf16.gmra.mrb[40].mxu0 %v487_v20  ;;  %1289 = vperm.xlu0 %3969, %v1227_v22   ;;  %v3140_v22 = vld [vmem:[%s6663_s8 + $0x50] sm:$0xff] }
  0xb2   : > { %3833 = vmatprep.mubr.bf16.mxu0 %v488_v21  ;;  %1294 = vperm.xlu1 %3970, %v1228_v23   ;;  %v3141_v23 = vld [vmem:[%s6663_s8 + $0x58] sm:$0xff] }
  0xb3   : > { %3858 = vmatpush3.bf16.msra.mxu1 %v3150_v19  ;;  %v3151_v24 = vpack.c.bf16 %v3141_v23, %v3140_v22  ;;  %v4766_v19 = vld [vmem:[%s6659_s4] ss:$0 sm:$0xff] }
  0xb5   : > { %1579 = vperm.xlu0 %3969, %v1285_v28   ;;  %3859 = vmatprep.subr.bf16.mxu1 %v3151_v24  ;;  %v3143_v28 = vld [vmem:[%s6663_s8 + $0x68] sm:$0xff] }
  0xb6   : > { %1584 = vperm.xlu1 %3970, %v1286_v29   ;;  %v3152_v29 = vpack.c.bf16 %v3143_v28, %v3142_v27 }
  0xb7   : > { %3860 = vmatpush3.bf16.msra.mxu1 %v3151_v24 }
  0xb8   : > { %3861 = vmatprep.subr.bf16.mxu1 %v3152_v29 }
  0xb9   : > { %3834 = vmatmul.mubr.bf16.gmra.mrb[44].mxu0 %v489_v30 }
  0xba   : > { %3837 = vmatprep.mubr.bf16.mxu0 %v490_v31 }
  0xbb   : > { %3862 = vmatpush3.bf16.msra.mxu1 %v3152_v29 }
  0xbc   : > { %3863 = vmatprep.subr.bf16.mxu1 %v3153_v9 }
  0xbf   : > { %3864 = vmatpush3.bf16.msra.mxu1 %v3153_v9 }
  0xc0   : > { %v4600_v38 = vpop.permute.xlu0 %1299 }
  0xc1   : > { %3838 = vmatmul.mubr.bf16.gmra.mrb[48].mxu0 %v491_v36  ;;  %v4604_v41 = vpop.permute.xlu1 %1309 }
  0xc2   : > { %3841 = vmatprep.mubr.bf16.mxu0 %v492_v37 }
  0xc4   : > { %v4608_v45 = vpop.permute.xlu0 %1304 }
  0xc5   : > { %v4610_v47 = vpop.permute.xlu1 %1314 }
  0xc8   : > { %v4612_v48 = vpop.permute.xlu0 %1319 }
  0xc9   : > { %3842 = vmatmul.mubr.bf16.gmra.mrb[52].mxu0 %v493_v44  ;;  %v4616_v51 = vpop.permute.xlu1 %1324 }
  0xca   : > { %3845 = vmatprep.mubr.bf16.mxu0 %v494_v46 }
  0xcc   : > { %v4618_v53 = vpop.permute.xlu0 %1329 }
  0xcd   : > { %v4620_v54 = vpop.permute.xlu1 %1334 }
  0xd0   : > { %v4622_v55 = vpop.permute.xlu0 %1339 }
  0xd1   : > { %3846 = vmatmul.mubr.bf16.gmra.mrb[56].mxu0 %v495_v52  ;;  %v4624_v56 = vpop.permute.xlu1 %1344 }
  0xd4   : > { %v4626_v57 = vpop.permute.xlu0 %1349 }
  0xd5   : > { %v4628_v58 = vpop.permute.xlu1 %1354 }
  0xd8   : > { %v4630_v59 = vpop.permute.xlu0 %1359 }
  0xd9   : > { %v4632_v60 = vpop.permute.xlu1 %1364 }
  0xdc   : > { %v4640_v0 = vpop.permute.xlu0 %1369 }
  0xdd   : > { %v4642_v1 = vpop.permute.xlu1 %1374 }
  0xe0   : > { %v4650_v5 = vpop.permute.xlu0 %1379 }
  0xe1   : > { %v4652_v6 = vpop.permute.xlu1 %1384 }
  0xe4   : > { %v4660_v10 = vpop.permute.xlu0 %1389 }
  0xe5   : > { %v4662_v11 = vpop.permute.xlu1 %1394 }
  0xe8   : > { %v4670_v15 = vpop.permute.xlu0 %1399 }
  0xe9   : > { %v4672_v16 = vpop.permute.xlu1 %1404 }
  0xec   : > { %v4680_v20 = vpop.permute.xlu0 %1409 }
  0xed   : > { %v4682_v21 = vpop.permute.xlu1 %1414 }
  0xf0   : > { %v4690_v25 = vpop.permute.xlu0 %1419 }
  0xf1   : > { %v4692_v26 = vpop.permute.xlu1 %1424 }
  0xf4   : > { %v4700_v30 = vpop.permute.xlu0 %1429 }
  0xf5   : > { %v4702_v31 = vpop.permute.xlu1 %1434 }
  0xf8   : > { %v4704_v32 = vpop.permute.xlu0 %1439 }
  0xf9   : > { %v4706_v33 = vpop.permute.xlu1 %1444 }
  0xfc   : > { %v4708_v34 = vpop.permute.xlu0 %1449 }
  0xfd   : > { %v4710_v35 = vpop.permute.xlu1 %1454 }
 0x100   : > { %v4712_v36 = vpop.permute.xlu0 %1459 }
 0x101   : > { %v4714_v37 = vpop.permute.xlu1 %1464 }
 0x104   : > { %v4716_v39 = vpop.permute.xlu0 %1469 }
 0x105   : > { %v4718_v40 = vpop.permute.xlu1 %1474 }
 0x106   : > { %6680 = vst [vmem:[#allocation13_spill] sm:$0xff] %v4718_v40 }
 0x108   : > { %v4720_v42 = vpop.permute.xlu0 %1479 }
 0x109   : > { %v4722_v43 = vpop.permute.xlu1 %1484 }
 0x10c   : > { %v4724_v44 = vpop.permute.xlu0 %1489 }
 0x10d   : > { %6681 = vst [vmem:[#allocation14_spill] sm:$0xff] %v4724_v44  ;;  %v4726_v46 = vpop.permute.xlu1 %1494 }
 0x10e   : > { %6682 = vst [vmem:[#allocation15_spill] sm:$0xff] %v4726_v46 }
 0x110   : > { %v4728_v49 = vpop.permute.xlu0 %1499 }
 0x111   : > { %6683 = vst [vmem:[#allocation16_spill] sm:$0xff] %v4728_v49  ;;  %v4730_v50 = vpop.permute.xlu1 %1504 }
 0x112   : > { %6684 = vst [vmem:[#allocation17_spill] sm:$0xff] %v4730_v50 }
 0x114   : > { %v4732_v52 = vpop.permute.xlu0 %1509 }
 0x115   : > { %6685 = vst [vmem:[#allocation18_spill] sm:$0xff] %v4732_v52  ;;  %v4734_v61 = vpop.permute.xlu1 %1514 }
 0x116   : > { %6686 = vst [vmem:[#allocation19_spill] sm:$0xff] %v4734_v61 }
 0x118   : > { %v4736_v62 = vpop.permute.xlu0 %1519 }
 0x119   : > { %6687 = vst [vmem:[#allocation20_spill] sm:$0xff] %v4736_v62  ;;  %v4738_v63 = vpop.permute.xlu1 %1524 }
 0x11a   : > { %6688 = vst [vmem:[#allocation21_spill] sm:$0xff] %v4738_v63 }
 0x11c   : > { %v4740_v2 = vpop.permute.xlu0 %1529 }
 0x11d   : > { %6689 = vst [vmem:[#allocation22_spill] sm:$0xff] %v4740_v2  ;;  %v4742_v3 = vpop.permute.xlu1 %1534 }
 0x11e   : > { %6690 = vst [vmem:[#allocation23_spill] sm:$0xff] %v4742_v3 }
 0x120   : > { %v4750_v8 = vpop.permute.xlu0 %1539 }
 0x121   : > { %6691 = vst [vmem:[#allocation24_spill] sm:$0xff] %v4750_v8  ;;  %v4752_v12 = vpop.permute.xlu1 %1544 }
 0x122   : > { %6692 = vst [vmem:[#allocation25_spill] sm:$0xff] %v4752_v12 }
 0x124   : > { %v4754_v13 = vpop.permute.xlu0 %1549 }
 0x125   : > { %6693 = vst [vmem:[#allocation26_spill] sm:$0xff] %v4754_v13  ;;  %v4756_v14 = vpop.permute.xlu1 %1554 }
 0x126   : > { %6694 = vst [vmem:[#allocation27_spill] sm:$0xff] %v4756_v14 }
 0x128   : > { %v4769_v24 = vpop.permute.xlu0 %1559 }
 0x129   : > { %6695 = vst [vmem:[#allocation28_spill] sm:$0xff] %v4769_v24  ;;  %v4773_v7 = vpop.permute.xlu1 %1564 }
 0x12a   : > { %6696 = vst [vmem:[#allocation29_spill] sm:$0xff] %v4773_v7 }
 0x12c   : > { %v4776_v12 = vpop.permute.xlu0 %1569 }
 0x12d   : > { %6697 = vst [vmem:[#allocation30_spill] sm:$0xff] %v4776_v12  ;;  %v4779_v61 = vpop.permute.xlu1 %1574 }
 0x12e   : > { %6698 = vst [vmem:[#allocation31_spill] sm:$0xff] %v4779_v61 }
 0x130   : > { %v1290_v61 = vpop.permute.xlu0 %1289 }
 0x134   : > { %v3791_v18 = vpop.f32.mrb[0].mxu0 }
 0x135   : > { %v802_v22 = vmul.f32 %v3791_v18, %v4761_v17  ;;  %v554_v23 = vpop.f32.mrb[1].mxu0 }
 0x136   : > { %v3792_v27 = vpop.f32.mrb[2].mxu0 }
 0x137   : > { %v869_v28 = vadd.f32 %v4766_v19, %v802_v22  ;;  %v803_v29 = vmul.f32 %v3792_v27, %v4761_v17  ;;  %v557_v4 = vpop.f32.mrb[3].mxu0 }
 0x139   : > { %v929_v9 = vadd.f32 3.0, %v869_v28  ;;  %v870_v14 = vadd.f32 %v4766_v19, %v803_v29 }
 0x13b   : > { %v989_v13 = vmax.f32 %v929_v9, 0.0  ;;  %v930_v3 = vadd.f32 3.0, %v870_v14 }
 0x13c   : > { %v3795_v2 = vpop.f32.mrb[4].mxu0 }
 0x13d   : > { %v1049_v18 = vmin.f32 %v989_v13, 6.0  ;;  %v990_v23 = vmax.f32 %v930_v3, 0.0  ;;  %v806_v24 = vmul.f32 %v3795_v2, %v4761_v17  ;;  %v570_v8 = vpop.f32.mrb[5].mxu0 }
 0x13e   : > { %v804_v22 = vmul.f32 %v4761_v17, %v570_v8  ;;  %v3796_v27 = vpop.f32.mrb[6].mxu0 }
 0x13f   : > { %v1109_v4 = vmul.f32 %v1049_v18, %v869_v28  ;;  %v1050_v7 = vmin.f32 %v990_v23, 6.0  ;;  %v873_v63 = vadd.f32 %v4766_v19, %v806_v24  ;;  %v807_v29 = vmul.f32 %v3796_v27, %v4761_v17  ;;  %v573_v9 = vpop.f32.mrb[7].mxu0  ;;  %v1295_v27 = vpop.permute.xlu1 %1294 }
 0x140   : > { %v871_v12 = vadd.f32 %v4766_v19, %v804_v22  ;;  %v805_v13 = vmul.f32 %v4761_v17, %v573_v9 }
 0x141   : > { %v1169_v3 = vmul.f32 0.16666667, %v1109_v4  ;;  %v1110_v52 = vmul.f32 %v1050_v7, %v870_v14  ;;  %v933_v2 = vadd.f32 3.0, %v873_v63  ;;  %v874_v62 = vadd.f32 %v4766_v19, %v807_v29 }
 0x142   : > { %v931_v46 = vadd.f32 3.0, %v871_v12  ;;  %v872_v8 = vadd.f32 %v4766_v19, %v805_v13 }
 0x143   : > { %v1589_v28 = vmul.f32 %v4600_v38, %v1169_v3  ;;  %v1170_v18 = vmul.f32 0.16666667, %v1110_v52  ;;  %v993_v24 = vmax.f32 %v933_v2, 0.0  ;;  %v934_v23 = vadd.f32 3.0, %v874_v62 }
 0x144   : > { %v991_v50 = vmax.f32 %v931_v46, 0.0  ;;  %v932_v44 = vadd.f32 3.0, %v872_v8  ;;  %v3799_v22 = vpop.f32.mrb[8].mxu0 }
 0x145   : > { %1649 = vst [vmem:[#allocation2 + $0x10] sm:$0xff] %v1589_v28  ;;  %v4790_v4 = vmul.f32 %v4608_v45, %v1170_v18  ;;  %v1053_v14 = vmin.f32 %v993_v24, 6.0  ;;  %v994_v7 = vmax.f32 %v934_v23, 0.0  ;;  %v810_v61 = vmul.f32 %v3799_v22, %v4761_v17  ;;  %v586_v29 = vpop.f32.mrb[9].mxu0 }
 0x146   : > { %v1051_v9 = vmin.f32 %v991_v50, 6.0  ;;  %v992_v13 = vmax.f32 %v932_v44, 0.0  ;;  %v808_v38 = vmul.f32 %v4761_v17, %v586_v29  ;;  %v3800_v52 = vpop.f32.mrb[10].mxu0 }
 0x147   : > { %1650 = vst [vmem:[#allocation2 + $0x18] sm:$0xff] %v4790_v4  ;;  %v1113_v3 = vmul.f32 %v1053_v14, %v873_v63  ;;  %v1054_v46 = vmin.f32 %v994_v7, 6.0  ;;  %v877_v2 = vadd.f32 %v4766_v19, %v810_v61  ;;  %v811_v28 = vmul.f32 %v3800_v52, %v4761_v17  ;;  %v589_v45 = vpop.f32.mrb[11].mxu0 }
 0x148   : > { %v1111_v18 = vmul.f32 %v1051_v9, %v871_v12  ;;  %v1052_v24 = vmin.f32 %v992_v13, 6.0  ;;  %v875_v23 = vadd.f32 %v4766_v19, %v808_v38  ;;  %v809_v27 = vmul.f32 %v4761_v17, %v589_v45 }
 0x149   : > { %v1173_v50 = vmul.f32 0.16666667, %v1113_v3  ;;  %v1114_v44 = vmul.f32 %v1054_v46, %v874_v62  ;;  %v937_v22 = vadd.f32 3.0, %v877_v2  ;;  %v878_v29 = vadd.f32 %v4766_v19, %v811_v28 }
 0x14a   : > { %v1171_v49 = vmul.f32 0.16666667, %v1111_v18  ;;  %v1112_v40 = vmul.f32 %v1052_v24, %v872_v8  ;;  %v935_v63 = vadd.f32 3.0, %v875_v23  ;;  %v876_v14 = vadd.f32 %v4766_v19, %v809_v27 }
 0x14b   : > { %v4802_v7 = vmul.f32 %v4612_v48, %v1173_v50  ;;  %v1174_v61 = vmul.f32 0.16666667, %v1114_v44  ;;  %v997_v12 = vmax.f32 %v937_v22, 0.0  ;;  %v938_v9 = vadd.f32 3.0, %v878_v29 }
 0x14c   : > { %v4805_v13 = vmul.f32 %v4604_v41, %v1171_v49  ;;  %v1172_v38 = vmul.f32 0.16666667, %v1112_v40  ;;  %v995_v52 = vmax.f32 %v935_v63, 0.0  ;;  %v936_v62 = vadd.f32 3.0, %v876_v14  ;;  %v3803_v3 = vpop.f32.mrb[12].mxu0 }
 0x14d   : > { %1653 = vst [vmem:[#allocation2 + $0x30] sm:$0xff] %v4802_v7  ;;  %v4809_v8 = vmul.f32 %v4616_v51, %v1174_v61  ;;  %v1057_v46 = vmin.f32 %v997_v12, 6.0  ;;  %v998_v28 = vmax.f32 %v938_v9, 0.0  ;;  %v814_v48 = vmul.f32 %v3803_v3, %v4761_v17  ;;  %v602_v45 = vpop.f32.mrb[13].mxu0 }
 0x14e   : > { %1651 = vst [vmem:[#allocation2 + $0x20] sm:$0xff] %v4805_v13  ;;  %v4814_v18 = vmul.f32 %v4610_v47, %v1172_v38  ;;  %v1055_v41 = vmin.f32 %v995_v52, 6.0  ;;  %v996_v40 = vmax.f32 %v936_v62, 0.0  ;;  %v812_v49 = vmul.f32 %v4761_v17, %v602_v45  ;;  %v3804_v24 = vpop.f32.mrb[14].mxu0 }
 0x14f   : > { %1654 = vst [vmem:[#allocation2 + $0x38] sm:$0xff] %v4809_v8  ;;  %v1117_v27 = vmul.f32 %v1057_v46, %v877_v2  ;;  %v1058_v51 = vmin.f32 %v998_v28, 6.0  ;;  %v881_v50 = vadd.f32 %v4766_v19, %v814_v48  ;;  %v815_v44 = vmul.f32 %v3804_v24, %v4761_v17  ;;  %v605_v22 = vpop.f32.mrb[15].mxu0 }
 0x150   : > { %1652 = vst [vmem:[#allocation2 + $0x28] sm:$0xff] %v4814_v18  ;;  %v1115_v63 = vmul.f32 %v1055_v41, %v875_v23  ;;  %v1056_v61 = vmin.f32 %v996_v40, 6.0  ;;  %v879_v47 = vadd.f32 %v4766_v19, %v812_v49  ;;  %v813_v12 = vmul.f32 %v4761_v17, %v605_v22 }
 0x151   : > { %v1177_v9 = vmul.f32 0.16666667, %v1117_v27  ;;  %v1118_v38 = vmul.f32 %v1058_v51, %v878_v29  ;;  %v941_v52 = vadd.f32 3.0, %v881_v50  ;;  %v882_v62 = vadd.f32 %v4766_v19, %v815_v44 }
 0x152   : > { %v1175_v2 = vmul.f32 0.16666667, %v1115_v63  ;;  %v1116_v3 = vmul.f32 %v1056_v61, %v876_v14  ;;  %v939_v46 = vadd.f32 3.0, %v879_v47  ;;  %v880_v28 = vadd.f32 %v4766_v19, %v813_v12 }
 0x153   : > { %v4826_v48 = vmul.f32 %v4622_v55, %v1177_v9  ;;  %v1178_v45 = vmul.f32 0.16666667, %v1118_v38  ;;  %v1001_v23 = vmax.f32 %v941_v52, 0.0  ;;  %v942_v41 = vadd.f32 3.0, %v882_v62 }
 0x154   : > { %v4829_v40 = vmul.f32 %v4618_v53, %v1175_v2  ;;  %v1176_v49 = vmul.f32 0.16666667, %v1116_v3  ;;  %v999_v24 = vmax.f32 %v939_v46, 0.0  ;;  %v940_v29 = vadd.f32 3.0, %v880_v28  ;;  %v3807_v27 = vpop.f32.mrb[16].mxu0 }
 0x155   : > { %1657 = vst [vmem:[#allocation2 + $0x50] sm:$0xff] %v4826_v48  ;;  %v4833_v14 = vmul.f32 %v4624_v56, %v1178_v45  ;;  %v1061_v51 = vmin.f32 %v1001_v23, 6.0  ;;  %v1002_v44 = vmax.f32 %v942_v41, 0.0  ;;  %v818_v55 = vmul.f32 %v3807_v27, %v4761_v17  ;;  %v618_v22 = vpop.f32.mrb[17].mxu0 }
 0x156   : > { %1655 = vst [vmem:[#allocation2 + $0x40] sm:$0xff] %v4829_v40  ;;  %v4838_v63 = vmul.f32 %v4620_v54, %v1176_v49  ;;  %v1059_v53 = vmin.f32 %v999_v24, 6.0  ;;  %v1000_v61 = vmax.f32 %v940_v29, 0.0  ;;  %v816_v12 = vmul.f32 %v4761_v17, %v618_v22  ;;  %v3808_v9 = vpop.f32.mrb[18].mxu0 }
 0x157   : > { %1658 = vst [vmem:[#allocation2 + $0x58] sm:$0xff] %v4833_v14  ;;  %v1121_v38 = vmul.f32 %v1061_v51, %v881_v50  ;;  %v1062_v56 = vmin.f32 %v1002_v44, 6.0  ;;  %v885_v52 = vadd.f32 %v4766_v19, %v818_v55  ;;  %v819_v2 = vmul.f32 %v3808_v9, %v4761_v17  ;;  %v621_v3 = vpop.f32.mrb[19].mxu0 }
 0x158   : > { %1656 = vst [vmem:[#allocation2 + $0x48] sm:$0xff] %v4838_v63  ;;  %v1119_v46 = vmul.f32 %v1059_v53, %v879_v47  ;;  %v1060_v45 = vmin.f32 %v1000_v61, 6.0  ;;  %v883_v54 = vadd.f32 %v4766_v19, %v816_v12  ;;  %v817_v23 = vmul.f32 %v4761_v17, %v621_v3 }
 0x159   : > { %v1181_v41 = vmul.f32 0.16666667, %v1121_v38  ;;  %v1122_v49 = vmul.f32 %v1062_v56, %v882_v62  ;;  %v945_v24 = vadd.f32 3.0, %v885_v52  ;;  %v886_v29 = vadd.f32 %v4766_v19, %v819_v2 }
 0x15a   : > { %v1179_v50 = vmul.f32 0.16666667, %v1119_v46  ;;  %v1120_v27 = vmul.f32 %v1060_v45, %v880_v28  ;;  %v943_v51 = vadd.f32 3.0, %v883_v54  ;;  %v884_v44 = vadd.f32 %v4766_v19, %v817_v23 }
 0x15b   : > { %v4850_v55 = vmul.f32 %v4630_v59, %v1181_v41  ;;  %v1182_v22 = vmul.f32 0.16666667, %v1122_v49  ;;  %v1005_v47 = vmax.f32 %v945_v24, 0.0  ;;  %v946_v53 = vadd.f32 3.0, %v886_v29 }
 0x15c   : > { %v4853_v61 = vmul.f32 %v4626_v57, %v1179_v50  ;;  %v1180_v12 = vmul.f32 0.16666667, %v1120_v27  ;;  %v1003_v9 = vmax.f32 %v943_v51, 0.0  ;;  %v944_v62 = vadd.f32 3.0, %v884_v44  ;;  %v3811_v38 = vpop.f32.mrb[20].mxu0 }
 0x15d   : > { %1661 = vst [vmem:[#allocation2 + $0x70] sm:$0xff] %v4850_v55  ;;  %v1602_v28 = vmul.f32 %v4632_v60, %v1182_v22  ;;  %v1065_v56 = vmin.f32 %v1005_v47, 6.0  ;;  %v1006_v2 = vmax.f32 %v946_v53, 0.0  ;;  %v822_v3 = vmul.f32 %v3811_v38, %v4761_v17  ;;  %v634_v59 = vpop.f32.mrb[21].mxu0 }
 0x15e   : > { %1659 = vst [vmem:[#allocation2 + $0x60] sm:$0xff] %v4853_v61  ;;  %v4860_v46 = vmul.f32 %v4628_v58, %v1180_v12  ;;  %v1063_v57 = vmin.f32 %v1003_v9, 6.0  ;;  %v1004_v45 = vmax.f32 %v944_v62, 0.0  ;;  %v820_v23 = vmul.f32 %v4761_v17, %v634_v59  ;;  %v3812_v41 = vpop.f32.mrb[22].mxu0 }
 0x15f   : > { %1662 = vst [vmem:[#allocation2 + $0x78] sm:$0xff] %v1602_v28  ;;  %v1125_v49 = vmul.f32 %v1065_v56, %v885_v52  ;;  %v1066_v24 = vmin.f32 %v1006_v2, 6.0  ;;  %v889_v60 = vadd.f32 %v4766_v19, %v822_v3  ;;  %v823_v50 = vmul.f32 %v3812_v41, %v4761_v17  ;;  %v637_v27 = vpop.f32.mrb[23].mxu0 }
 0x160   : > { %1660 = vst [vmem:[#allocation2 + $0x68] sm:$0xff] %v4860_v46  ;;  %v1123_v51 = vmul.f32 %v1063_v57, %v883_v54  ;;  %v1064_v22 = vmin.f32 %v1004_v45, 6.0  ;;  %v887_v58 = vadd.f32 %v4766_v19, %v820_v23  ;;  %v821_v47 = vmul.f32 %v4761_v17, %v637_v27 }
 0x161   : > { %v1185_v53 = vmul.f32 0.16666667, %v1125_v49  ;;  %v1126_v12 = vmul.f32 %v1066_v24, %v886_v29  ;;  %v949_v9 = vadd.f32 3.0, %v889_v60  ;;  %v890_v62 = vadd.f32 %v4766_v19, %v823_v50 }
 0x162   : > { %v1183_v52 = vmul.f32 0.16666667, %v1123_v51  ;;  %v1124_v38 = vmul.f32 %v1064_v22, %v884_v44  ;;  %v947_v28 = vadd.f32 3.0, %v887_v58  ;;  %v888_v56 = vadd.f32 %v4766_v19, %v821_v47 }
 0x163   : > { %v1605_v2 = vmul.f32 %v4650_v5, %v1185_v53  ;;  %v1186_v3 = vmul.f32 0.16666667, %v1126_v12  ;;  %v1009_v59 = vmax.f32 %v949_v9, 0.0  ;;  %v950_v54 = vadd.f32 3.0, %v890_v62 }
 0x164   : > { %v1603_v57 = vmul.f32 %v4640_v0, %v1183_v52  ;;  %v1184_v45 = vmul.f32 0.16666667, %v1124_v38  ;;  %v1007_v23 = vmax.f32 %v947_v28, 0.0  ;;  %v948_v41 = vadd.f32 3.0, %v888_v56  ;;  %v3815_v49 = vpop.f32.mrb[24].mxu0 }
 0x165   : > { %1665 = vst [vmem:[#allocation2 + $0x90] sm:$0xff] %v1605_v2  ;;  %v1606_v29 = vmul.f32 %v4652_v6, %v1186_v3  ;;  %v1069_v24 = vmin.f32 %v1009_v59, 6.0  ;;  %v1010_v50 = vmax.f32 %v950_v54, 0.0  ;;  %v826_v44 = vmul.f32 %v3815_v49, %v4761_v17  ;;  %v650_v27 = vpop.f32.mrb[25].mxu0 }
 0x166   : > { %1663 = vst [vmem:[#allocation2 + $0x80] sm:$0xff] %v1603_v57  ;;  %v1604_v5 = vmul.f32 %v4642_v1, %v1184_v45  ;;  %v1067_v51 = vmin.f32 %v1007_v23, 6.0  ;;  %v1008_v22 = vmax.f32 %v948_v41, 0.0  ;;  %v824_v47 = vmul.f32 %v4761_v17, %v650_v27  ;;  %v3816_v0 = vpop.f32.mrb[26].mxu0 }
 0x167   : > { %1666 = vst [vmem:[#allocation2 + $0x98] sm:$0xff] %v1606_v29  ;;  %v1129_v53 = vmul.f32 %v1069_v24, %v889_v60  ;;  %v1070_v12 = vmin.f32 %v1010_v50, 6.0  ;;  %v893_v9 = vadd.f32 %v4766_v19, %v826_v44  ;;  %v827_v6 = vmul.f32 %v3816_v0, %v4761_v17  ;;  %v653_v52 = vpop.f32.mrb[27].mxu0 }
 0x168   : > { %1664 = vst [vmem:[#allocation2 + $0x88] sm:$0xff] %v1604_v5  ;;  %v1127_v38 = vmul.f32 %v1067_v51, %v887_v58  ;;  %v1068_v28 = vmin.f32 %v1008_v22, 6.0  ;;  %v891_v2 = vadd.f32 %v4766_v19, %v824_v47  ;;  %v825_v1 = vmul.f32 %v4761_v17, %v653_v52 }
 0x169   : > { %v1189_v3 = vmul.f32 0.16666667, %v1129_v53  ;;  %v1130_v59 = vmul.f32 %v1070_v12, %v890_v62  ;;  %v953_v54 = vadd.f32 3.0, %v893_v9  ;;  %v894_v57 = vadd.f32 %v4766_v19, %v827_v6 }
 0x16a   : > { %v1187_v45 = vmul.f32 0.16666667, %v1127_v38  ;;  %v1128_v60 = vmul.f32 %v1068_v28, %v888_v56  ;;  %v951_v23 = vadd.f32 3.0, %v891_v2  ;;  %v892_v41 = vadd.f32 %v4766_v19, %v825_v1 }
 0x16b   : > { %v1609_v49 = vmul.f32 %v4670_v15, %v1189_v3  ;;  %v1190_v29 = vmul.f32 0.16666667, %v1130_v59  ;;  %v1013_v24 = vmax.f32 %v953_v54, 0.0  ;;  %v954_v58 = vadd.f32 3.0, %v894_v57 }
 0x16c   : > { %v1607_v50 = vmul.f32 %v4660_v10, %v1187_v45  ;;  %v1188_v44 = vmul.f32 0.16666667, %v1128_v60  ;;  %v1011_v27 = vmax.f32 %v951_v23, 0.0  ;;  %v952_v5 = vadd.f32 3.0, %v892_v41  ;;  %v3819_v51 = vpop.f32.mrb[28].mxu0 }
 0x16d   : > { %1669 = vst [vmem:[#allocation2 + $0xb0] sm:$0xff] %v1609_v49  ;;  %v1610_v62 = vmul.f32 %v4672_v16, %v1190_v29  ;;  %v1073_v22 = vmin.f32 %v1013_v24, 6.0  ;;  %v1014_v47 = vmax.f32 %v954_v58, 0.0  ;;  %v830_v56 = vmul.f32 %v3819_v51, %v4761_v17  ;;  %v666_v0 = vpop.f32.mrb[29].mxu0 }
 0x16e   : > { %1667 = vst [vmem:[#allocation2 + $0xa0] sm:$0xff] %v1607_v50  ;;  %v1608_v15 = vmul.f32 %v4662_v11, %v1188_v44  ;;  %v1071_v53 = vmin.f32 %v1011_v27, 6.0  ;;  %v1012_v12 = vmax.f32 %v952_v5, 0.0  ;;  %v828_v6 = vmul.f32 %v4761_v17, %v666_v0  ;;  %v3820_v10 = vpop.f32.mrb[30].mxu0 }
 0x16f   : > { %1670 = vst [vmem:[#allocation2 + $0xb8] sm:$0xff] %v1610_v62  ;;  %v1133_v52 = vmul.f32 %v1073_v22, %v893_v9  ;;  %v1074_v38 = vmin.f32 %v1014_v47, 6.0  ;;  %v897_v28 = vadd.f32 %v4766_v19, %v830_v56  ;;  %v831_v16 = vmul.f32 %v3820_v10, %v4761_v17  ;;  %v669_v1 = vpop.f32.mrb[31].mxu0 }
 0x170   : > { %1668 = vst [vmem:[#allocation2 + $0xa8] sm:$0xff] %v1608_v15  ;;  %v1131_v3 = vmul.f32 %v1071_v53, %v891_v2  ;;  %v1072_v59 = vmin.f32 %v1012_v12, 6.0  ;;  %v895_v54 = vadd.f32 %v4766_v19, %v828_v6  ;;  %v829_v11 = vmul.f32 %v4761_v17, %v669_v1 }
 0x171   : > { %v1193_v45 = vmul.f32 0.16666667, %v1133_v52  ;;  %v1134_v60 = vmul.f32 %v1074_v38, %v894_v57  ;;  %v957_v23 = vadd.f32 3.0, %v897_v28  ;;  %v898_v49 = vadd.f32 %v4766_v19, %v831_v16 }
 0x172   : > { %v1191_v29 = vmul.f32 0.16666667, %v1131_v3  ;;  %v1132_v9 = vmul.f32 %v1072_v59, %v892_v41  ;;  %v955_v24 = vadd.f32 3.0, %v895_v54  ;;  %v896_v58 = vadd.f32 %v4766_v19, %v829_v11 }
 0x173   : > { %v1613_v50 = vmul.f32 %v4690_v25, %v1193_v45  ;;  %v1194_v44 = vmul.f32 0.16666667, %v1134_v60  ;;  %v1017_v27 = vmax.f32 %v957_v23, 0.0  ;;  %v958_v2 = vadd.f32 3.0, %v898_v49 }
 0x174   : > { %v1611_v5 = vmul.f32 %v4680_v20, %v1191_v29  ;;  %v1192_v51 = vmul.f32 0.16666667, %v1132_v9  ;;  %v1015_v62 = vmax.f32 %v955_v24, 0.0  ;;  %v956_v22 = vadd.f32 3.0, %v896_v58  ;;  %v3823_v47 = vpop.f32.mrb[32].mxu0 }
 0x175   : > { %1673 = vst [vmem:[#allocation2 + $0xd0] sm:$0xff] %v1613_v50  ;;  %v1614_v57 = vmul.f32 %v4692_v26, %v1194_v44  ;;  %v1077_v56 = vmin.f32 %v1017_v27, 6.0  ;;  %v1018_v0 = vmax.f32 %v958_v2, 0.0  ;;  %v834_v41 = vmul.f32 %v3823_v47, %v4761_v17  ;;  %v682_v15 = vpop.f32.mrb[33].mxu0  ;;  %v1707_v50 = vld [vmem:[#allocation2 + $0x17] sm:$0xff] }
 0x176   : > { %1671 = vst [vmem:[#allocation2 + $0xc0] sm:$0xff] %v1611_v5  ;;  %v1612_v25 = vmul.f32 %v4682_v21, %v1192_v51  ;;  %v1075_v53 = vmin.f32 %v1015_v62, 6.0  ;;  %v1016_v12 = vmax.f32 %v956_v22, 0.0  ;;  %v832_v6 = vmul.f32 %v4761_v17, %v682_v15  ;;  %v3824_v20 = vpop.f32.mrb[34].mxu0  ;;  %v4912_v51 = vld [vmem:[#allocation2 + $0x37] sm:$0xff]  ;;  %v4920_v15 = vld [vmem:[#allocation2 + $0x47] sm:$0xff] }
 0x177   : > { %1674 = vst [vmem:[#allocation2 + $0xd8] sm:$0xff] %v1614_v57  ;;  %v1137_v10 = vmul.f32 %v1077_v56, %v897_v28  ;;  %v1078_v52 = vmin.f32 %v1018_v0, 6.0  ;;  %v901_v38 = vadd.f32 %v4766_v19, %v834_v41  ;;  %v835_v26 = vmul.f32 %v3824_v20, %v4761_v17  ;;  %v685_v16 = vpop.f32.mrb[35].mxu0  ;;  %v4915_v57 = vld [vmem:[#allocation2 + $0x2f] sm:$0xff] }
 0x178   : > { %1672 = vst [vmem:[#allocation2 + $0xc8] sm:$0xff] %v1612_v25  ;;  %v1135_v1 = vmul.f32 %v1075_v53, %v895_v54  ;;  %v1076_v3 = vmin.f32 %v1016_v12, 6.0  ;;  %v899_v59 = vadd.f32 %v4766_v19, %v832_v6  ;;  %v833_v21 = vmul.f32 %v4761_v17, %v685_v16  ;;  %v4909_v54 = vld [vmem:[%s6660_s5] ss:$0 sm:$0xff]  ;;  %v4922_v25 = vld [vmem:[#allocation2 + $0x4f] sm:$0xff] }
 0x179   : > { %v1197_v11 = vmul.f32 0.16666667, %v1137_v10  ;;  %v1138_v45 = vmul.f32 %v1078_v52, %v898_v49  ;;  %v961_v60 = vadd.f32 3.0, %v901_v38  ;;  %v902_v23 = vadd.f32 %v4766_v19, %v835_v26  ;;  %v1708_v49 = vld [vmem:[#allocation2 + $0x1f] sm:$0xff] }
 0x17a   : > { %v1195_v29 = vmul.f32 0.16666667, %v1135_v1  ;;  %v1136_v28 = vmul.f32 %v1076_v3, %v896_v58  ;;  %v959_v9 = vadd.f32 3.0, %v899_v59  ;;  %v900_v24 = vadd.f32 %v4766_v19, %v833_v21 }
 0x17b   : > { %v1617_v44 = vmul.f32 %v4704_v32, %v1197_v11  ;;  %v1198_v27 = vmul.f32 0.16666667, %v1138_v45  ;;  %v1021_v2 = vmax.f32 %v961_v60, 0.0  ;;  %v962_v5 = vadd.f32 3.0, %v902_v23 }
 0x17c   : > { %v1615_v62 = vmul.f32 %v4700_v30, %v1195_v29  ;;  %v1196_v58 = vmul.f32 0.16666667, %v1136_v28  ;;  %v1019_v22 = vmax.f32 %v959_v9, 0.0  ;;  %v960_v47 = vadd.f32 3.0, %v900_v24  ;;  %v4917_v56 = vpop.f32.mrb[36].mxu0 }
 0x17d   : > { %1677 = vst [vmem:[#allocation2 + $0xf0] sm:$0xff] %v1617_v44  ;;  %v1618_v0 = vmul.f32 %v4706_v33, %v1198_v27  ;;  %v1081_v41 = vmin.f32 %v1021_v2, 6.0  ;;  %v1022_v32 = vmax.f32 %v962_v5, 0.0  ;;  %v1762_v53 = vmul.f32 %v4909_v54, %v1707_v50  ;;  %v4925_v12 = vpop.f32.mrb[37].mxu0  ;;  %v4932_v33 = vld [vmem:[%s6660_s5 + $0x1] ss:$0 sm:$0xff] }
 0x17e   : > { %1675 = vst [vmem:[#allocation2 + $0xe0] sm:$0xff] %v1615_v62  ;;  %v1616_v30 = vmul.f32 %v4702_v31, %v1196_v58  ;;  %v1079_v6 = vmin.f32 %v1019_v22, 6.0  ;;  %v1020_v20 = vmax.f32 %v960_v47, 0.0  ;;  %v1763_v10 = vmul.f32 %v4909_v54, %v1708_v49  ;;  %v4934_v52 = vpop.f32.mrb[38].mxu0  ;;  %v4957_v2 = vld [vmem:[%s6660_s5 + $0x2] ss:$0 sm:$0xff] }
 0x17f   : > { %1678 = vst [vmem:[#allocation2 + $0xf8] sm:$0xff] %v1618_v0  ;;  %v1141_v26 = vmul.f32 %v1081_v41, %v901_v38  ;;  %v1082_v16 = vmin.f32 %v1022_v32, 6.0  ;;  %v1765_v1 = vmul.f32 %v4909_v54, %v4915_v57  ;;  %v1766_v31 = vmul.f32 %v4909_v54, %v4912_v51  ;;  %v4940_v3 = vpop.f32.mrb[39].mxu0  ;;  %v1963_v49 = vld [vmem:[#allocation2 + $0x21] sm:$0xff]  ;;  %v1965_v62 = vld [vmem:[#allocation2 + $0x31] sm:$0xff]  ;;  %v1966_v41 = vld [vmem:[#allocation2 + $0x39] sm:$0xff] }
 0x180   : > { %1676 = vst [vmem:[#allocation2 + $0xe8] sm:$0xff] %v1616_v30  ;;  %v1139_v21 = vmul.f32 %v1079_v6, %v899_v59  ;;  %v1080_v11 = vmin.f32 %v1020_v20, 6.0  ;;  %v1768_v45 = vmul.f32 %v4909_v54, %v4920_v15  ;;  %v1769_v60 = vmul.f32 %v4909_v54, %v4922_v25  ;;  %v4965_v32 = vld [vmem:[#allocation2 + $0x49] sm:$0xff]  ;;  %v4967_v30 = vld [vmem:[#allocation2 + $0x51] sm:$0xff] }
 0x181   : > { %v1201_v29 = vmul.f32 0.16666667, %v1141_v26  ;;  %v1142_v38 = vmul.f32 %v1082_v16, %v902_v23  ;;  %v1866_v28 = vmul.f32 %v4932_v33, %v4790_v4  ;;  %v1867_v9 = vmul.f32 %v4932_v33, %v4805_v13 }
 0x182   : > { %v1199_v50 = vmul.f32 0.16666667, %v1139_v21  ;;  %v1140_v44 = vmul.f32 %v1080_v11, %v900_v24  ;;  %v1869_v59 = vmul.f32 %v4932_v33, %v4802_v7  ;;  %v1870_v27 = vmul.f32 %v4932_v33, %v4809_v8  ;;  %v1962_v24 = vld [vmem:[#allocation2 + $0x19] sm:$0xff] }
 0x183   : > { %v1621_v23 = vmul.f32 %v4712_v36, %v1201_v29  ;;  %v1202_v5 = vmul.f32 0.16666667, %v1142_v38  ;;  %v1872_v4 = vmul.f32 %v4932_v33, %v4838_v63  ;;  %v1873_v13 = vmul.f32 %v4932_v33, %v4826_v48 }
 0x184   : > { %v1619_v58 = vmul.f32 %v4708_v34, %v1199_v50  ;;  %v1200_v22 = vmul.f32 0.16666667, %v1140_v44  ;;  %v1914_v47 = vadd.f32 %v1866_v28, %v1762_v53  ;;  %v1915_v0 = vadd.f32 %v1867_v9, %v1763_v10  ;;  %v4969_v36 = vpop.f32.mrb[40].mxu0  ;;  %v4975_v34 = vld [vmem:[%s6660_s5 + $0x3] ss:$0 sm:$0xff] }
 0x185   : > { %1681 = vst [vmem:[#allocation2 + $0x110] sm:$0xff] %v1621_v23  ;;  %v1622_v6 = vmul.f32 %v4714_v37, %v1202_v5  ;;  %v1917_v20 = vadd.f32 %v1869_v59, %v1765_v1  ;;  %v1918_v26 = vadd.f32 %v1870_v27, %v1766_v31  ;;  %v1920_v16 = vadd.f32 %v1872_v4, %v1768_v45  ;;  %v4977_v53 = vpop.f32.mrb[41].mxu0  ;;  %v4984_v37 = vld [vmem:[#allocation2 + $0x5f] sm:$0xff]  ;;  %v4986_v1 = vld [vmem:[#allocation2 + $0x67] sm:$0xff] }
 0x186   : > { %1679 = vst [vmem:[#allocation2 + $0x100] sm:$0xff] %v1619_v58  ;;  %v1620_v10 = vmul.f32 %v4710_v35, %v1200_v22  ;;  %v1921_v21 = vadd.f32 %v1873_v13, %v1769_v60  ;;  %v2018_v11 = vmul.f32 %v4957_v2, %v1962_v24  ;;  %v2019_v29 = vmul.f32 %v4957_v2, %v1963_v49  ;;  %v4982_v38 = vpop.f32.mrb[42].mxu0  ;;  %v5003_v27 = vld [vmem:[%s6660_s5 + $0x4] ss:$0 sm:$0xff] }
 0x187   : > { %1682 = vst [vmem:[#allocation2 + $0x118] sm:$0xff] %v1622_v6  ;;  %v2021_v31 = vmul.f32 %v4957_v2, %v1965_v62  ;;  %v2022_v45 = vmul.f32 %v4957_v2, %v1966_v41  ;;  %v2024_v28 = vmul.f32 %v4957_v2, %v4965_v32  ;;  %v2025_v35 = vmul.f32 %v4957_v2, %v4967_v30  ;;  %v4994_v60 = vpop.f32.mrb[43].mxu0  ;;  %v5020_v6 = vld [vmem:[%s6660_s5 + $0x5] ss:$0 sm:$0xff] }
 0x188   : > { %6699 = vst [vmem:[#allocation32_spill] sm:$0xff] %v4994_v60  ;;  %1680 = vst [vmem:[#allocation2 + $0x108] sm:$0xff] %v1620_v10  ;;  %v2066_v9 = vadd.f32 %v2018_v11, %v1914_v47  ;;  %v2067_v50 = vadd.f32 %v2019_v29, %v1915_v0  ;;  %v2125_v44 = vmul.f32 %v4975_v34, %v4915_v57 }
 0x189   : > { %v2126_v59 = vmul.f32 %v4975_v34, %v4912_v51  ;;  %v2069_v23 = vadd.f32 %v2021_v31, %v1917_v20  ;;  %v2070_v5 = vadd.f32 %v2022_v45, %v1918_v26  ;;  %v2072_v4 = vadd.f32 %v2024_v28, %v1920_v16  ;;  %v5040_v45 = vld [vmem:[%s6660_s5 + $0x7] ss:$0 sm:$0xff] }
 0x18a   : > { %v2073_v13 = vadd.f32 %v2025_v35, %v1921_v21  ;;  %v2128_v24 = vmul.f32 %v4975_v34, %v4920_v15  ;;  %v2129_v49 = vmul.f32 %v4975_v34, %v4922_v25  ;;  %v2131_v57 = vmul.f32 %v4975_v34, %v4984_v37  ;;  %v5029_v21 = vld [vmem:[%s6660_s5 + $0x6] ss:$0 sm:$0xff] }
 0x18b   : > { %v2132_v51 = vmul.f32 %v4975_v34, %v4986_v1  ;;  %v2173_v58 = vadd.f32 %v2125_v44, %v2066_v9  ;;  %v2174_v22 = vadd.f32 %v2126_v59, %v2067_v50  ;;  %v2232_v47 = vmul.f32 %v5003_v27, %v4802_v7  ;;  %v5053_v59 = vld [vmem:[%s6660_s5 + $0x8] ss:$0 sm:$0xff] }
 0x18c   : > { %v2233_v0 = vmul.f32 %v5003_v27, %v4809_v8  ;;  %v2176_v20 = vadd.f32 %v2128_v24, %v2069_v23  ;;  %v2177_v26 = vadd.f32 %v2129_v49, %v2070_v5  ;;  %v5022_v16 = vadd.f32 %v2131_v57, %v2072_v4  ;;  %v5031_v7 = vpop.f32.mrb[44].mxu0 }
 0x18d   : > { %v5024_v10 = vadd.f32 %v2132_v51, %v2073_v13  ;;  %6702 = vst [vmem:[#allocation35_spill] sm:$0xff] %v5031_v7  ;;  %v2235_v8 = vmul.f32 %v5003_v27, %v4838_v63  ;;  %v2236_v11 = vmul.f32 %v5003_v27, %v4826_v48  ;;  %v2280_v29 = vadd.f32 %v2232_v47, %v2173_v58  ;;  %v5042_v28 = vpop.f32.mrb[45].mxu0  ;;  %v1709_v58 = vld [vmem:[#allocation2 + $0x27] sm:$0xff]  ;;  %v5069_v47 = vld [vmem:[#allocation2 + $0x57] sm:$0xff] }
 0x18e   : > { %6700 = vst [vmem:[#allocation33_spill] sm:$0xff] %v5022_v16  ;;  %v2281_v31 = vadd.f32 %v2233_v0, %v2174_v22  ;;  %6703 = vst [vmem:[#allocation36_spill] sm:$0xff] %v5042_v28  ;;  %v2339_v35 = vmul.f32 %v5020_v6, %v1965_v62  ;;  %v2340_v9 = vmul.f32 %v5020_v6, %v1966_v41  ;;  %v5055_v23 = vpop.f32.mrb[46].mxu0  ;;  %v5067_v22 = vld [vmem:[#allocation2 + $0x3f] sm:$0xff] }
 0x18f   : > { %6701 = vst [vmem:[#allocation34_spill] sm:$0xff] %v5024_v10  ;;  %v2342_v50 = vmul.f32 %v5020_v6, %v4965_v32  ;;  %v2343_v44 = vmul.f32 %v5020_v6, %v4967_v30  ;;  %6704 = vst [vmem:[#allocation37_spill] sm:$0xff] %v5055_v23  ;;  %v2283_v5 = vadd.f32 %v2235_v8, %v2176_v20  ;;  %v5061_v13 = vpop.f32.mrb[47].mxu0 }
 0x190   : > { %v2284_v4 = vadd.f32 %v2236_v11, %v2177_v26  ;;  %v2446_v62 = vmul.f32 %v5029_v21, %v4920_v15  ;;  %v2447_v41 = vmul.f32 %v5029_v21, %v4922_v25  ;;  %6705 = vst [vmem:[#allocation38_spill] sm:$0xff] %v5061_v13  ;;  %v2387_v24 = vadd.f32 %v2339_v35, %v2280_v29 }
 0x191   : > { %v2388_v49 = vadd.f32 %v2340_v9, %v2281_v31  ;;  %v2553_v57 = vmul.f32 %v5040_v45, %v4838_v63  ;;  %v2554_v51 = vmul.f32 %v5040_v45, %v4826_v48  ;;  %v5071_v0 = vadd.f32 %v2342_v50, %v2283_v5 }
 0x192   : > { %v5073_v15 = vadd.f32 %v2343_v44, %v2284_v4  ;;  %v2660_v25 = vmul.f32 %v5053_v59, %v4965_v32  ;;  %v2661_v20 = vmul.f32 %v5053_v59, %v4967_v30  ;;  %v2494_v26 = vadd.f32 %v2446_v62, %v2387_v24 }
 0x193   : > { %v2495_v63 = vadd.f32 %v2447_v41, %v2388_v49  ;;  %v838_v48 = vmul.f32 %v4917_v56, %v4761_v17  ;;  %v836_v8 = vmul.f32 %v4761_v17, %v4925_v12  ;;  %v839_v11 = vmul.f32 %v4934_v52, %v4761_v17  ;;  %v5099_v17 = vld [vmem:[%s6661_s6] ss:$0 sm:$0xff] }
 0x194   : > { %v1764_v29 = vmul.f32 %v4909_v54, %v1709_v58  ;;  %v5088_v31 = vmul.f32 %v4909_v54, %v5067_v22  ;;  %v1770_v32 = vmul.f32 %v4909_v54, %v5069_v47  ;;  %v2601_v30 = vadd.f32 %v2553_v57, %v2494_v26  ;;  %v5094_v50 = vpop.f32.mrb[48].mxu0  ;;  %v1964_v57 = vld [vmem:[#allocation2 + $0x29] sm:$0xff] }
 0x195   : > { %v2602_v35 = vadd.f32 %v2554_v51, %v2495_v63  ;;  %v905_v9 = vadd.f32 %v4766_v19, %v838_v48  ;;  %v903_v56 = vadd.f32 %v4766_v19, %v836_v8  ;;  %6706 = vst [vmem:[#allocation39_spill] sm:$0xff] %v5094_v50  ;;  %v906_v12 = vadd.f32 %v4766_v19, %v839_v11  ;;  %v5110_v4 = vpop.f32.mrb[49].mxu0  ;;  %v5117_v19 = vld [vmem:[%s6662_s7] ss:$0 sm:$0xff]  ;;  %v1967_v11 = vld [vmem:[#allocation2 + $0x41] sm:$0xff] }
 0x196   : > { %v1771_v52 = vmul.f32 %v4909_v54, %v4984_v37  ;;  %v1868_v44 = vmul.f32 %v4932_v33, %v4814_v18  ;;  %v5108_v5 = vmul.f32 %v4932_v33, %v4829_v40  ;;  %6707 = vst [vmem:[#allocation40_spill] sm:$0xff] %v5110_v4  ;;  %v2708_v62 = vadd.f32 %v2660_v25, %v2601_v30  ;;  %v5112_v51 = vpop.f32.mrb[50].mxu0  ;;  %v1970_v30 = vld [vmem:[#allocation2 + $0x59] sm:$0xff] }
 0x197   : > { %v2709_v41 = vadd.f32 %v2661_v20, %v2602_v35  ;;  %v965_v24 = vadd.f32 3.0, %v905_v9  ;;  %v963_v49 = vadd.f32 3.0, %v903_v56  ;;  %6708 = vst [vmem:[#allocation41_spill] sm:$0xff] %v5112_v51  ;;  %v966_v58 = vadd.f32 3.0, %v906_v12  ;;  %v1971_v35 = vld [vmem:[#allocation2 + $0x61] sm:$0xff] }
 0x198   : > { %v1874_v18 = vmul.f32 %v4932_v33, %v4833_v14  ;;  %v1875_v26 = vmul.f32 %v4932_v33, %v4853_v61  ;;  %v1916_v63 = vadd.f32 %v1868_v44, %v1764_v29  ;;  %v2763_v25 = vmul.f32 %v5099_v17, %v2708_v62 }
 0x199   : > { %v2764_v20 = vmul.f32 %v5099_v17, %v2709_v41  ;;  %v1025_v48 = vmax.f32 %v965_v24, 0.0  ;;  %v1023_v8 = vmax.f32 %v963_v49, 0.0  ;;  %v1026_v51 = vmax.f32 %v966_v58, 0.0 }
 0x19a   : > { %v1922_v4 = vadd.f32 %v1874_v18, %v1770_v32  ;;  %v1923_v50 = vadd.f32 %v1875_v26, %v1771_v52  ;;  %v2020_v13 = vmul.f32 %v4957_v2, %v1964_v57  ;;  %v2818_v23 = vadd.f32 %v5117_v19, %v2763_v25 }
 0x19b   : > { %v2819_v28 = vadd.f32 %v5117_v19, %v2764_v20  ;;  %v1085_v7 = vmin.f32 %v1025_v48, 6.0  ;;  %v1083_v29 = vmin.f32 %v1023_v8, 6.0  ;;  %v1086_v44 = vmin.f32 %v1026_v51, 6.0 }
 0x19c   : > { %v5129_v62 = vmul.f32 %v4957_v2, %v1967_v11  ;;  %v2026_v41 = vmul.f32 %v4957_v2, %v1970_v30  ;;  %v2027_v24 = vmul.f32 %v4957_v2, %v1971_v35  ;;  %v2866_v49 = vadd.f32 3.0, %v2818_v23 }
 0x19d   : > { %v2867_v58 = vadd.f32 3.0, %v2819_v28  ;;  %v1145_v32 = vmul.f32 %v1085_v7, %v905_v9  ;;  %v1143_v52 = vmul.f32 %v1083_v29, %v903_v56  ;;  %v1146_v18 = vmul.f32 %v1086_v44, %v906_v12 }
 0x19e   : > { %v2068_v57 = vadd.f32 %v2020_v13, %v1916_v63  ;;  %v5133_v26 = vadd.f32 %v2026_v41, %v1922_v4  ;;  %v5135_v25 = vadd.f32 %v2027_v24, %v1923_v50  ;;  %v2914_v20 = vmax.f32 %v2866_v49, 0.0  ;;  %v5145_v13 = vpop.f32.mrb[51].mxu0 }
 0x19f   : > { %v2915_v48 = vmax.f32 %v2867_v58, 0.0  ;;  %v1205_v51 = vmul.f32 0.16666667, %v1145_v32  ;;  %v1203_v8 = vmul.f32 0.16666667, %v1143_v52  ;;  %v2127_v10 = vmul.f32 %v4975_v34, %v5067_v22 }
 0x1a0   : > { %v1206_v60 = vmul.f32 0.16666667, %v1146_v18  ;;  %v5141_v16 = vmul.f32 %v4975_v34, %v5069_v47  ;;  %v2234_v7 = vmul.f32 %v5003_v27, %v4829_v40  ;;  %v2962_v9 = vmin.f32 %v2914_v20, 6.0 }
 0x1a1   : > { %v2963_v56 = vmin.f32 %v2915_v48, 6.0  ;;  %v1625_v50 = vmul.f32 %v4720_v42, %v1205_v51  ;;  %v1623_v12 = vmul.f32 %v4716_v39, %v1203_v8  ;;  %v2175_v63 = vadd.f32 %v2127_v10, %v2068_v57  ;;  %v1973_v57 = vld [vmem:[#allocation2 + $0x71] sm:$0xff]  ;;  %v5190_v8 = vpop.f32.mrb[52].mxu0 }
 0x1a2   : > { %v1626_v4 = vmul.f32 %v4722_v43, %v1206_v60  ;;  %v5152_v22 = vmul.f32 %v5003_v27, %v4833_v14  ;;  %v5156_v29 = vmul.f32 %v5003_v27, %v4853_v61  ;;  %v3010_v40 = vmul.f32 %v2962_v9, %v2818_v23  ;;  %v1718_v23 = vld [vmem:[#allocation2 + $0x6f] sm:$0xff] }
 0x1a3   : > { %v3011_v44 = vmul.f32 %v2963_v56, %v2819_v28  ;;  %1685 = vst [vmem:[#allocation2 + $0x130] sm:$0xff] %v1625_v50  ;;  %1683 = vst [vmem:[#allocation2 + $0x120] sm:$0xff] %v1623_v12  ;;  %v2341_v41 = vmul.f32 %v5020_v6, %v1967_v11  ;;  %v5160_v42 = vmul.f32 %v5020_v6, %v1970_v30  ;;  %v5202_v12 = vpop.f32.mrb[53].mxu0 }
 0x1a4   : > { %1686 = vst [vmem:[#allocation2 + $0x138] sm:$0xff] %v1626_v4  ;;  %v2282_v39 = vadd.f32 %v2234_v7, %v2175_v63  ;;  %v5163_v43 = vmul.f32 %v5020_v6, %v1971_v35  ;;  %v2448_v60 = vmul.f32 %v5029_v21, %v5069_v47  ;;  %v2449_v10 = vmul.f32 %v5029_v21, %v4984_v37  ;;  %v1972_v47 = vld [vmem:[#allocation2 + $0x69] sm:$0xff]  ;;  %v5179_v37 = vld [vmem:[%s6658_s3] ss:$0 sm:$0xff] }
 0x1a5   : > { %v3058_v28 = vmul.f32 0.16666667, %v3010_v40  ;;  %v3059_v24 = vmul.f32 0.16666667, %v3011_v44  ;;  %v2555_v11 = vmul.f32 %v5040_v45, %v4833_v14  ;;  %v2556_v49 = vmul.f32 %v5040_v45, %v4853_v61 }
 0x1a6   : > { %v2389_v58 = vadd.f32 %v2341_v41, %v2282_v39  ;;  %v2497_v32 = vadd.f32 %v2449_v10, %v5071_v0  ;;  %v2662_v52 = vmul.f32 %v5053_v59, %v1970_v30  ;;  %v2663_v18 = vmul.f32 %v5053_v59, %v1971_v35  ;;  %v5204_v41 = vpop.f32.mrb[54].mxu0 }
 0x1a7   : > { %v3106_v20 = vpack.c.bf16 %v3059_v24, %v3058_v28  ;;  %v837_v14 = vmul.f32 %v5179_v37, %v4940_v3  ;;  %v1772_v61 = vmul.f32 %v4909_v54, %v4986_v1  ;;  %v1773_v0 = vmul.f32 %v4909_v54, %v1718_v23  ;;  %v5195_v3 = vld [vmem:[%s6659_s4] ss:$0 sm:$0xff]  ;;  %6709 = vst [vmem:[#allocation42_spill] sm:$0xff] %v5204_v41 }
 0x1a8   : > { %v2496_v48 = vadd.f32 %v2448_v60, %v2389_v58  ;;  %v2604_v30 = vadd.f32 %v2556_v49, %v2497_v32  ;;  %v1876_v35 = vmul.f32 %v4932_v33, %v4860_v46  ;;  %v1877_v51 = vmul.f32 %v4932_v33, %v4850_v55 }
 0x1a9   : > { %3865 = vmatprep.mubr.bf16.mxu1 %v3106_v20  ;;  %v904_v7 = vadd.f32 %v5195_v3, %v837_v14  ;;  %v1919_v9 = vadd.f32 %v5108_v5, %v5088_v31  ;;  %v2028_v56 = vmul.f32 %v4957_v2, %v1972_v47  ;;  %v2029_v50 = vmul.f32 %v4957_v2, %v1973_v57 }
 0x1aa   : > { %v2603_v4 = vadd.f32 %v2555_v11, %v2496_v48  ;;  %v2711_v63 = vadd.f32 %v2663_v18, %v2604_v30  ;;  %v1924_v40 = vadd.f32 %v1876_v35, %v1772_v61  ;;  %v1925_v44 = vadd.f32 %v1877_v51, %v1773_v0 }
 0x1ab   : > { %v964_v39 = vadd.f32 3.0, %v904_v7  ;;  %v2071_v60 = vadd.f32 %v5129_v62, %v1919_v9  ;;  %v5208_v10 = vmul.f32 %v4975_v34, %v1718_v23  ;;  %v5212_v31 = vmul.f32 %v5003_v27, %v4860_v46 }
 0x1ac   : > { %v2710_v5 = vadd.f32 %v2662_v52, %v2603_v4  ;;  %v2766_v28 = vmul.f32 %v5099_v17, %v2711_v63  ;;  %v5215_v24 = vadd.f32 %v2028_v56, %v1924_v40  ;;  %v5217_v11 = vadd.f32 %v2029_v50, %v1925_v44 }
 0x1ad   : > { %v1024_v49 = vmax.f32 %v964_v39, 0.0  ;;  %v2178_v58 = vadd.f32 %v5141_v16, %v2071_v60  ;;  %v5222_v62 = vmul.f32 %v5003_v27, %v4850_v55  ;;  %v5225_v32 = vmul.f32 %v5020_v6, %v1972_v47  ;;  %v6710_v60 = vld [vmem:[#allocation13_spill] sm:$0xff] }
 0x1ae   : > { %v2765_v18 = vmul.f32 %v5099_v17, %v2710_v5  ;;  %v2821_v52 = vadd.f32 %v5117_v19, %v2766_v28  ;;  %v5230_v20 = vmul.f32 %v5020_v6, %v1973_v57  ;;  %v2450_v14 = vmul.f32 %v5029_v21, %v4986_v1 }
 0x1af   : > { %v1084_v61 = vmin.f32 %v1024_v49, 6.0  ;;  %v2285_v16 = vadd.f32 %v5152_v22, %v2178_v58  ;;  %v2451_v0 = vmul.f32 %v5029_v21, %v1718_v23  ;;  %v2557_v48 = vmul.f32 %v5040_v45, %v4860_v46 }
 0x1b0   : > { %v2820_v30 = vadd.f32 %v5117_v19, %v2765_v18  ;;  %v2869_v35 = vadd.f32 3.0, %v2821_v52  ;;  %v2498_v51 = vadd.f32 %v2450_v14, %v5073_v15  ;;  %v2558_v9 = vmul.f32 %v5040_v45, %v4850_v55 }
 0x1b1   : > { %v1144_v56 = vmul.f32 %v1084_v61, %v904_v7  ;;  %v2392_v50 = vadd.f32 %v5160_v42, %v2285_v16  ;;  %v2664_v1 = vmul.f32 %v5053_v59, %v1972_v47  ;;  %v2665_v22 = vmul.f32 %v5053_v59, %v1973_v57  ;;  %v5252_v57 = vld [vmem:[#allocation2 + $0x77] sm:$0xff] }
 0x1b2   : > { %v2868_v4 = vadd.f32 3.0, %v2820_v30  ;;  %v2917_v23 = vmax.f32 %v2869_v35, 0.0  ;;  %v2605_v63 = vadd.f32 %v2557_v48, %v2498_v51  ;;  %v842_v46 = vmul.f32 %v5179_v37, %v4969_v36  ;;  %v1822_v35 = vld [vmem:[#allocation2 + $0x78] sm:$0xff] }
 0x1b3   : > { %v1204_v40 = vmul.f32 0.16666667, %v1144_v56  ;;  %v2499_v44 = vadd.f32 %v2451_v0, %v2392_v50  ;;  %v840_v15 = vmul.f32 %v5179_v37, %v4977_v53  ;;  %v843_v55 = vmul.f32 %v5179_v37, %v4982_v38  ;;  %v5258_v38 = vld [vmem:[#allocation2 + $0x7f] sm:$0xff] }
 0x1b4   : > { %v2916_v7 = vmax.f32 %v2868_v4, 0.0  ;;  %v2965_v42 = vmin.f32 %v2917_v23, 6.0  ;;  %v2712_v39 = vadd.f32 %v2664_v1, %v2605_v63  ;;  %v909_v47 = vadd.f32 %v5195_v3, %v842_v46  ;;  %v1823_v1 = vld [vmem:[#allocation2 + $0x80] sm:$0xff] }
 0x1b5   : > { %v1624_v5 = vmul.f32 %v6710_v60, %v1204_v40  ;;  %v2606_v28 = vadd.f32 %v2558_v9, %v2499_v44  ;;  %v907_v36 = vadd.f32 %v5195_v3, %v840_v15  ;;  %v910_v49 = vadd.f32 %v5195_v3, %v843_v55 }
 0x1b6   : > { %v2964_v58 = vmin.f32 %v2916_v7, 6.0  ;;  %v3013_v18 = vmul.f32 %v2965_v42, %v2821_v52  ;;  %v2767_v53 = vmul.f32 %v5099_v17, %v2712_v39  ;;  %v969_v14 = vadd.f32 3.0, %v909_v47  ;;  %v1974_v42 = vld [vmem:[#allocation2 + $0x79] sm:$0xff]  ;;  %v1975_v39 = vld [vmem:[#allocation2 + $0x81] sm:$0xff] }
 0x1b7   : > { %1684 = vst [vmem:[#allocation2 + $0x128] sm:$0xff] %v1624_v5  ;;  %v2713_v61 = vadd.f32 %v2665_v22, %v2606_v28  ;;  %v967_v16 = vadd.f32 3.0, %v907_v36  ;;  %v970_v0 = vadd.f32 3.0, %v910_v49  ;;  %v1774_v48 = vmul.f32 %v4909_v54, %v5252_v57 }
 0x1b8   : > { %v3012_v51 = vmul.f32 %v2964_v58, %v2820_v30  ;;  %v3061_v9 = vmul.f32 0.16666667, %v3013_v18  ;;  %v2822_v56 = vadd.f32 %v5117_v19, %v2767_v53  ;;  %v1029_v50 = vmax.f32 %v969_v14, 0.0 }
 0x1b9   : > { %v2768_v52 = vmul.f32 %v5099_v17, %v2713_v61  ;;  %v1027_v4 = vmax.f32 %v967_v16, 0.0  ;;  %v1030_v23 = vmax.f32 %v970_v0, 0.0  ;;  %v1775_v63 = vmul.f32 %v4909_v54, %v5258_v38 }
 0x1ba   : > { %v3060_v22 = vmul.f32 0.16666667, %v3012_v51  ;;  %v2870_v46 = vadd.f32 3.0, %v2822_v56  ;;  %v1089_v40 = vmin.f32 %v1029_v50, 6.0  ;;  %v1878_v44 = vmul.f32 %v4932_v33, %v1822_v35 }
 0x1bb   : > { %v2823_v15 = vadd.f32 %v5117_v19, %v2768_v52  ;;  %v1087_v30 = vmin.f32 %v1027_v4, 6.0  ;;  %v1090_v55 = vmin.f32 %v1030_v23, 6.0  ;;  %v1879_v7 = vmul.f32 %v4932_v33, %v1823_v1 }
 0x1bc   : > { %v3107_v60 = vpack.c.bf16 %v3061_v9, %v3060_v22  ;;  %v2918_v5 = vmax.f32 %v2870_v46, 0.0  ;;  %v1149_v28 = vmul.f32 %v1089_v40, %v909_v47  ;;  %v1926_v58 = vadd.f32 %v1878_v44, %v1774_v48  ;;  %v5273_v22 = vpop.f32.mrb[55].mxu0  ;;  %v6712_v48 = vld [vmem:[#allocation16_spill] sm:$0xff]  ;;  %v6713_v40 = vld [vmem:[#allocation14_spill] sm:$0xff] }
 0x1bd   : > { %v2871_v18 = vadd.f32 3.0, %v2823_v15  ;;  %v1147_v53 = vmul.f32 %v1087_v30, %v907_v36  ;;  %v1150_v14 = vmul.f32 %v1090_v55, %v910_v49  ;;  %v1927_v61 = vadd.f32 %v1879_v7, %v1775_v63  ;;  %6711 = vst [vmem:[#allocation13_spill] sm:$0xff] %v5273_v22  ;;  %v6714_v30 = vld [vmem:[#allocation17_spill] sm:$0xff] }
 0x1be   : > { %3866 = vmatmul.mubr.bf16.vlgmr.msra.gmra.mrb[0].mxu1 %v3107_v60  ;;  %v2966_v16 = vmin.f32 %v2918_v5, 6.0  ;;  %v1209_v0 = vmul.f32 0.16666667, %v1149_v28  ;;  %v2030_v51 = vmul.f32 %v4957_v2, %v1974_v42  ;;  %v2031_v50 = vmul.f32 %v4957_v2, %v1975_v39  ;;  %v6715_v28 = vld [vmem:[#allocation33_spill] sm:$0xff] }
 0x1bf   : > { %v2919_v52 = vmax.f32 %v2871_v18, 0.0  ;;  %v1207_v4 = vmul.f32 0.16666667, %v1147_v53  ;;  %v1210_v23 = vmul.f32 0.16666667, %v1150_v14  ;;  %v2134_v9 = vmul.f32 %v4975_v34, %v5252_v57  ;;  %v6716_v53 = vld [vmem:[#allocation34_spill] sm:$0xff] }
 0x1c0   : > { %v3014_v47 = vmul.f32 %v2966_v16, %v2822_v56  ;;  %v1629_v36 = vmul.f32 %v6712_v48, %v1209_v0  ;;  %v5276_v49 = vadd.f32 %v2030_v51, %v1926_v58  ;;  %v5278_v63 = vadd.f32 %v2031_v50, %v1927_v61  ;;  %v1721_v0 = vld [vmem:[#allocation2 + $0x87] sm:$0xff] }
 0x1c1   : > { %v2967_v46 = vmin.f32 %v2919_v52, 6.0  ;;  %v1627_v44 = vmul.f32 %v6713_v40, %v1207_v4  ;;  %v1630_v55 = vmul.f32 %v6714_v30, %v1210_v23  ;;  %v5284_v7 = vmul.f32 %v4975_v34, %v5258_v38  ;;  %v1722_v52 = vld [vmem:[#allocation2 + $0x8f] sm:$0xff] }
 0x1c2   : > { %v3062_v60 = vmul.f32 0.16666667, %v3014_v47  ;;  %1689 = vst [vmem:[#allocation2 + $0x150] sm:$0xff] %v1629_v36  ;;  %v2241_v5 = vmul.f32 %v5003_v27, %v1822_v35  ;;  %v5288_v56 = vmul.f32 %v5003_v27, %v1823_v1  ;;  %v2286_v58 = vadd.f32 %v5156_v29, %v6715_v28  ;;  %v1824_v4 = vld [vmem:[#allocation2 + $0x88] sm:$0xff]  ;;  %v1825_v36 = vld [vmem:[#allocation2 + $0x90] sm:$0xff] }
 0x1c3   : > { %v3015_v18 = vmul.f32 %v2967_v46, %v2823_v15  ;;  %1687 = vst [vmem:[#allocation2 + $0x140] sm:$0xff] %v1627_v44  ;;  %1690 = vst [vmem:[#allocation2 + $0x158] sm:$0xff] %v1630_v55  ;;  %v2287_v14 = vadd.f32 %v5212_v31, %v6716_v53  ;;  %v2348_v61 = vmul.f32 %v5020_v6, %v1974_v42  ;;  %v1976_v46 = vld [vmem:[#allocation2 + $0x89] sm:$0xff] }
 0x1c4   : > { %v5296_v16 = vmul.f32 %v5020_v6, %v1975_v39  ;;  %v2393_v51 = vadd.f32 %v5163_v43, %v2286_v58  ;;  %v2452_v50 = vmul.f32 %v5029_v21, %v5252_v57  ;;  %v2453_v29 = vmul.f32 %v5029_v21, %v5258_v38  ;;  %v6717_v57 = vld [vmem:[#allocation32_spill] sm:$0xff] }
 0x1c5   : > { %v2559_v15 = vmul.f32 %v5040_v45, %v1822_v35  ;;  %v3063_v23 = vmul.f32 0.16666667, %v3015_v18  ;;  %v2394_v31 = vadd.f32 %v5225_v32, %v2287_v14  ;;  %v2560_v47 = vmul.f32 %v5040_v45, %v1823_v1  ;;  %v1977_v35 = vld [vmem:[#allocation2 + $0x91] sm:$0xff] }
 0x1c6   : > { %v2666_v48 = vmul.f32 %v5053_v59, %v1974_v42  ;;  %v2500_v43 = vadd.f32 %v2452_v50, %v2393_v51  ;;  %v2667_v40 = vmul.f32 %v5053_v59, %v1975_v39  ;;  %v841_v44 = vmul.f32 %v5179_v37, %v6717_v57 }
 0x1c7   : > { %v1776_v38 = vmul.f32 %v4909_v54, %v1721_v0  ;;  %v3108_v30 = vpack.c.bf16 %v3063_v23, %v3062_v60  ;;  %v2501_v55 = vadd.f32 %v2453_v29, %v2394_v31  ;;  %v1777_v28 = vmul.f32 %v4909_v54, %v1722_v52  ;;  %v3847_v60 = vpop.f32.mrb[56].mxu0 }
 0x1c8   : > { %v1880_v32 = vmul.f32 %v4932_v33, %v1824_v4  ;;  %v2607_v1 = vadd.f32 %v2559_v15, %v2500_v43  ;;  %v908_v42 = vadd.f32 %v5195_v3, %v841_v44  ;;  %v1881_v58 = vmul.f32 %v4932_v33, %v1825_v36  ;;  %v5323_v31 = vpop.f32.mrb[57].mxu0 }
 0x1c9   : > { %v2032_v18 = vmul.f32 %v4957_v2, %v1976_v46  ;;  %3869 = vmatprep.mubr.bf16.mxu1 %v3108_v30  ;;  %v2608_v39 = vadd.f32 %v2560_v47, %v2501_v55  ;;  %v2033_v14 = vmul.f32 %v4957_v2, %v1977_v35  ;;  %v5318_v51 = vmul.f32 %v4975_v34, %v1721_v0 }
 0x1ca   : > { %v1928_v53 = vadd.f32 %v1880_v32, %v1776_v38  ;;  %v2714_v50 = vadd.f32 %v2666_v48, %v2607_v1  ;;  %v968_v29 = vadd.f32 3.0, %v908_v42  ;;  %v1929_v23 = vadd.f32 %v1881_v58, %v1777_v28  ;;  %6718 = vst [vmem:[#allocation16_spill] sm:$0xff] %v5323_v31  ;;  %v3848_v38 = vpop.f32.mrb[58].mxu0 }
 0x1cb   : > { %v5321_v15 = vmul.f32 %v4975_v34, %v1722_v52  ;;  %v2715_v43 = vadd.f32 %v2667_v40, %v2608_v39  ;;  %v2181_v47 = vadd.f32 %v5208_v10, %v5133_v26  ;;  %v2182_v44 = vadd.f32 %v2134_v9, %v5135_v25 }
 0x1cc   : > { %v5325_v57 = vadd.f32 %v2032_v18, %v1928_v53  ;;  %v2769_v30 = vmul.f32 %v5099_v17, %v2714_v50  ;;  %v1028_v55 = vmax.f32 %v968_v29, 0.0  ;;  %v5331_v48 = vadd.f32 %v2033_v14, %v1929_v23 }
 0x1cd   : > { %v5334_v28 = vmul.f32 %v5003_v27, %v1824_v4  ;;  %v2770_v32 = vmul.f32 %v5099_v17, %v2715_v43  ;;  %v5338_v40 = vmul.f32 %v5003_v27, %v1825_v36  ;;  %v2288_v1 = vadd.f32 %v5222_v62, %v2181_v47 }
 0x1ce   : > { %v2289_v58 = vadd.f32 %v2241_v5, %v2182_v44  ;;  %v2824_v26 = vadd.f32 %v5117_v19, %v2769_v30  ;;  %v1088_v25 = vmin.f32 %v1028_v55, 6.0  ;;  %v5343_v10 = vmul.f32 %v5020_v6, %v1976_v46 }
 0x1cf   : > { %v5346_v9 = vmul.f32 %v5020_v6, %v1977_v35  ;;  %v2825_v18 = vadd.f32 %v5117_v19, %v2770_v32  ;;  %v2395_v39 = vadd.f32 %v5230_v20, %v2288_v1  ;;  %v2454_v14 = vmul.f32 %v5029_v21, %v1721_v0  ;;  %v6719_v0 = vld [vmem:[#allocation35_spill] sm:$0xff]  ;;  %v6720_v32 = vld [vmem:[#allocation36_spill] sm:$0xff] }
 0x1d0   : > { %v2396_v53 = vadd.f32 %v2348_v61, %v2289_v58  ;;  %v2872_v60 = vadd.f32 3.0, %v2824_v26  ;;  %v1148_v50 = vmul.f32 %v1088_v25, %v908_v42  ;;  %v2455_v62 = vmul.f32 %v5029_v21, %v1722_v52  ;;  %v6721_v58 = vld [vmem:[#allocation15_spill] sm:$0xff] }
 0x1d1   : > { %v2561_v5 = vmul.f32 %v5040_v45, %v1824_v4  ;;  %v2873_v29 = vadd.f32 3.0, %v2825_v18  ;;  %v2502_v23 = vadd.f32 %v2454_v14, %v2395_v39  ;;  %v2562_v43 = vmul.f32 %v5040_v45, %v1825_v36  ;;  %v5360_v4 = vld [vmem:[#allocation2 + $0x97] sm:$0xff] }
 0x1d2   : > { %v2668_v47 = vmul.f32 %v5053_v59, %v1976_v46  ;;  %v2920_v44 = vmax.f32 %v2872_v60, 0.0  ;;  %v1208_v38 = vmul.f32 0.16666667, %v1148_v50  ;;  %v2503_v30 = vadd.f32 %v2455_v62, %v2396_v53  ;;  %v6722_v46 = vld [vmem:[#allocation37_spill] sm:$0xff] }
 0x1d3   : > { %v2669_v20 = vmul.f32 %v5053_v59, %v1977_v35  ;;  %v2921_v61 = vmax.f32 %v2873_v29, 0.0  ;;  %v2609_v55 = vadd.f32 %v2561_v5, %v2502_v23  ;;  %v846_v42 = vmul.f32 %v5179_v37, %v6719_v0  ;;  %v5367_v50 = vld [vmem:[#allocation2 + $0x9f] sm:$0xff] }
 0x1d4   : > { %v844_v52 = vmul.f32 %v5179_v37, %v6720_v32  ;;  %v2968_v1 = vmin.f32 %v2920_v44, 6.0  ;;  %v1628_v36 = vmul.f32 %v6721_v58, %v1208_v38  ;;  %v2610_v25 = vadd.f32 %v2562_v43, %v2503_v30 }
 0x1d5   : > { %v847_v39 = vmul.f32 %v5179_v37, %v6722_v46  ;;  %v2969_v53 = vmin.f32 %v2921_v61, 6.0  ;;  %v2716_v14 = vadd.f32 %v2668_v47, %v2609_v55  ;;  %v913_v35 = vadd.f32 %v5195_v3, %v846_v42  ;;  %v5373_v47 = vld [vmem:[#allocation2 + $0x98] sm:$0xff]  ;;  %v5375_v61 = vld [vmem:[#allocation2 + $0xa0] sm:$0xff] }
 0x1d6   : > { %v911_v60 = vadd.f32 %v5195_v3, %v844_v52  ;;  %v3016_v62 = vmul.f32 %v2968_v1, %v2824_v26  ;;  %1688 = vst [vmem:[#allocation2 + $0x148] sm:$0xff] %v1628_v36  ;;  %v2717_v5 = vadd.f32 %v2669_v20, %v2610_v25  ;;  %v1778_v23 = vmul.f32 %v4909_v54, %v5360_v4  ;;  %v1978_v46 = vld [vmem:[#allocation2 + $0x99] sm:$0xff] }
 0x1d7   : > { %v914_v29 = vadd.f32 %v5195_v3, %v847_v39  ;;  %v3017_v43 = vmul.f32 %v2969_v53, %v2825_v18  ;;  %v2771_v44 = vmul.f32 %v5099_v17, %v2716_v14  ;;  %v973_v38 = vadd.f32 3.0, %v913_v35 }
 0x1d8   : > { %v971_v30 = vadd.f32 3.0, %v911_v60  ;;  %v3064_v55 = vmul.f32 0.16666667, %v3016_v62  ;;  %v2772_v0 = vmul.f32 %v5099_v17, %v2717_v5  ;;  %v1779_v20 = vmul.f32 %v4909_v54, %v5367_v50  ;;  %v1979_v54 = vld [vmem:[#allocation2 + $0xa1] sm:$0xff] }
 0x1d9   : > { %v974_v26 = vadd.f32 3.0, %v914_v29  ;;  %v3065_v42 = vmul.f32 0.16666667, %v3017_v43  ;;  %v2826_v32 = vadd.f32 %v5117_v19, %v2771_v44  ;;  %v1033_v52 = vmax.f32 %v973_v38, 0.0 }
 0x1da   : > { %v1031_v18 = vmax.f32 %v971_v30, 0.0  ;;  %v2827_v1 = vadd.f32 %v5117_v19, %v2772_v0  ;;  %v1882_v36 = vmul.f32 %v4932_v33, %v5373_v47  ;;  %v1883_v25 = vmul.f32 %v4932_v33, %v5375_v61 }
 0x1db   : > { %v1034_v58 = vmax.f32 %v974_v26, 0.0  ;;  %v3109_v39 = vpack.c.bf16 %v3065_v42, %v3064_v55  ;;  %v2874_v53 = vadd.f32 3.0, %v2826_v32  ;;  %v1093_v14 = vmin.f32 %v1033_v52, 6.0 }
 0x1dc   : > { %v1091_v62 = vmin.f32 %v1031_v18, 6.0  ;;  %v2875_v5 = vadd.f32 3.0, %v2827_v1  ;;  %v1930_v44 = vadd.f32 %v1882_v36, %v1778_v23  ;;  %v1931_v38 = vadd.f32 %v1883_v25, %v1779_v20  ;;  %v6723_v25 = vld [vmem:[#allocation20_spill] sm:$0xff] }
 0x1dd   : > { %v1094_v43 = vmin.f32 %v1034_v58, 6.0  ;;  %3870 = vmatmul.mubr.bf16.gmra.mrb[4].mxu1 %v3109_v39  ;;  %v2922_v30 = vmax.f32 %v2874_v53, 0.0  ;;  %v1153_v0 = vmul.f32 %v1093_v14, %v913_v35  ;;  %v2034_v31 = vmul.f32 %v4957_v2, %v1978_v46  ;;  %v6724_v53 = vld [vmem:[#allocation18_spill] sm:$0xff] }
 0x1de   : > { %v1151_v26 = vmul.f32 %v1091_v62, %v911_v60  ;;  %v2923_v22 = vmax.f32 %v2875_v5, 0.0  ;;  %v2035_v33 = vmul.f32 %v4957_v2, %v1979_v54  ;;  %v5390_v55 = vmul.f32 %v4975_v34, %v5360_v4  ;;  %v5400_v60 = vpop.f32.mrb[59].mxu0  ;;  %v6725_v5 = vld [vmem:[#allocation21_spill] sm:$0xff] }
 0x1df   : > { %v1154_v41 = vmul.f32 %v1094_v43, %v914_v29  ;;  %v2970_v42 = vmin.f32 %v2922_v30, 6.0  ;;  %v1213_v52 = vmul.f32 0.16666667, %v1153_v0  ;;  %v5392_v58 = vadd.f32 %v2034_v31, %v1930_v44  ;;  %v1725_v30 = vld [vmem:[#allocation2 + $0xa7] sm:$0xff]  ;;  %v1726_v0 = vld [vmem:[#allocation2 + $0xaf] sm:$0xff] }
 0x1e0   : > { %v1211_v18 = vmul.f32 0.16666667, %v1151_v26  ;;  %v2971_v23 = vmin.f32 %v2923_v22, 6.0  ;;  %v5394_v36 = vadd.f32 %v2035_v33, %v1931_v38  ;;  %v5398_v35 = vmul.f32 %v4975_v34, %v5367_v50 }
 0x1e1   : > { %v1214_v20 = vmul.f32 0.16666667, %v1154_v41  ;;  %v3018_v29 = vmul.f32 %v2970_v42, %v2826_v32  ;;  %v1633_v39 = vmul.f32 %v6723_v25, %v1213_v52  ;;  %v2183_v62 = vadd.f32 %v5284_v7, %v5215_v24  ;;  %v1829_v52 = vld [vmem:[#allocation2 + $0xb0] sm:$0xff] }
 0x1e2   : > { %v1631_v14 = vmul.f32 %v6724_v53, %v1211_v18  ;;  %v3019_v31 = vmul.f32 %v2971_v23, %v2827_v1  ;;  %v2184_v41 = vadd.f32 %v5318_v51, %v5217_v11  ;;  %v2245_v43 = vmul.f32 %v5003_v27, %v5373_v47  ;;  %v1980_v18 = vld [vmem:[#allocation2 + $0xa9] sm:$0xff] }
 0x1e3   : > { %v1634_v22 = vmul.f32 %v6725_v5, %v1214_v20  ;;  %v3066_v44 = vmul.f32 0.16666667, %v3018_v29  ;;  %1693 = vst [vmem:[#allocation2 + $0x170] sm:$0xff] %v1633_v39  ;;  %v5413_v32 = vmul.f32 %v5003_v27, %v5375_v61  ;;  %v2290_v38 = vadd.f32 %v5288_v56, %v2183_v62  ;;  %v6726_v39 = vld [vmem:[#allocation38_spill] sm:$0xff] }
 0x1e4   : > { %1691 = vst [vmem:[#allocation2 + $0x160] sm:$0xff] %v1631_v14  ;;  %v2352_v24 = vmul.f32 %v5020_v6, %v1978_v46  ;;  %v3067_v7 = vmul.f32 0.16666667, %v3019_v31  ;;  %v2291_v1 = vadd.f32 %v5334_v28, %v2184_v41  ;;  %v5419_v11 = vmul.f32 %v5020_v6, %v1979_v54  ;;  %v1828_v28 = vld [vmem:[#allocation2 + $0xa8] sm:$0xff] }
 0x1e5   : > { %1694 = vst [vmem:[#allocation2 + $0x178] sm:$0xff] %v1634_v22  ;;  %v2456_v51 = vmul.f32 %v5029_v21, %v5360_v4  ;;  %v2397_v26 = vadd.f32 %v5296_v16, %v2290_v38  ;;  %v2457_v33 = vmul.f32 %v5029_v21, %v5367_v50  ;;  %v2563_v56 = vmul.f32 %v5040_v45, %v5373_v47  ;;  %v1981_v16 = vld [vmem:[#allocation2 + $0xb1] sm:$0xff]  ;;  %v5438_v47 = vld [vmem:[%s6660_s5] ss:$0 sm:$0xff] }
 0x1e6   : > { %v2564_v42 = vmul.f32 %v5040_v45, %v5375_v61  ;;  %v3110_v23 = vpack.c.bf16 %v3067_v7, %v3066_v44  ;;  %v2398_v20 = vadd.f32 %v5343_v10, %v2291_v1  ;;  %v2670_v4 = vmul.f32 %v5053_v59, %v1978_v46  ;;  %v5445_v46 = vld [vmem:[%s6660_s5 + $0x1] ss:$0 sm:$0xff] }
 0x1e7   : > { %v2671_v29 = vmul.f32 %v5053_v59, %v1979_v54  ;;  %v2504_v25 = vadd.f32 %v2456_v51, %v2397_v26  ;;  %v845_v50 = vmul.f32 %v5179_v37, %v6726_v39  ;;  %v1780_v61 = vmul.f32 %v5438_v47, %v1725_v30 }
 0x1e8   : > { %v1781_v53 = vmul.f32 %v5438_v47, %v1726_v0  ;;  %3873 = vmatprep.mubr.bf16.mxu1 %v3110_v23  ;;  %v2505_v10 = vadd.f32 %v2457_v33, %v2398_v20  ;;  %v1884_v54 = vmul.f32 %v5445_v46, %v1828_v28  ;;  %v1885_v14 = vmul.f32 %v5445_v46, %v1829_v52 }
 0x1e9   : > { %v2036_v62 = vmul.f32 %v4957_v2, %v1980_v18  ;;  %v2611_v31 = vadd.f32 %v2563_v56, %v2504_v25  ;;  %v912_v5 = vadd.f32 %v5195_v3, %v845_v50  ;;  %v2037_v22 = vmul.f32 %v4957_v2, %v1981_v16 }
 0x1ea   : > { %v5453_v41 = vmul.f32 %v4975_v34, %v1725_v30  ;;  %v2612_v44 = vadd.f32 %v2564_v42, %v2505_v10  ;;  %v1932_v38 = vadd.f32 %v1884_v54, %v1780_v61  ;;  %v1933_v7 = vadd.f32 %v1885_v14, %v1781_v53 }
 0x1eb   : > { %v5456_v1 = vmul.f32 %v4975_v34, %v1726_v0  ;;  %v2718_v51 = vadd.f32 %v2670_v4, %v2611_v31  ;;  %v972_v26 = vadd.f32 3.0, %v912_v5  ;;  %v2185_v33 = vadd.f32 %v5321_v15, %v5276_v49 }
 0x1ec   : > { %v2186_v56 = vadd.f32 %v5390_v55, %v5278_v63  ;;  %v2719_v23 = vadd.f32 %v2671_v29, %v2612_v44  ;;  %v5462_v20 = vadd.f32 %v2036_v62, %v1932_v38  ;;  %v5464_v2 = vadd.f32 %v2037_v22, %v1933_v7 }
 0x1ed   : > { %v5467_v42 = vmul.f32 %v5003_v27, %v1828_v28  ;;  %v2773_v25 = vmul.f32 %v5099_v17, %v2718_v51  ;;  %v1032_v34 = vmax.f32 %v972_v26, 0.0  ;;  %v5471_v4 = vmul.f32 %v5003_v27, %v1829_v52  ;;  %v6727_v51 = vld [vmem:[#allocation39_spill] sm:$0xff]  ;;  %v6729_v26 = vld [vmem:[#allocation41_spill] sm:$0xff] }
 0x1ee   : > { %v2292_v39 = vadd.f32 %v5338_v40, %v2185_v33  ;;  %v2774_v49 = vmul.f32 %v5099_v17, %v2719_v23  ;;  %v2293_v15 = vadd.f32 %v2245_v43, %v2186_v56  ;;  %v5476_v63 = vmul.f32 %v5020_v6, %v1980_v18 }
 0x1ef   : > { %v5479_v55 = vmul.f32 %v5020_v6, %v1981_v16  ;;  %v2828_v29 = vadd.f32 %v5117_v19, %v2773_v25  ;;  %v1092_v50 = vmin.f32 %v1032_v34, 6.0  ;;  %v2458_v53 = vmul.f32 %v5029_v21, %v1725_v30 }
 0x1f0   : > { %v2399_v61 = vadd.f32 %v5346_v9, %v2292_v39  ;;  %v2829_v27 = vadd.f32 %v5117_v19, %v2774_v49  ;;  %v2400_v10 = vadd.f32 %v2352_v24, %v2293_v15  ;;  %v2459_v40 = vmul.f32 %v5029_v21, %v1726_v0  ;;  %v5502_v49 = vld [vmem:[#allocation2 + $0xbf] sm:$0xff] }
 0x1f1   : > { %v2565_v43 = vmul.f32 %v5040_v45, %v1828_v28  ;;  %v2876_v54 = vadd.f32 3.0, %v2828_v29  ;;  %v1152_v14 = vmul.f32 %v1092_v50, %v912_v5  ;;  %v2566_v6 = vmul.f32 %v5040_v45, %v1829_v52  ;;  %v6728_v28 = vld [vmem:[#allocation40_spill] sm:$0xff] }
 0x1f2   : > { %v2506_v62 = vadd.f32 %v2458_v53, %v2399_v61  ;;  %v2877_v31 = vadd.f32 3.0, %v2829_v27  ;;  %v2507_v22 = vadd.f32 %v2459_v40, %v2400_v10  ;;  %v2672_v44 = vmul.f32 %v5053_v59, %v1980_v18  ;;  %v5496_v52 = vld [vmem:[#allocation2 + $0xb7] sm:$0xff] }
 0x1f3   : > { %v2673_v9 = vmul.f32 %v5053_v59, %v1981_v16  ;;  %v2924_v38 = vmax.f32 %v2876_v54, 0.0  ;;  %v1212_v30 = vmul.f32 0.16666667, %v1152_v14  ;;  %v850_v24 = vmul.f32 %v5179_v37, %v6727_v51  ;;  %v6730_v18 = vld [vmem:[#allocation19_spill] sm:$0xff]  ;;  %v5508_v14 = vld [vmem:[#allocation2 + $0xb8] sm:$0xff] }
 0x1f4   : > { %v2613_v7 = vadd.f32 %v2565_v43, %v2506_v62  ;;  %v2925_v21 = vmax.f32 %v2877_v31, 0.0  ;;  %v2614_v0 = vadd.f32 %v2566_v6, %v2507_v22  ;;  %v848_v5 = vmul.f32 %v5179_v37, %v6728_v28  ;;  %v5510_v62 = vld [vmem:[#allocation2 + $0xc0] sm:$0xff] }
 0x1f5   : > { %v851_v45 = vmul.f32 %v5179_v37, %v6729_v26  ;;  %v2972_v33 = vmin.f32 %v2924_v38, 6.0  ;;  %v1632_v56 = vmul.f32 %v6730_v18, %v1212_v30  ;;  %v917_v16 = vadd.f32 %v5195_v3, %v850_v24  ;;  %v1982_v24 = vld [vmem:[#allocation2 + $0xb9] sm:$0xff]  ;;  %v1983_v26 = vld [vmem:[#allocation2 + $0xc1] sm:$0xff] }
 0x1f6   : > { %v2720_v59 = vadd.f32 %v2672_v44, %v2613_v7  ;;  %v2973_v23 = vmin.f32 %v2925_v21, 6.0  ;;  %v2721_v25 = vadd.f32 %v2673_v9, %v2614_v0  ;;  %v915_v34 = vadd.f32 %v5195_v3, %v848_v5 }
 0x1f7   : > { %v918_v39 = vadd.f32 %v5195_v3, %v851_v45  ;;  %v3020_v15 = vmul.f32 %v2972_v33, %v2828_v29  ;;  %1692 = vst [vmem:[#allocation2 + $0x168] sm:$0xff] %v1632_v56  ;;  %v977_v61 = vadd.f32 3.0, %v917_v16  ;;  %v1782_v53 = vmul.f32 %v5438_v47, %v5496_v52 }
 0x1f8   : > { %v2775_v50 = vmul.f32 %v5099_v17, %v2720_v59  ;;  %v3021_v10 = vmul.f32 %v2973_v23, %v2829_v27  ;;  %v2776_v40 = vmul.f32 %v5099_v17, %v2721_v25  ;;  %v975_v43 = vadd.f32 3.0, %v915_v34  ;;  %v5523_v25 = vld [vmem:[%s6660_s5 + $0x2] ss:$0 sm:$0xff] }
 0x1f9   : > { %v978_v54 = vadd.f32 3.0, %v918_v39  ;;  %v3068_v6 = vmul.f32 0.16666667, %v3020_v15  ;;  %v1037_v29 = vmax.f32 %v977_v61, 0.0  ;;  %v1783_v22 = vmul.f32 %v5438_v47, %v5502_v49 }
 0x1fa   : > { %v2830_v31 = vadd.f32 %v5117_v19, %v2775_v50  ;;  %v3069_v44 = vmul.f32 0.16666667, %v3021_v10  ;;  %v2831_v9 = vadd.f32 %v5117_v19, %v2776_v40  ;;  %v1035_v38 = vmax.f32 %v975_v43, 0.0 }
 0x1fb   : > { %v1038_v27 = vmax.f32 %v978_v54, 0.0  ;;  %v1097_v17 = vmin.f32 %v1037_v29, 6.0  ;;  %v1886_v7 = vmul.f32 %v5445_v46, %v5508_v14  ;;  %v1887_v51 = vmul.f32 %v5445_v46, %v5510_v62 }
 0x1fc   : > { %v2878_v30 = vadd.f32 3.0, %v2830_v31  ;;  %v3111_v21 = vpack.c.bf16 %v3069_v44, %v3068_v6  ;;  %v2879_v0 = vadd.f32 3.0, %v2831_v9  ;;  %v1095_v28 = vmin.f32 %v1035_v38, 6.0  ;;  %v6731_v6 = vld [vmem:[#allocation24_spill] sm:$0xff] }
 0x1fd   : > { %v1098_v5 = vmin.f32 %v1038_v27, 6.0  ;;  %v1157_v33 = vmul.f32 %v1097_v17, %v917_v16  ;;  %v1934_v18 = vadd.f32 %v1886_v7, %v1782_v53  ;;  %v1935_v19 = vadd.f32 %v1887_v51, %v1783_v22  ;;  %v5530_v16 = vld [vmem:[%s6660_s5 + $0x3] ss:$0 sm:$0xff]  ;;  %v6732_v27 = vld [vmem:[#allocation22_spill] sm:$0xff] }
 0x1fe   : > { %v2926_v45 = vmax.f32 %v2878_v30, 0.0  ;;  %3874 = vmatmul.mubr.bf16.gmra.mrb[8].mxu1 %v3111_v21  ;;  %v2927_v56 = vmax.f32 %v2879_v0, 0.0  ;;  %v1155_v59 = vmul.f32 %v1095_v28, %v915_v34  ;;  %v2038_v15 = vmul.f32 %v5523_v25, %v1982_v24  ;;  %v6733_v17 = vld [vmem:[#allocation25_spill] sm:$0xff] }
 0x1ff   : > { %v1158_v23 = vmul.f32 %v1098_v5, %v918_v39  ;;  %v1217_v61 = vmul.f32 0.16666667, %v1157_v33  ;;  %v2039_v10 = vmul.f32 %v5523_v25, %v1983_v26  ;;  %v5534_v34 = vmul.f32 %v5530_v16, %v5496_v52  ;;  %v5554_v0 = vld [vmem:[%s6660_s5 + $0x4] ss:$0 sm:$0xff] }
 0x200   : > { %v2974_v50 = vmin.f32 %v2926_v45, 6.0  ;;  %v2975_v39 = vmin.f32 %v2927_v56, 6.0  ;;  %v1215_v53 = vmul.f32 0.16666667, %v1155_v59  ;;  %v5536_v43 = vadd.f32 %v2038_v15, %v1934_v18  ;;  %v1729_v45 = vld [vmem:[#allocation2 + $0xc7] sm:$0xff]  ;;  %v1833_v15 = vld [vmem:[#allocation2 + $0xd0] sm:$0xff] }
 0x201   : > { %v1218_v40 = vmul.f32 0.16666667, %v1158_v23  ;;  %v1637_v29 = vmul.f32 %v6731_v6, %v1217_v61  ;;  %v5539_v22 = vadd.f32 %v2039_v10, %v1935_v19  ;;  %v5543_v44 = vmul.f32 %v5530_v16, %v5502_v49  ;;  %v5576_v18 = vld [vmem:[%s6660_s5 + $0x6] ss:$0 sm:$0xff]  ;;  %v5585_v56 = vld [vmem:[%s6660_s5 + $0x7] ss:$0 sm:$0xff] }
 0x202   : > { %v3022_v54 = vmul.f32 %v2974_v50, %v2830_v31  ;;  %v3023_v38 = vmul.f32 %v2975_v39, %v2831_v9  ;;  %v1635_v30 = vmul.f32 %v6732_v27, %v1215_v53  ;;  %v2187_v51 = vadd.f32 %v5398_v35, %v5325_v57  ;;  %v1832_v23 = vld [vmem:[#allocation2 + $0xc8] sm:$0xff]  ;;  %v1985_v53 = vld [vmem:[#allocation2 + $0xd1] sm:$0xff] }
 0x203   : > { %v1638_v7 = vmul.f32 %v6733_v17, %v1218_v40  ;;  %1697 = vst [vmem:[#allocation2 + $0x190] sm:$0xff] %v1637_v29  ;;  %v2188_v31 = vadd.f32 %v5453_v41, %v5331_v48  ;;  %v2249_v9 = vmul.f32 %v5554_v0, %v5508_v14  ;;  %v5560_v28 = vmul.f32 %v5554_v0, %v5510_v62  ;;  %v5566_v48 = vld [vmem:[%s6660_s5 + $0x5] ss:$0 sm:$0xff]  ;;  %v1984_v39 = vld [vmem:[#allocation2 + $0xc9] sm:$0xff] }
 0x204   : > { %v3070_v21 = vmul.f32 0.16666667, %v3022_v54  ;;  %v3071_v5 = vmul.f32 0.16666667, %v3023_v38  ;;  %1695 = vst [vmem:[#allocation2 + $0x180] sm:$0xff] %v1635_v30  ;;  %v2294_v57 = vadd.f32 %v5413_v32, %v2187_v51  ;;  %v2356_v35 = vmul.f32 %v5566_v48, %v1982_v24 }
 0x205   : > { %1698 = vst [vmem:[#allocation2 + $0x198] sm:$0xff] %v1638_v7  ;;  %v5570_v41 = vmul.f32 %v5566_v48, %v1983_v26  ;;  %v2295_v33 = vadd.f32 %v5467_v42, %v2188_v31  ;;  %v2460_v32 = vmul.f32 %v5576_v18, %v5496_v52  ;;  %v2461_v19 = vmul.f32 %v5576_v18, %v5502_v49  ;;  %v1730_v42 = vld [vmem:[#allocation2 + $0xcf] sm:$0xff]  ;;  %v5595_v49 = vld [vmem:[%s6660_s5 + $0x8] ss:$0 sm:$0xff] }
 0x206   : > { %v2567_v59 = vmul.f32 %v5585_v56, %v5508_v14  ;;  %v3112_v50 = vpack.c.bf16 %v3071_v5, %v3070_v21  ;;  %v2401_v61 = vadd.f32 %v5419_v11, %v2294_v57  ;;  %v2568_v52 = vmul.f32 %v5585_v56, %v5510_v62 }
 0x207   : > { %v2674_v10 = vmul.f32 %v5595_v49, %v1982_v24  ;;  %v2402_v14 = vadd.f32 %v5476_v63, %v2295_v33  ;;  %v2675_v40 = vmul.f32 %v5595_v49, %v1983_v26  ;;  %v849_v54 = vmul.f32 %v5179_v37, %v5145_v13 }
 0x208   : > { %v1784_v11 = vmul.f32 %v5438_v47, %v1729_v45  ;;  %3877 = vmatprep.mubr.bf16.mxu1 %v3112_v50  ;;  %v2508_v62 = vadd.f32 %v2460_v32, %v2401_v61  ;;  %v1785_v6 = vmul.f32 %v5438_v47, %v1730_v42  ;;  %v1888_v29 = vmul.f32 %v5445_v46, %v1832_v23 }
 0x209   : > { %v1889_v38 = vmul.f32 %v5445_v46, %v1833_v15  ;;  %v2509_v24 = vadd.f32 %v2461_v19, %v2402_v14  ;;  %v916_v27 = vadd.f32 %v5195_v3, %v849_v54  ;;  %v2040_v63 = vmul.f32 %v5523_v25, %v1984_v39 }
 0x20a   : > { %v2041_v26 = vmul.f32 %v5523_v25, %v1985_v53  ;;  %v2615_v30 = vadd.f32 %v2567_v59, %v2508_v62  ;;  %v1936_v17 = vadd.f32 %v1888_v29, %v1784_v11  ;;  %v5610_v7 = vmul.f32 %v5530_v16, %v1729_v45  ;;  %v5647_v62 = vld [vmem:[%s6662_s7] ss:$0 sm:$0xff] }
 0x20b   : > { %v1937_v13 = vadd.f32 %v1889_v38, %v1785_v6  ;;  %v2616_v51 = vadd.f32 %v2568_v52, %v2509_v24  ;;  %v976_v21 = vadd.f32 3.0, %v916_v27  ;;  %v5613_v31 = vmul.f32 %v5530_v16, %v1730_v42 }
 0x20c   : > { %v2189_v5 = vadd.f32 %v5456_v1, %v5392_v58  ;;  %v2722_v57 = vadd.f32 %v2674_v10, %v2615_v30  ;;  %v5617_v33 = vadd.f32 %v2040_v63, %v1936_v17  ;;  %v2190_v19 = vadd.f32 %v5534_v34, %v5394_v36  ;;  %v5632_v58 = vld [vmem:[%s6661_s6] ss:$0 sm:$0xff] }
 0x20d   : > { %v5619_v32 = vadd.f32 %v2041_v26, %v1937_v13  ;;  %v2723_v59 = vadd.f32 %v2675_v40, %v2616_v51  ;;  %v1036_v50 = vmax.f32 %v976_v21, 0.0  ;;  %v5624_v61 = vmul.f32 %v5554_v0, %v1832_v23 }
 0x20e   : > { %v5627_v52 = vmul.f32 %v5554_v0, %v1833_v15  ;;  %v2777_v1 = vmul.f32 %v5632_v58, %v2722_v57  ;;  %v2296_v10 = vadd.f32 %v5471_v4, %v2189_v5  ;;  %v2297_v14 = vadd.f32 %v2249_v9, %v2190_v19  ;;  %v6734_v19 = vld [vmem:[#allocation23_spill] sm:$0xff] }
 0x20f   : > { %v5637_v36 = vmul.f32 %v5566_v48, %v1984_v39  ;;  %v2778_v34 = vmul.f32 %v5632_v58, %v2723_v59  ;;  %v1096_v40 = vmin.f32 %v1036_v50, 6.0  ;;  %v5641_v54 = vmul.f32 %v5566_v48, %v1985_v53  ;;  %v6735_v50 = vld [vmem:[#allocation42_spill] sm:$0xff] }
 0x210   : > { %v2462_v11 = vmul.f32 %v5576_v18, %v1729_v45  ;;  %v2832_v6 = vadd.f32 %v5647_v62, %v2777_v1  ;;  %v2403_v4 = vadd.f32 %v5479_v55, %v2296_v10  ;;  %v2404_v9 = vadd.f32 %v2356_v35, %v2297_v14 }
 0x211   : > { %v2463_v29 = vmul.f32 %v5576_v18, %v1730_v42  ;;  %v2833_v38 = vadd.f32 %v5647_v62, %v2778_v34  ;;  %v1156_v24 = vmul.f32 %v1096_v40, %v916_v27  ;;  %v2569_v63 = vmul.f32 %v5585_v56, %v1832_v23  ;;  %v5661_v27 = vld [vmem:[#allocation2 + $0xd7] sm:$0xff]  ;;  %v5668_v34 = vld [vmem:[#allocation2 + $0xdf] sm:$0xff] }
 0x212   : > { %v2570_v26 = vmul.f32 %v5585_v56, %v1833_v15  ;;  %v2880_v45 = vadd.f32 3.0, %v2832_v6  ;;  %v2510_v30 = vadd.f32 %v2462_v11, %v2403_v4  ;;  %v2676_v13 = vmul.f32 %v5595_v49, %v1984_v39 }
 0x213   : > { %v2511_v17 = vadd.f32 %v2463_v29, %v2404_v9  ;;  %v2881_v51 = vadd.f32 3.0, %v2833_v38  ;;  %v1216_v21 = vmul.f32 0.16666667, %v1156_v24  ;;  %v2677_v5 = vmul.f32 %v5595_v49, %v1985_v53 }
 0x214   : > { %v854_v55 = vmul.f32 %v5179_v37, %v5190_v8  ;;  %v2928_v35 = vmax.f32 %v2880_v45, 0.0  ;;  %v2617_v42 = vadd.f32 %v2569_v63, %v2510_v30  ;;  %v852_v23 = vmul.f32 %v5179_v37, %v5202_v12  ;;  %v5675_v63 = vld [vmem:[#allocation2 + $0xd8] sm:$0xff] }
 0x215   : > { %v2618_v57 = vadd.f32 %v2570_v26, %v2511_v17  ;;  %v2929_v15 = vmax.f32 %v2881_v51, 0.0  ;;  %v1636_v59 = vmul.f32 %v6734_v19, %v1216_v21  ;;  %v855_v1 = vmul.f32 %v5179_v37, %v6735_v50  ;;  %v1986_v19 = vld [vmem:[#allocation2 + $0xd9] sm:$0xff] }
 0x216   : > { %v921_v39 = vadd.f32 %v5195_v3, %v854_v55  ;;  %v2976_v53 = vmin.f32 %v2928_v35, 6.0  ;;  %v2724_v10 = vadd.f32 %v2676_v13, %v2617_v42  ;;  %v919_v8 = vadd.f32 %v5195_v3, %v852_v23  ;;  %v1835_v13 = vld [vmem:[#allocation2 + $0xe0] sm:$0xff] }
 0x217   : > { %v2725_v14 = vadd.f32 %v2677_v5, %v2618_v57  ;;  %v2977_v40 = vmin.f32 %v2929_v15, 6.0  ;;  %1696 = vst [vmem:[#allocation2 + $0x188] sm:$0xff] %v1636_v59  ;;  %v922_v11 = vadd.f32 %v5195_v3, %v855_v1  ;;  %v1786_v4 = vmul.f32 %v5438_v47, %v5661_v27  ;;  %v1987_v59 = vld [vmem:[#allocation2 + $0xe1] sm:$0xff] }
 0x218   : > { %v981_v12 = vadd.f32 3.0, %v921_v39  ;;  %v3024_v9 = vmul.f32 %v2976_v53, %v2832_v6  ;;  %v2779_v29 = vmul.f32 %v5632_v58, %v2724_v10  ;;  %v979_v24 = vadd.f32 3.0, %v919_v8 }
 0x219   : > { %v2780_v37 = vmul.f32 %v5632_v58, %v2725_v14  ;;  %v3025_v26 = vmul.f32 %v2977_v40, %v2833_v38  ;;  %v982_v30 = vadd.f32 3.0, %v922_v11  ;;  %v1787_v17 = vmul.f32 %v5438_v47, %v5668_v34 }
 0x21a   : > { %v1041_v45 = vmax.f32 %v981_v12, 0.0  ;;  %v3072_v51 = vmul.f32 0.16666667, %v3024_v9  ;;  %v2834_v3 = vadd.f32 %v5647_v62, %v2779_v29  ;;  %v1039_v6 = vmax.f32 %v979_v24, 0.0 }
 0x21b   : > { %v2835_v21 = vadd.f32 %v5647_v62, %v2780_v37  ;;  %v3073_v5 = vmul.f32 0.16666667, %v3025_v26  ;;  %v1042_v35 = vmax.f32 %v982_v30, 0.0  ;;  %v1890_v42 = vmul.f32 %v5445_v46, %v5675_v63 }
 0x21c   : > { %v1101_v55 = vmin.f32 %v1041_v45, 6.0  ;;  %v2882_v57 = vadd.f32 3.0, %v2834_v3  ;;  %v1099_v23 = vmin.f32 %v1039_v6, 6.0  ;;  %v1891_v15 = vmul.f32 %v5445_v46, %v1835_v13 }
 0x21d   : > { %v2883_v38 = vadd.f32 3.0, %v2835_v21  ;;  %v3113_v50 = vpack.c.bf16 %v3073_v5, %v3072_v51  ;;  %v1102_v53 = vmin.f32 %v1042_v35, 6.0  ;;  %v1938_v10 = vadd.f32 %v1890_v42, %v1786_v4 }
 0x21e   : > { %v1161_v1 = vmul.f32 %v1101_v55, %v921_v39  ;;  %v2930_v14 = vmax.f32 %v2882_v57, 0.0  ;;  %v1159_v12 = vmul.f32 %v1099_v23, %v919_v8  ;;  %v1939_v9 = vadd.f32 %v1891_v15, %v1787_v17  ;;  %v6736_v39 = vld [vmem:[#allocation28_spill] sm:$0xff] }
 0x21f   : > { %v2931_v40 = vmax.f32 %v2883_v38, 0.0  ;;  %3878 = vmatmul.mubr.bf16.gmra.mrb[12].mxu1 %v3113_v50  ;;  %v1162_v37 = vmul.f32 %v1102_v53, %v922_v11  ;;  %v2042_v24 = vmul.f32 %v5523_v25, %v1986_v19  ;;  %v2043_v26 = vmul.f32 %v5523_v25, %v1987_v59  ;;  %v6737_v11 = vld [vmem:[#allocation26_spill] sm:$0xff]  ;;  %v6738_v38 = vld [vmem:[#allocation29_spill] sm:$0xff] }
 0x220   : > { %v1221_v29 = vmul.f32 0.16666667, %v1161_v1  ;;  %v2978_v45 = vmin.f32 %v2930_v14, 6.0  ;;  %v1219_v6 = vmul.f32 0.16666667, %v1159_v12  ;;  %v2146_v51 = vmul.f32 %v5530_v16, %v5661_v27  ;;  %v1836_v12 = vld [vmem:[#allocation2 + $0xe8] sm:$0xff] }
 0x221   : > { %v2979_v30 = vmin.f32 %v2931_v40, 6.0  ;;  %v1222_v4 = vmul.f32 0.16666667, %v1162_v37  ;;  %v5689_v55 = vadd.f32 %v2042_v24, %v1938_v10  ;;  %v5691_v8 = vadd.f32 %v2043_v26, %v1939_v9  ;;  %v1837_v24 = vld [vmem:[#allocation2 + $0xf0] sm:$0xff] }
 0x222   : > { %v1641_v5 = vmul.f32 %v6736_v39, %v1221_v29  ;;  %v3026_v17 = vmul.f32 %v2978_v45, %v2834_v3  ;;  %v1639_v42 = vmul.f32 %v6737_v11, %v1219_v6  ;;  %v5696_v57 = vmul.f32 %v5530_v16, %v5668_v34  ;;  %v1989_v6 = vld [vmem:[#allocation2 + $0xf1] sm:$0xff] }
 0x223   : > { %v3027_v35 = vmul.f32 %v2979_v30, %v2835_v21  ;;  %v1642_v23 = vmul.f32 %v6738_v38, %v1222_v4  ;;  %v2191_v15 = vadd.f32 %v5543_v44, %v5462_v20  ;;  %v2192_v50 = vadd.f32 %v5610_v7, %v5464_v2  ;;  %v1733_v44 = vld [vmem:[#allocation2 + $0xe7] sm:$0xff]  ;;  %v1734_v7 = vld [vmem:[#allocation2 + $0xef] sm:$0xff] }
 0x224   : > { %1701 = vst [vmem:[#allocation2 + $0x1b0] sm:$0xff] %v1641_v5  ;;  %v2253_v1 = vmul.f32 %v5554_v0, %v5675_v63  ;;  %v3074_v3 = vmul.f32 0.16666667, %v3026_v17  ;;  %1699 = vst [vmem:[#allocation2 + $0x1a0] sm:$0xff] %v1639_v42  ;;  %v5706_v53 = vmul.f32 %v5554_v0, %v1835_v13  ;;  %v2360_v10 = vmul.f32 %v5566_v48, %v1986_v19  ;;  %v5740_v17 = vld [vmem:[%s6659_s4] ss:$0 sm:$0xff] }
 0x225   : > { %v3075_v21 = vmul.f32 0.16666667, %v3027_v35  ;;  %1702 = vst [vmem:[#allocation2 + $0x1b8] sm:$0xff] %v1642_v23  ;;  %v2298_v14 = vadd.f32 %v5560_v28, %v2191_v15  ;;  %v2299_v40 = vadd.f32 %v5624_v61, %v2192_v50  ;;  %v5712_v20 = vmul.f32 %v5566_v48, %v1987_v59  ;;  %v1988_v61 = vld [vmem:[#allocation2 + $0xe9] sm:$0xff] }
 0x226   : > { %v2464_v2 = vmul.f32 %v5576_v18, %v5661_v27  ;;  %v2465_v29 = vmul.f32 %v5576_v18, %v5668_v34  ;;  %v2571_v37 = vmul.f32 %v5585_v56, %v5675_v63  ;;  %v2572_v28 = vmul.f32 %v5585_v56, %v1835_v13  ;;  %v5728_v34 = vld [vmem:[%s6658_s3] ss:$0 sm:$0xff] }
 0x227   : > { %v3114_v9 = vpack.c.bf16 %v3075_v21, %v3074_v3  ;;  %v2405_v26 = vadd.f32 %v5570_v41, %v2298_v14  ;;  %v2406_v45 = vadd.f32 %v5637_v36, %v2299_v40  ;;  %v2678_v27 = vmul.f32 %v5595_v49, %v1986_v19  ;;  %v6739_v63 = vld [vmem:[#allocation13_spill] sm:$0xff] }
 0x228   : > { %v2679_v30 = vmul.f32 %v5595_v49, %v1987_v59  ;;  %v853_v13 = vmul.f32 %v5728_v34, %v6739_v63  ;;  %v1788_v39 = vmul.f32 %v5438_v47, %v1733_v44  ;;  %v1789_v41 = vmul.f32 %v5438_v47, %v1734_v7 }
 0x229   : > { %3881 = vmatprep.mubr.bf16.mxu1 %v3114_v9  ;;  %v1892_v36 = vmul.f32 %v5445_v46, %v1836_v12  ;;  %v2512_v5 = vadd.f32 %v2464_v2, %v2405_v26  ;;  %v2513_v19 = vadd.f32 %v2465_v29, %v2406_v45  ;;  %v1893_v59 = vmul.f32 %v5445_v46, %v1837_v24 }
 0x22a   : > { %v2044_v4 = vmul.f32 %v5523_v25, %v1988_v61  ;;  %v920_v35 = vadd.f32 %v5740_v17, %v853_v13  ;;  %v2045_v42 = vmul.f32 %v5523_v25, %v1989_v6  ;;  %v5745_v38 = vmul.f32 %v5530_v16, %v1733_v44 }
 0x22b   : > { %v1940_v11 = vadd.f32 %v1892_v36, %v1788_v39  ;;  %v2619_v23 = vadd.f32 %v2571_v37, %v2512_v5  ;;  %v2620_v15 = vadd.f32 %v2572_v28, %v2513_v19  ;;  %v1941_v50 = vadd.f32 %v1893_v59, %v1789_v41 }
 0x22c   : > { %v5748_v3 = vmul.f32 %v5530_v16, %v1734_v7  ;;  %v980_v21 = vadd.f32 3.0, %v920_v35  ;;  %v2193_v40 = vadd.f32 %v5613_v31, %v5536_v43  ;;  %v2194_v2 = vadd.f32 %v2146_v51, %v5539_v22 }
 0x22d   : > { %v5750_v14 = vadd.f32 %v2044_v4, %v1940_v11  ;;  %v2726_v9 = vadd.f32 %v2678_v27, %v2619_v23  ;;  %v2727_v29 = vadd.f32 %v2679_v30, %v2620_v15  ;;  %v5755_v26 = vadd.f32 %v2045_v42, %v1941_v50  ;;  %v6740_v50 = vld [vmem:[#allocation16_spill] sm:$0xff] }
 0x22e   : > { %v5758_v45 = vmul.f32 %v5554_v0, %v1836_v12  ;;  %v1040_v37 = vmax.f32 %v980_v21, 0.0  ;;  %v5761_v28 = vmul.f32 %v5554_v0, %v1837_v24  ;;  %v2300_v63 = vadd.f32 %v5627_v52, %v2193_v40 }
 0x22f   : > { %v2301_v13 = vadd.f32 %v2253_v1, %v2194_v2  ;;  %v2781_v39 = vmul.f32 %v5632_v58, %v2726_v9  ;;  %v2782_v43 = vmul.f32 %v5632_v58, %v2727_v29  ;;  %v5767_v22 = vmul.f32 %v5566_v48, %v1988_v61 }
 0x230   : > { %v5770_v31 = vmul.f32 %v5566_v48, %v1989_v6  ;;  %v1100_v51 = vmin.f32 %v1040_v37, 6.0  ;;  %v2407_v27 = vadd.f32 %v5641_v54, %v2300_v63  ;;  %v2466_v41 = vmul.f32 %v5576_v18, %v1733_v44 }
 0x231   : > { %v2408_v30 = vadd.f32 %v2360_v10, %v2301_v13  ;;  %v2836_v36 = vadd.f32 %v5647_v62, %v2781_v39  ;;  %v2837_v52 = vadd.f32 %v5647_v62, %v2782_v43  ;;  %v2467_v1 = vmul.f32 %v5576_v18, %v1734_v7  ;;  %v1736_v13 = vld [vmem:[#allocation2 + $0xff] sm:$0xff] }
 0x232   : > { %v2573_v5 = vmul.f32 %v5585_v56, %v1836_v12  ;;  %v1160_v19 = vmul.f32 %v1100_v51, %v920_v35  ;;  %v2514_v59 = vadd.f32 %v2466_v41, %v2407_v27  ;;  %v2574_v4 = vmul.f32 %v5585_v56, %v1837_v24  ;;  %v5783_v12 = vld [vmem:[#allocation2 + $0xf7] sm:$0xff] }
 0x233   : > { %v2680_v11 = vmul.f32 %v5595_v49, %v1988_v61  ;;  %v2884_v42 = vadd.f32 3.0, %v2836_v36  ;;  %v2885_v23 = vadd.f32 3.0, %v2837_v52  ;;  %v2515_v54 = vadd.f32 %v2467_v1, %v2408_v30  ;;  %v6741_v35 = vld [vmem:[#allocation27_spill] sm:$0xff]  ;;  %v1838_v41 = vld [vmem:[#allocation2 + $0xf8] sm:$0xff] }
 0x234   : > { %v2681_v10 = vmul.f32 %v5595_v49, %v1989_v6  ;;  %v1220_v44 = vmul.f32 0.16666667, %v1160_v19  ;;  %v2621_v15 = vadd.f32 %v2573_v5, %v2514_v59  ;;  %v856_v21 = vmul.f32 %v5728_v34, %v6740_v50  ;;  %v1839_v59 = vld [vmem:[#allocation2 + $0x100] sm:$0xff] }
 0x235   : > { %v2932_v40 = vmax.f32 %v2884_v42, 0.0  ;;  %v2933_v7 = vmax.f32 %v2885_v23, 0.0  ;;  %v2622_v2 = vadd.f32 %v2574_v4, %v2515_v54  ;;  %v1790_v43 = vmul.f32 %v5438_v47, %v5783_v12  ;;  %v1991_v50 = vld [vmem:[#allocation2 + $0x101] sm:$0xff] }
 0x236   : > { %v1640_v9 = vmul.f32 %v6741_v35, %v1220_v44  ;;  %v2728_v24 = vadd.f32 %v2680_v11, %v2621_v15  ;;  %v923_v61 = vadd.f32 %v5740_v17, %v856_v21  ;;  %v1791_v19 = vmul.f32 %v5438_v47, %v1736_v13  ;;  %v1990_v44 = vld [vmem:[#allocation2 + $0xf9] sm:$0xff] }
 0x237   : > { %v2980_v29 = vmin.f32 %v2932_v40, 6.0  ;;  %v2981_v37 = vmin.f32 %v2933_v7, 6.0  ;;  %v2729_v63 = vadd.f32 %v2681_v10, %v2622_v2  ;;  %v1894_v10 = vmul.f32 %v5445_v46, %v1838_v41 }
 0x238   : > { %1700 = vst [vmem:[#allocation2 + $0x1a8] sm:$0xff] %v1640_v9  ;;  %v2783_v6 = vmul.f32 %v5632_v58, %v2728_v24  ;;  %v983_v39 = vadd.f32 3.0, %v923_v61  ;;  %v1895_v15 = vmul.f32 %v5445_v46, %v1839_v59  ;;  %v2046_v9 = vmul.f32 %v5523_v25, %v1990_v44 }
 0x239   : > { %v3028_v51 = vmul.f32 %v2980_v29, %v2836_v36  ;;  %v3029_v27 = vmul.f32 %v2981_v37, %v2837_v52  ;;  %v2784_v30 = vmul.f32 %v5632_v58, %v2729_v63  ;;  %v1942_v7 = vadd.f32 %v1894_v10, %v1790_v43  ;;  %v1580_v63 = vpop.permute.xlu0 %1579 }
 0x23a   : > { %v2838_v1 = vadd.f32 %v5647_v62, %v2783_v6  ;;  %v1043_v5 = vmax.f32 %v983_v39, 0.0  ;;  %v1943_v35 = vadd.f32 %v1895_v15, %v1791_v19  ;;  %v2047_v37 = vmul.f32 %v5523_v25, %v1991_v50 }
 0x23b   : > { %v3076_v4 = vmul.f32 0.16666667, %v3028_v51  ;;  %v3077_v11 = vmul.f32 0.16666667, %v3029_v27  ;;  %v2839_v42 = vadd.f32 %v5647_v62, %v2784_v30  ;;  %v5798_v39 = vadd.f32 %v2046_v9, %v1942_v7  ;;  %v1585_v27 = vpop.permute.xlu1 %1584  ;;  %v1840_v7 = vld [vmem:[#allocation2 + $0x108] sm:$0xff] }
 0x23c   : > { %v2886_v23 = vadd.f32 3.0, %v2838_v1  ;;  %v1103_v54 = vmin.f32 %v1043_v5, 6.0  ;;  %v2150_v51 = vmul.f32 %v5530_v16, %v5783_v12  ;;  %v5803_v5 = vadd.f32 %v2047_v37, %v1943_v35  ;;  %v1993_v37 = vld [vmem:[#allocation2 + $0x111] sm:$0xff] }
 0x23d   : > { %v3115_v36 = vpack.c.bf16 %v3077_v11, %v3076_v4  ;;  %v2887_v52 = vadd.f32 3.0, %v2839_v42  ;;  %v5806_v4 = vmul.f32 %v5530_v16, %v1736_v13  ;;  %v2195_v11 = vadd.f32 %v5696_v57, %v5617_v33 }
 0x23e   : > { %v2934_v21 = vmax.f32 %v2886_v23, 0.0  ;;  %v1163_v40 = vmul.f32 %v1103_v54, %v923_v61  ;;  %v6742_v61 = vld [vmem:[#allocation30_spill] sm:$0xff]  ;;  %v2196_v54 = vadd.f32 %v5745_v38, %v5619_v32  ;;  %v2257_v10 = vmul.f32 %v5554_v0, %v1838_v41 }
 0x23f   : > { %3882 = vmatmul.mubr.bf16.gmra.mrb[16].mxu1 %v3115_v36  ;;  %v2935_v2 = vmax.f32 %v2887_v52, 0.0  ;;  %v2302_v52 = vadd.f32 %v5706_v53, %v2195_v11  ;;  %v5819_v15 = vmul.f32 %v5566_v48, %v1991_v50  ;;  %v2468_v57 = vmul.f32 %v5576_v18, %v5783_v12 }
 0x240   : > { %v2982_v24 = vmin.f32 %v2934_v21, 6.0  ;;  %v1223_v29 = vmul.f32 0.16666667, %v1163_v40  ;;  %v1737_v21 = vld [vmem:[#allocation2 + $0x107] sm:$0xff]  ;;  %v2303_v33 = vadd.f32 %v5758_v45, %v2196_v54  ;;  %v2469_v32 = vmul.f32 %v5576_v18, %v1736_v13  ;;  %v1738_v40 = vld [vmem:[#allocation2 + $0x10f] sm:$0xff] }
 0x241   : > { %v2983_v6 = vmin.f32 %v2935_v2, 6.0  ;;  %v2575_v38 = vmul.f32 %v5585_v56, %v1838_v41  ;;  %v1841_v2 = vld [vmem:[#allocation2 + $0x110] sm:$0xff]  ;;  %v2409_v53 = vadd.f32 %v5712_v20, %v2302_v52  ;;  %v2576_v9 = vmul.f32 %v5585_v56, %v1839_v59 }
 0x242   : > { %v3030_v30 = vmul.f32 %v2982_v24, %v2838_v1  ;;  %v1643_v43 = vmul.f32 %v6742_v61, %v1223_v29  ;;  %v5814_v1 = vmul.f32 %v5554_v0, %v1839_v59  ;;  %v2682_v24 = vmul.f32 %v5595_v49, %v1990_v44  ;;  %v1992_v29 = vld [vmem:[#allocation2 + $0x109] sm:$0xff] }
 0x243   : > { %v3031_v19 = vmul.f32 %v2983_v6, %v2839_v42  ;;  %v2364_v42 = vmul.f32 %v5566_v48, %v1990_v44  ;;  %v2410_v45 = vadd.f32 %v5767_v22, %v2303_v33  ;;  %v2683_v12 = vmul.f32 %v5595_v49, %v1991_v50 }
 0x244   : > { %v3078_v23 = vmul.f32 0.16666667, %v3030_v30  ;;  %1703 = vst [vmem:[#allocation2 + $0x1c0] sm:$0xff] %v1643_v43  ;;  %v857_v13 = vmul.f32 %v5728_v34, %v5400_v60  ;;  %v1792_v41 = vmul.f32 %v5438_v47, %v1737_v21  ;;  %v2516_v63 = vadd.f32 %v2468_v57, %v2409_v53 }
 0x245   : > { %v3079_v36 = vmul.f32 0.16666667, %v3031_v19  ;;  %v1793_v6 = vmul.f32 %v5438_v47, %v1738_v40  ;;  %v1896_v20 = vmul.f32 %v5445_v46, %v1840_v7  ;;  %v1897_v59 = vmul.f32 %v5445_v46, %v1841_v2 }
 0x246   : > { %v2517_v44 = vadd.f32 %v2469_v32, %v2410_v45  ;;  %v924_v27 = vadd.f32 %v5740_v17, %v857_v13  ;;  %v2048_v22 = vmul.f32 %v5523_v25, %v1992_v29  ;;  %v2049_v50 = vmul.f32 %v5523_v25, %v1993_v37 }
 0x247   : > { %v3116_v35 = vpack.c.bf16 %v3079_v36, %v3078_v23  ;;  %v2623_v30 = vadd.f32 %v2575_v38, %v2516_v63  ;;  %v1944_v61 = vadd.f32 %v1896_v20, %v1792_v41  ;;  %v1945_v60 = vadd.f32 %v1897_v59, %v1793_v6  ;;  %v1740_v59 = vld [vmem:[#allocation2 + $0x11f] sm:$0xff] }
 0x248   : > { %v5841_v34 = vmul.f32 %v5530_v16, %v1737_v21  ;;  %v2624_v43 = vadd.f32 %v2576_v9, %v2517_v44  ;;  %v984_v19 = vadd.f32 3.0, %v924_v27  ;;  %v5844_v11 = vmul.f32 %v5530_v16, %v1738_v40 }
 0x249   : > { %3885 = vmatprep.mubr.bf16.mxu1 %v3116_v35  ;;  %v2197_v23 = vadd.f32 %v5748_v3, %v5689_v55  ;;  %v2730_v54 = vadd.f32 %v2682_v24, %v2623_v30  ;;  %v5848_v17 = vadd.f32 %v2048_v22, %v1944_v61  ;;  %v5850_v36 = vadd.f32 %v2049_v50, %v1945_v60  ;;  %v1842_v30 = vld [vmem:[#allocation2 + $0x118] sm:$0xff]  ;;  %v1843_v61 = vld [vmem:[#allocation2 + $0x120] sm:$0xff] }
 0x24a   : > { %v2198_v52 = vadd.f32 %v2150_v51, %v5691_v8  ;;  %v2731_v33 = vadd.f32 %v2683_v12, %v2624_v43  ;;  %v1044_v57 = vmax.f32 %v984_v19, 0.0  ;;  %v5854_v32 = vmul.f32 %v5554_v0, %v1840_v7  ;;  %v1994_v43 = vld [vmem:[#allocation2 + $0x119] sm:$0xff] }
 0x24b   : > { %v5857_v38 = vmul.f32 %v5554_v0, %v1841_v2  ;;  %v2785_v35 = vmul.f32 %v5632_v58, %v2730_v54  ;;  %v2304_v53 = vadd.f32 %v5761_v28, %v2197_v23  ;;  %v5862_v3 = vmul.f32 %v5566_v48, %v1992_v29  ;;  %v1739_v28 = vld [vmem:[#allocation2 + $0x117] sm:$0xff]  ;;  %v1995_v23 = vld [vmem:[#allocation2 + $0x121] sm:$0xff] }
 0x24c   : > { %v2305_v55 = vadd.f32 %v2257_v10, %v2198_v52  ;;  %v2786_v9 = vmul.f32 %v5632_v58, %v2731_v33  ;;  %v1104_v24 = vmin.f32 %v1044_v57, 6.0  ;;  %v5866_v8 = vmul.f32 %v5566_v48, %v1993_v37  ;;  %v6743_v52 = vld [vmem:[#allocation31_spill] sm:$0xff] }
 0x24d   : > { %v2470_v51 = vmul.f32 %v5576_v18, %v1737_v21  ;;  %v2840_v45 = vadd.f32 %v5647_v62, %v2785_v35  ;;  %v2411_v12 = vadd.f32 %v5770_v31, %v2304_v53  ;;  %v2471_v41 = vmul.f32 %v5576_v18, %v1738_v40 }
 0x24e   : > { %v2412_v13 = vadd.f32 %v2364_v42, %v2305_v55  ;;  %v2841_v10 = vadd.f32 %v5647_v62, %v2786_v9  ;;  %v1164_v63 = vmul.f32 %v1104_v24, %v924_v27  ;;  %v2577_v6 = vmul.f32 %v5585_v56, %v1840_v7 }
 0x24f   : > { %v2578_v20 = vmul.f32 %v5585_v56, %v1841_v2  ;;  %v2888_v44 = vadd.f32 3.0, %v2840_v45  ;;  %v2518_v22 = vadd.f32 %v2470_v51, %v2411_v12  ;;  %v2684_v21 = vmul.f32 %v5595_v49, %v1992_v29 }
 0x250   : > { %v2519_v50 = vadd.f32 %v2471_v41, %v2412_v13  ;;  %v2889_v31 = vadd.f32 3.0, %v2841_v10  ;;  %v1224_v42 = vmul.f32 0.16666667, %v1164_v63  ;;  %v2685_v40 = vmul.f32 %v5595_v49, %v1993_v37 }
 0x251   : > { %v1794_v60 = vmul.f32 %v5438_v47, %v1739_v28  ;;  %v2936_v27 = vmax.f32 %v2888_v44, 0.0  ;;  %v2625_v19 = vadd.f32 %v2577_v6, %v2518_v22  ;;  %v1795_v2 = vmul.f32 %v5438_v47, %v1740_v59 }
 0x252   : > { %v2626_v7 = vadd.f32 %v2578_v20, %v2519_v50  ;;  %v2937_v54 = vmax.f32 %v2889_v31, 0.0  ;;  %v1644_v33 = vmul.f32 %v6743_v52, %v1224_v42  ;;  %v1898_v29 = vmul.f32 %v5445_v46, %v1842_v30 }
 0x253   : > { %v1899_v57 = vmul.f32 %v5445_v46, %v1843_v61  ;;  %v2984_v35 = vmin.f32 %v2936_v27, 6.0  ;;  %v2732_v53 = vadd.f32 %v2684_v21, %v2625_v19  ;;  %v2050_v37 = vmul.f32 %v5523_v25, %v1994_v43 }
 0x254   : > { %v2733_v55 = vadd.f32 %v2685_v40, %v2626_v7  ;;  %v2985_v9 = vmin.f32 %v2937_v54, 6.0  ;;  %1704 = vst [vmem:[#allocation2 + $0x1c8] sm:$0xff] %v1644_v33  ;;  %v1946_v24 = vadd.f32 %v1898_v29, %v1794_v60  ;;  %v2051_v12 = vmul.f32 %v5523_v25, %v1995_v23  ;;  %v1741_v29 = vld [vmem:[#allocation2 + $0x127] sm:$0xff] }
 0x255   : > { %v1947_v51 = vadd.f32 %v1899_v57, %v1795_v2  ;;  %v3032_v47 = vmul.f32 %v2984_v35, %v2840_v45  ;;  %v2787_v13 = vmul.f32 %v5632_v58, %v2732_v53  ;;  %v5887_v63 = vmul.f32 %v5530_v16, %v1739_v28  ;;  %v1742_v57 = vld [vmem:[#allocation2 + $0x12f] sm:$0xff] }
 0x256   : > { %v2788_v41 = vmul.f32 %v5632_v58, %v2733_v55  ;;  %v3033_v46 = vmul.f32 %v2985_v9, %v2841_v10  ;;  %v5889_v6 = vadd.f32 %v2050_v37, %v1946_v24  ;;  %v5894_v44 = vmul.f32 %v5530_v16, %v1740_v59  ;;  %v1845_v37 = vld [vmem:[#allocation2 + $0x130] sm:$0xff] }
 0x257   : > { %v5891_v20 = vadd.f32 %v2051_v12, %v1947_v51  ;;  %v3080_v22 = vmul.f32 0.16666667, %v3032_v47  ;;  %v2842_v50 = vadd.f32 %v5647_v62, %v2787_v13  ;;  %v2199_v21 = vadd.f32 %v5806_v4, %v5750_v14  ;;  %v1996_v51 = vld [vmem:[#allocation2 + $0x129] sm:$0xff]  ;;  %v5927_v47 = vld [vmem:[%s6660_s5] ss:$0 sm:$0xff] }
 0x258   : > { %v2843_v45 = vadd.f32 %v5647_v62, %v2788_v41  ;;  %v3081_v31 = vmul.f32 0.16666667, %v3033_v46  ;;  %v2200_v42 = vadd.f32 %v5841_v34, %v5755_v26  ;;  %v5903_v10 = vmul.f32 %v5554_v0, %v1842_v30 }
 0x259   : > { %v5906_v40 = vmul.f32 %v5554_v0, %v1843_v61  ;;  %v2890_v60 = vadd.f32 3.0, %v2842_v50  ;;  %v2306_v19 = vadd.f32 %v5814_v1, %v2199_v21  ;;  %v5910_v7 = vmul.f32 %v5566_v48, %v1994_v43  ;;  %v1844_v1 = vld [vmem:[#allocation2 + $0x128] sm:$0xff] }
 0x25a   : > { %v2891_v27 = vadd.f32 3.0, %v2843_v45  ;;  %v3117_v2 = vpack.c.bf16 %v3081_v31, %v3080_v22  ;;  %v2307_v14 = vadd.f32 %v5854_v32, %v2200_v42  ;;  %v5914_v4 = vmul.f32 %v5566_v48, %v1995_v23 }
 0x25b   : > { %v2472_v26 = vmul.f32 %v5576_v18, %v1739_v28  ;;  %v2938_v34 = vmax.f32 %v2890_v60, 0.0  ;;  %v2413_v52 = vadd.f32 %v5819_v15, %v2306_v19  ;;  %v2473_v33 = vmul.f32 %v5576_v18, %v1740_v59  ;;  %v1997_v59 = vld [vmem:[#allocation2 + $0x131] sm:$0xff] }
 0x25c   : > { %v2939_v54 = vmax.f32 %v2891_v27, 0.0  ;;  %3886 = vmatmul.mubr.bf16.gmra.mrb[20].mxu1 %v3117_v2  ;;  %v2414_v35 = vadd.f32 %v5862_v3, %v2307_v14  ;;  %v2579_v53 = vmul.f32 %v5585_v56, %v1842_v30  ;;  %v2580_v32 = vmul.f32 %v5585_v56, %v1843_v61  ;;  %v5934_v61 = vld [vmem:[%s6660_s5 + $0x1] ss:$0 sm:$0xff] }
 0x25d   : > { %v2686_v55 = vmul.f32 %v5595_v49, %v1994_v43  ;;  %v2986_v28 = vmin.f32 %v2938_v34, 6.0  ;;  %v2520_v24 = vadd.f32 %v2472_v26, %v2413_v52  ;;  %v2687_v15 = vmul.f32 %v5595_v49, %v1995_v23 }
 0x25e   : > { %v2987_v9 = vmin.f32 %v2939_v54, 6.0  ;;  %v2521_v12 = vadd.f32 %v2473_v33, %v2414_v35  ;;  %v1796_v3 = vmul.f32 %v5927_v47, %v1741_v29  ;;  %v1797_v30 = vmul.f32 %v5927_v47, %v1742_v57 }
 0x25f   : > { %v1900_v43 = vmul.f32 %v5934_v61, %v1844_v1  ;;  %v3034_v23 = vmul.f32 %v2986_v28, %v2842_v50  ;;  %v2627_v41 = vadd.f32 %v2579_v53, %v2520_v24  ;;  %v1901_v46 = vmul.f32 %v5934_v61, %v1845_v37  ;;  %v1744_v24 = vld [vmem:[#allocation2 + $0x13f] sm:$0xff] }
 0x260   : > { %v3035_v13 = vmul.f32 %v2987_v9, %v2843_v45  ;;  %v2628_v22 = vadd.f32 %v2580_v32, %v2521_v12  ;;  %v2052_v31 = vmul.f32 %v5523_v25, %v1996_v51  ;;  %v2053_v42 = vmul.f32 %v5523_v25, %v1997_v59  ;;  %v1743_v9 = vld [vmem:[#allocation2 + $0x137] sm:$0xff] }
 0x261   : > { %v1948_v21 = vadd.f32 %v1900_v43, %v1796_v3  ;;  %v3082_v60 = vmul.f32 0.16666667, %v3034_v23  ;;  %v2734_v19 = vadd.f32 %v2686_v55, %v2627_v41  ;;  %v1949_v2 = vadd.f32 %v1901_v46, %v1797_v30  ;;  %v5973_v30 = vld [vmem:[#allocation2 + $0x138] sm:$0xff]  ;;  %v5980_v23 = vld [vmem:[#allocation2 + $0x141] sm:$0xff] }
 0x262   : > { %v3083_v27 = vmul.f32 0.16666667, %v3035_v13  ;;  %v2735_v14 = vadd.f32 %v2687_v15, %v2628_v22  ;;  %v2156_v34 = vmul.f32 %v5530_v16, %v1741_v29  ;;  %v5944_v50 = vmul.f32 %v5530_v16, %v1742_v57 }
 0x263   : > { %v5940_v26 = vadd.f32 %v2052_v31, %v1948_v21  ;;  %v2789_v54 = vmul.f32 %v5632_v58, %v2734_v19  ;;  %v5947_v52 = vadd.f32 %v2053_v42, %v1949_v2  ;;  %v2201_v25 = vadd.f32 %v5844_v11, %v5798_v39 }
 0x264   : > { %v3118_v45 = vpack.c.bf16 %v3083_v27, %v3082_v60  ;;  %v2790_v33 = vmul.f32 %v5632_v58, %v2735_v14  ;;  %v2202_v35 = vadd.f32 %v5887_v63, %v5803_v5  ;;  %v2263_v53 = vmul.f32 %v5554_v0, %v1844_v1  ;;  %v5999_v14 = vld [vmem:[%s6660_s5 + $0x3] ss:$0 sm:$0xff] }
 0x265   : > { %v5956_v32 = vmul.f32 %v5554_v0, %v1845_v37  ;;  %v2844_v16 = vadd.f32 %v5647_v62, %v2789_v54  ;;  %v2308_v55 = vadd.f32 %v5857_v38, %v2201_v25  ;;  %v5961_v28 = vmul.f32 %v5566_v48, %v1996_v51 }
 0x266   : > { %3889 = vmatprep.mubr.bf16.mxu1 %v3118_v45  ;;  %v5964_v39 = vmul.f32 %v5566_v48, %v1997_v59  ;;  %v2845_v11 = vadd.f32 %v5647_v62, %v2790_v33  ;;  %v2309_v5 = vadd.f32 %v5903_v10, %v2202_v35  ;;  %v2474_v63 = vmul.f32 %v5576_v18, %v1741_v29  ;;  %v5975_v48 = vld [vmem:[#allocation2 + $0x140] sm:$0xff] }
 0x267   : > { %v2475_v0 = vmul.f32 %v5576_v18, %v1742_v57  ;;  %v2892_v15 = vadd.f32 3.0, %v2844_v16  ;;  %v2415_v12 = vadd.f32 %v5866_v8, %v2308_v55  ;;  %v2581_v38 = vmul.f32 %v5585_v56, %v1844_v1  ;;  %v1998_v57 = vld [vmem:[#allocation2 + $0x139] sm:$0xff] }
 0x268   : > { %v2582_v3 = vmul.f32 %v5585_v56, %v1845_v37  ;;  %v2893_v43 = vadd.f32 3.0, %v2845_v11  ;;  %v2416_v10 = vadd.f32 %v5910_v7, %v2309_v5  ;;  %v2688_v29 = vmul.f32 %v5595_v49, %v1996_v51 }
 0x269   : > { %v2689_v18 = vmul.f32 %v5595_v49, %v1997_v59  ;;  %v2940_v13 = vmax.f32 %v2892_v15, 0.0  ;;  %v2522_v8 = vadd.f32 %v2474_v63, %v2415_v12  ;;  %v1798_v1 = vmul.f32 %v5927_v47, %v1743_v9  ;;  %v5991_v49 = vld [vmem:[%s6660_s5 + $0x2] ss:$0 sm:$0xff] }
 0x26a   : > { %v1799_v56 = vmul.f32 %v5927_v47, %v1744_v24  ;;  %v2941_v37 = vmax.f32 %v2893_v43, 0.0  ;;  %v2523_v41 = vadd.f32 %v2475_v0, %v2416_v10  ;;  %v1902_v46 = vmul.f32 %v5934_v61, %v5973_v30 }
 0x26b   : > { %v1903_v7 = vmul.f32 %v5934_v61, %v5975_v48  ;;  %v2988_v51 = vmin.f32 %v2940_v13, 6.0  ;;  %v2629_v22 = vadd.f32 %v2581_v38, %v2522_v8  ;;  %v2054_v59 = vmul.f32 %v5991_v49, %v1998_v57 }
 0x26c   : > { %v2055_v21 = vmul.f32 %v5991_v49, %v5980_v23  ;;  %v2989_v31 = vmin.f32 %v2941_v37, 6.0  ;;  %v2630_v42 = vadd.f32 %v2582_v3, %v2523_v41  ;;  %v1950_v60 = vadd.f32 %v1902_v46, %v1798_v1  ;;  %v1848_v37 = vld [vmem:[#allocation2 + $0x148] sm:$0xff]  ;;  %v6056_v46 = vld [vmem:[%s6660_s5 + $0x7] ss:$0 sm:$0xff] }
 0x26d   : > { %v1951_v27 = vadd.f32 %v1903_v7, %v1799_v56  ;;  %v3036_v19 = vmul.f32 %v2988_v51, %v2844_v16  ;;  %v2736_v2 = vadd.f32 %v2688_v29, %v2629_v22  ;;  %v6002_v45 = vmul.f32 %v5999_v14, %v1743_v9  ;;  %v1745_v56 = vld [vmem:[#allocation2 + $0x147] sm:$0xff]  ;;  %v1849_v7 = vld [vmem:[#allocation2 + $0x150] sm:$0xff] }
 0x26e   : > { %v6005_v54 = vmul.f32 %v5999_v14, %v1744_v24  ;;  %v3037_v25 = vmul.f32 %v2989_v31, %v2845_v11  ;;  %v2737_v33 = vadd.f32 %v2689_v18, %v2630_v42  ;;  %v6007_v35 = vadd.f32 %v2054_v59, %v1950_v60  ;;  %v6019_v11 = vld [vmem:[%s6660_s5 + $0x4] ss:$0 sm:$0xff]  ;;  %v2000_v31 = vld [vmem:[#allocation2 + $0x149] sm:$0xff]  ;;  %v2001_v42 = vld [vmem:[#allocation2 + $0x151] sm:$0xff] }
 0x26f   : > { %v6009_v55 = vadd.f32 %v2055_v21, %v1951_v27  ;;  %v3084_v5 = vmul.f32 0.16666667, %v3036_v19  ;;  %v2791_v16 = vmul.f32 %v5632_v58, %v2736_v2  ;;  %v2203_v63 = vadd.f32 %v5894_v44, %v5848_v17 }
 0x270   : > { %v2204_v0 = vadd.f32 %v2156_v34, %v5850_v36  ;;  %v3085_v15 = vmul.f32 0.16666667, %v3037_v25  ;;  %v2792_v12 = vmul.f32 %v5632_v58, %v2737_v33  ;;  %v6023_v38 = vmul.f32 %v6019_v11, %v5973_v30  ;;  %v6034_v58 = vld [vmem:[%s6660_s5 + $0x5] ss:$0 sm:$0xff] }
 0x271   : > { %v6027_v3 = vmul.f32 %v6019_v11, %v5975_v48  ;;  %v2846_v17 = vadd.f32 %v5647_v62, %v2791_v16  ;;  %v2310_v36 = vadd.f32 %v5906_v40, %v2203_v63  ;;  %v6037_v34 = vmul.f32 %v6034_v58, %v1998_v57  ;;  %v6047_v40 = vld [vmem:[%s6660_s5 + $0x6] ss:$0 sm:$0xff] }
 0x272   : > { %v2311_v44 = vadd.f32 %v2263_v53, %v2204_v0  ;;  %v3119_v43 = vpack.c.bf16 %v3085_v15, %v3084_v5  ;;  %v2847_v10 = vadd.f32 %v5647_v62, %v2792_v12  ;;  %v6042_v29 = vmul.f32 %v6034_v58, %v5980_v23  ;;  %v1746_v62 = vld [vmem:[#allocation2 + $0x14f] sm:$0xff] }
 0x273   : > { %v2476_v53 = vmul.f32 %v6047_v40, %v1743_v9  ;;  %v2894_v18 = vadd.f32 3.0, %v2846_v17  ;;  %v2417_v13 = vadd.f32 %v5914_v4, %v2310_v36  ;;  %v2477_v1 = vmul.f32 %v6047_v40, %v1744_v24 }
 0x274   : > { %v2418_v8 = vadd.f32 %v5961_v28, %v2311_v44  ;;  %3890 = vmatmul.mubr.bf16.gmra.mrb[24].mxu1 %v3119_v43  ;;  %v2895_v41 = vadd.f32 3.0, %v2847_v10  ;;  %v2583_v9 = vmul.f32 %v6056_v46, %v5973_v30  ;;  %v2584_v4 = vmul.f32 %v6056_v46, %v5975_v48  ;;  %v6065_v28 = vld [vmem:[%s6660_s5 + $0x8] ss:$0 sm:$0xff] }
 0x275   : > { %v2690_v24 = vmul.f32 %v6065_v28, %v1998_v57  ;;  %v2942_v51 = vmax.f32 %v2894_v18, 0.0  ;;  %v2524_v22 = vadd.f32 %v2476_v53, %v2417_v13  ;;  %v2691_v21 = vmul.f32 %v6065_v28, %v5980_v23  ;;  %v6087_v13 = vld [vmem:[%s6661_s6] ss:$0 sm:$0xff] }
 0x276   : > { %v2525_v59 = vadd.f32 %v2477_v1, %v2418_v8  ;;  %v2943_v30 = vmax.f32 %v2895_v41, 0.0  ;;  %v1800_v60 = vmul.f32 %v5927_v47, %v1745_v56  ;;  %v1801_v48 = vmul.f32 %v5927_v47, %v1746_v62 }
 0x277   : > { %v1904_v27 = vmul.f32 %v5934_v61, %v1848_v37  ;;  %v2990_v19 = vmin.f32 %v2942_v51, 6.0  ;;  %v2631_v2 = vadd.f32 %v2583_v9, %v2524_v22  ;;  %v1905_v57 = vmul.f32 %v5934_v61, %v1849_v7 }
 0x278   : > { %v2632_v25 = vadd.f32 %v2584_v4, %v2525_v59  ;;  %v2991_v33 = vmin.f32 %v2943_v30, 6.0  ;;  %v2056_v16 = vmul.f32 %v5991_v49, %v2000_v31  ;;  %v2057_v23 = vmul.f32 %v5991_v49, %v2001_v42 }
 0x279   : > { %v1952_v5 = vadd.f32 %v1904_v27, %v1800_v60  ;;  %v3038_v63 = vmul.f32 %v2990_v19, %v2846_v17  ;;  %v2738_v0 = vadd.f32 %v2690_v24, %v2631_v2  ;;  %v1953_v12 = vadd.f32 %v1905_v57, %v1801_v48  ;;  %v6103_v24 = vld [vmem:[%s6662_s7] ss:$0 sm:$0xff]  ;;  %v1747_v19 = vld [vmem:[#allocation2 + $0x157] sm:$0xff] }
 0x27a   : > { %v2739_v15 = vadd.f32 %v2691_v21, %v2632_v25  ;;  %v3039_v36 = vmul.f32 %v2991_v33, %v2847_v10  ;;  %v6079_v43 = vmul.f32 %v5999_v14, %v1745_v56  ;;  %v6082_v53 = vmul.f32 %v5999_v14, %v1746_v62  ;;  %v1748_v2 = vld [vmem:[#allocation2 + $0x15f] sm:$0xff] }
 0x27b   : > { %v6076_v44 = vadd.f32 %v2056_v16, %v1952_v5  ;;  %v3086_v18 = vmul.f32 0.16666667, %v3038_v63  ;;  %v2793_v17 = vmul.f32 %v6087_v13, %v2738_v0  ;;  %v6091_v1 = vadd.f32 %v2057_v23, %v1953_v12  ;;  %v1850_v33 = vld [vmem:[#allocation2 + $0x158] sm:$0xff]  ;;  %v1851_v5 = vld [vmem:[#allocation2 + $0x160] sm:$0xff] }
 0x27c   : > { %v2794_v8 = vmul.f32 %v6087_v13, %v2739_v15  ;;  %v3087_v10 = vmul.f32 0.16666667, %v3039_v36  ;;  %v2205_v41 = vadd.f32 %v5944_v50, %v5889_v6  ;;  %v2206_v9 = vadd.f32 %v6002_v45, %v5891_v20  ;;  %v2003_v0 = vld [vmem:[#allocation2 + $0x161] sm:$0xff] }
 0x27d   : > { %v6098_v4 = vmul.f32 %v6019_v11, %v1848_v37  ;;  %v2848_v51 = vadd.f32 %v6103_v24, %v2793_v17  ;;  %v6108_v59 = vmul.f32 %v6019_v11, %v1849_v7  ;;  %v6111_v6 = vmul.f32 %v6034_v58, %v2000_v31 }
 0x27e   : > { %v2849_v22 = vadd.f32 %v6103_v24, %v2794_v8  ;;  %v3120_v50 = vpack.c.bf16 %v3087_v10, %v3086_v18  ;;  %v2312_v20 = vadd.f32 %v5956_v32, %v2205_v41  ;;  %v2313_v45 = vadd.f32 %v6023_v38, %v2206_v9 }
 0x27f   : > { %v6116_v21 = vmul.f32 %v6034_v58, %v2001_v42  ;;  %v2896_v30 = vadd.f32 3.0, %v2848_v51  ;;  %v2478_v48 = vmul.f32 %v6047_v40, %v1745_v56  ;;  %v2479_v27 = vmul.f32 %v6047_v40, %v1746_v62  ;;  %v2002_v62 = vld [vmem:[#allocation2 + $0x159] sm:$0xff] }
 0x280   : > { %v2897_v60 = vadd.f32 3.0, %v2849_v22  ;;  %3893 = vmatprep.mubr.bf16.mxu1 %v3120_v50  ;;  %v2419_v25 = vadd.f32 %v5964_v39, %v2312_v20  ;;  %v2420_v57 = vadd.f32 %v6037_v34, %v2313_v45  ;;  %v2585_v32 = vmul.f32 %v6056_v46, %v1848_v37 }
 0x281   : > { %v2586_v38 = vmul.f32 %v6056_v46, %v1849_v7  ;;  %v2944_v16 = vmax.f32 %v2896_v30, 0.0  ;;  %v2692_v63 = vmul.f32 %v6065_v28, %v2000_v31  ;;  %v2693_v56 = vmul.f32 %v6065_v28, %v2001_v42 }
 0x282   : > { %v2945_v23 = vmax.f32 %v2897_v60, 0.0  ;;  %v2526_v15 = vadd.f32 %v2478_v48, %v2419_v25  ;;  %v2527_v12 = vadd.f32 %v2479_v27, %v2420_v57  ;;  %v1802_v39 = vmul.f32 %v5927_v47, %v1747_v19 }
 0x283   : > { %v1803_v34 = vmul.f32 %v5927_v47, %v1748_v2  ;;  %v2992_v36 = vmin.f32 %v2944_v16, 6.0  ;;  %v1906_v7 = vmul.f32 %v5934_v61, %v1850_v33  ;;  %v1907_v18 = vmul.f32 %v5934_v61, %v1851_v5 }
 0x284   : > { %v2993_v37 = vmin.f32 %v2945_v23, 6.0  ;;  %v2633_v17 = vadd.f32 %v2585_v32, %v2526_v15  ;;  %v2634_v8 = vadd.f32 %v2586_v38, %v2527_v12  ;;  %v2058_v31 = vmul.f32 %v5991_v49, %v2002_v62 }
 0x285   : > { %v2059_v42 = vmul.f32 %v5991_v49, %v2003_v0  ;;  %v3040_v10 = vmul.f32 %v2992_v36, %v2848_v51  ;;  %v1954_v9 = vadd.f32 %v1906_v7, %v1802_v39  ;;  %v1955_v50 = vadd.f32 %v1907_v18, %v1803_v34 }
 0x286   : > { %v3041_v41 = vmul.f32 %v2993_v37, %v2849_v22  ;;  %v2740_v20 = vadd.f32 %v2692_v63, %v2633_v17  ;;  %v2741_v45 = vadd.f32 %v2693_v56, %v2634_v8  ;;  %v6133_v30 = vmul.f32 %v5999_v14, %v1747_v19  ;;  %v6167_v37 = vld [vmem:[#allocation2 + $0x170] sm:$0xff]  ;;  %v1852_v8 = vld [vmem:[#allocation2 + $0x168] sm:$0xff] }
 0x287   : > { %v6136_v60 = vmul.f32 %v5999_v14, %v1748_v2  ;;  %v3088_v48 = vmul.f32 0.16666667, %v3040_v10  ;;  %v6138_v25 = vadd.f32 %v2058_v31, %v1954_v9  ;;  %v6140_v57 = vadd.f32 %v2059_v42, %v1955_v50  ;;  %v2004_v31 = vld [vmem:[#allocation2 + $0x169] sm:$0xff] }
 0x288   : > { %v3089_v27 = vmul.f32 0.16666667, %v3041_v41  ;;  %v2795_v32 = vmul.f32 %v6087_v13, %v2740_v20  ;;  %v2796_v51 = vmul.f32 %v6087_v13, %v2741_v45  ;;  %v2207_v22 = vadd.f32 %v6005_v54, %v5940_v26  ;;  %v1749_v54 = vld [vmem:[#allocation2 + $0x167] sm:$0xff] }
 0x289   : > { %v2208_v38 = vadd.f32 %v6079_v43, %v5947_v52  ;;  %v6149_v23 = vmul.f32 %v6019_v11, %v1850_v33  ;;  %v6152_v63 = vmul.f32 %v6019_v11, %v1851_v5  ;;  %v6155_v56 = vmul.f32 %v6034_v58, %v2002_v62 }
 0x28a   : > { %v3121_v16 = vpack.c.bf16 %v3089_v27, %v3088_v48  ;;  %v2850_v15 = vadd.f32 %v6103_v24, %v2795_v32  ;;  %v2851_v12 = vadd.f32 %v6103_v24, %v2796_v51  ;;  %v2314_v39 = vadd.f32 %v6027_v3, %v2207_v22 }
 0x28b   : > { %v2315_v26 = vadd.f32 %v6098_v4, %v2208_v38  ;;  %v6162_v52 = vmul.f32 %v6034_v58, %v2003_v0  ;;  %v2480_v43 = vmul.f32 %v6047_v40, %v1747_v19  ;;  %v2481_v34 = vmul.f32 %v6047_v40, %v1748_v2  ;;  %v1750_v4 = vld [vmem:[#allocation2 + $0x16f] sm:$0xff] }
 0x28c   : > { %3894 = vmatmul.mubr.bf16.gmra.mrb[28].mxu1 %v3121_v16  ;;  %v2587_v36 = vmul.f32 %v6056_v46, %v1850_v33  ;;  %v2898_v7 = vadd.f32 3.0, %v2850_v15  ;;  %v2899_v18 = vadd.f32 3.0, %v2851_v12  ;;  %v2421_v17 = vadd.f32 %v6042_v29, %v2314_v39  ;;  %v2005_v29 = vld [vmem:[#allocation2 + $0x171] sm:$0xff] }
 0x28d   : > { %v2422_v3 = vadd.f32 %v6111_v6, %v2315_v26  ;;  %v2588_v42 = vmul.f32 %v6056_v46, %v1851_v5  ;;  %v2694_v10 = vmul.f32 %v6065_v28, %v2002_v62  ;;  %v2695_v19 = vmul.f32 %v6065_v28, %v2003_v0 }
 0x28e   : > { %v1804_v2 = vmul.f32 %v5927_v47, %v1749_v54  ;;  %v2946_v41 = vmax.f32 %v2898_v7, 0.0  ;;  %v2947_v9 = vmax.f32 %v2899_v18, 0.0  ;;  %v2528_v50 = vadd.f32 %v2480_v43, %v2421_v17 }
 0x28f   : > { %v2529_v20 = vadd.f32 %v2481_v34, %v2422_v3  ;;  %v1805_v6 = vmul.f32 %v5927_v47, %v1750_v4  ;;  %v1908_v48 = vmul.f32 %v5934_v61, %v1852_v8  ;;  %v1909_v5 = vmul.f32 %v5934_v61, %v6167_v37 }
 0x290   : > { %v2060_v62 = vmul.f32 %v5991_v49, %v2004_v31  ;;  %v2994_v27 = vmin.f32 %v2946_v41, 6.0  ;;  %v2995_v32 = vmin.f32 %v2947_v9, 6.0  ;;  %v2635_v51 = vadd.f32 %v2587_v36, %v2528_v50 }
 0x291   : > { %v6175_v33 = vpop.f32.mrb[0].mxu1  ;;  %v2636_v22 = vadd.f32 %v2588_v42, %v2529_v20  ;;  %v1956_v16 = vadd.f32 %v1908_v48, %v1804_v2  ;;  %v1957_v39 = vadd.f32 %v1909_v5, %v1805_v6  ;;  %v2061_v26 = vmul.f32 %v5991_v49, %v2005_v29 }
 0x292   : > { %v6177_v45 = vpop.f32.mrb[1].mxu1  ;;  %v6190_v43 = vmul.f32 %v5999_v14, %v1749_v54  ;;  %v3042_v34 = vmul.f32 %v2994_v27, %v2850_v15  ;;  %v3043_v7 = vmul.f32 %v2995_v32, %v2851_v12  ;;  %v2742_v18 = vadd.f32 %v2694_v10, %v2635_v51 }
 0x293   : > { %v6184_v0 = vpop.f32.mrb[2].mxu1  ;;  %v2743_v17 = vadd.f32 %v2695_v19, %v2636_v22  ;;  %v6192_v3 = vadd.f32 %v2060_v62, %v1956_v16  ;;  %v6197_v36 = vmul.f32 %v5999_v14, %v1750_v4  ;;  %v2209_v42 = vadd.f32 %v6082_v53, %v6007_v35  ;;  %v1751_v62 = vld [vmem:[#allocation2 + $0x177] sm:$0xff]  ;;  %v1752_v22 = vld [vmem:[#allocation2 + $0x17f] sm:$0xff] }
 0x294   : > { %6744 = vst [vmem:[#allocation14_spill] sm:$0xff] %v6184_v0  ;;  %v6186_v38 = vpop.f32.mrb[3].mxu1  ;;  %v6194_v0 = vadd.f32 %v2061_v26, %v1957_v39  ;;  %v3090_v2 = vmul.f32 0.16666667, %v3042_v34  ;;  %v3091_v41 = vmul.f32 0.16666667, %v3043_v7  ;;  %v2797_v9 = vmul.f32 %v6087_v13, %v2742_v18 }
 0x295   : > { %v2798_v50 = vmul.f32 %v6087_v13, %v2743_v17  ;;  %v2210_v15 = vadd.f32 %v6133_v30, %v6009_v55  ;;  %v6206_v12 = vmul.f32 %v6019_v11, %v1852_v8  ;;  %v6210_v10 = vmul.f32 %v6019_v11, %v6167_v37  ;;  %v1854_v16 = vld [vmem:[#allocation2 + $0x178] sm:$0xff]  ;;  %v1855_v34 = vld [vmem:[#allocation2 + $0x180] sm:$0xff] }
 0x296   : > { %v2316_v19 = vadd.f32 %v6108_v59, %v2209_v42  ;;  %v3122_v20 = vpack.c.bf16 %v3091_v41, %v3090_v2  ;;  %v2852_v35 = vadd.f32 %v6103_v24, %v2797_v9  ;;  %v6216_v6 = vmul.f32 %v6034_v58, %v2004_v31  ;;  %v2007_v42 = vld [vmem:[#allocation2 + $0x181] sm:$0xff] }
 0x297   : > { %v2853_v53 = vadd.f32 %v6103_v24, %v2798_v50  ;;  %v2317_v48 = vadd.f32 %v6149_v23, %v2210_v15  ;;  %v6220_v55 = vmul.f32 %v6034_v58, %v2005_v29  ;;  %v2482_v5 = vmul.f32 %v6047_v40, %v1749_v54  ;;  %v2006_v54 = vld [vmem:[#allocation2 + $0x179] sm:$0xff] }
 0x298   : > { %v2423_v30 = vadd.f32 %v6116_v21, %v2316_v19  ;;  %3897 = vmatprep.mubr.bf16.mxu1 %v3122_v20  ;;  %v2900_v59 = vadd.f32 3.0, %v2852_v35  ;;  %v2483_v32 = vmul.f32 %v6047_v40, %v1750_v4  ;;  %v2589_v51 = vmul.f32 %v6056_v46, %v1852_v8 }
 0x299   : > { %v2901_v27 = vadd.f32 3.0, %v2853_v53  ;;  %v2424_v39 = vadd.f32 %v6155_v56, %v2317_v48  ;;  %v2590_v26 = vmul.f32 %v6056_v46, %v6167_v37  ;;  %v2696_v21 = vmul.f32 %v6065_v28, %v2004_v31 }
 0x29a   : > { %v2530_v23 = vadd.f32 %v2482_v5, %v2423_v30  ;;  %v2948_v7 = vmax.f32 %v2900_v59, 0.0  ;;  %v2697_v17 = vmul.f32 %v6065_v28, %v2005_v29  ;;  %v1806_v4 = vmul.f32 %v5927_v47, %v1751_v62 }
 0x29b   : > { %v2949_v18 = vmax.f32 %v2901_v27, 0.0  ;;  %v2531_v8 = vadd.f32 %v2483_v32, %v2424_v39  ;;  %v1807_v41 = vmul.f32 %v5927_v47, %v1752_v22  ;;  %v1910_v56 = vmul.f32 %v5934_v61, %v1854_v16 }
 0x29c   : > { %v2637_v2 = vadd.f32 %v2589_v51, %v2530_v23  ;;  %v2996_v9 = vmin.f32 %v2948_v7, 6.0  ;;  %v1911_v37 = vmul.f32 %v5934_v61, %v1855_v34  ;;  %v2062_v31 = vmul.f32 %v5991_v49, %v2006_v54 }
 0x29d   : > { %v2997_v50 = vmin.f32 %v2949_v18, 6.0  ;;  %v2638_v15 = vadd.f32 %v2590_v26, %v2531_v8  ;;  %v1958_v20 = vadd.f32 %v1910_v56, %v1806_v4  ;;  %v2063_v29 = vmul.f32 %v5991_v49, %v2007_v42 }
 0x29e   : > { %v2744_v19 = vadd.f32 %v2696_v21, %v2637_v2  ;;  %v3044_v48 = vmul.f32 %v2996_v9, %v2852_v35  ;;  %v1959_v5 = vadd.f32 %v1911_v37, %v1807_v41  ;;  %v6238_v59 = vmul.f32 %v5999_v14, %v1751_v62 }
 0x29f   : > { %v3045_v30 = vmul.f32 %v2997_v50, %v2853_v53  ;;  %v2745_v27 = vadd.f32 %v2697_v17, %v2638_v15  ;;  %v6241_v51 = vadd.f32 %v2062_v31, %v1958_v20  ;;  %v6244_v39 = vmul.f32 %v5999_v14, %v1752_v22  ;;  %v1754_v31 = vld [vmem:[#allocation2 + $0x18f] sm:$0xff] }
 0x2a0   : > { %v2799_v32 = vmul.f32 %v6087_v13, %v2744_v19  ;;  %v3092_v23 = vmul.f32 0.16666667, %v3044_v48  ;;  %v6246_v21 = vadd.f32 %v2063_v29, %v1959_v5  ;;  %v2211_v35 = vadd.f32 %v6136_v60, %v6076_v44  ;;  %v1856_v29 = vld [vmem:[#allocation2 + $0x188] sm:$0xff]  ;;  %v1857_v48 = vld [vmem:[#allocation2 + $0x190] sm:$0xff] }
 0x2a1   : > { %v3093_v26 = vmul.f32 0.16666667, %v3045_v30  ;;  %v2800_v53 = vmul.f32 %v6087_v13, %v2745_v27  ;;  %v2212_v18 = vadd.f32 %v6190_v43, %v6091_v1  ;;  %v6255_v17 = vmul.f32 %v6019_v11, %v1854_v16  ;;  %v1753_v1 = vld [vmem:[#allocation2 + $0x187] sm:$0xff] }
 0x2a2   : > { %v2854_v7 = vadd.f32 %v6103_v24, %v2799_v32  ;;  %v6258_v8 = vmul.f32 %v6019_v11, %v1855_v34  ;;  %v2318_v2 = vadd.f32 %v6152_v63, %v2211_v35  ;;  %v6262_v41 = vmul.f32 %v6034_v58, %v2006_v54  ;;  %v2008_v30 = vld [vmem:[#allocation2 + $0x189] sm:$0xff] }
 0x2a3   : > { %v3123_v4 = vpack.c.bf16 %v3093_v26, %v3092_v23  ;;  %v2855_v44 = vadd.f32 %v6103_v24, %v2800_v53  ;;  %v2319_v56 = vadd.f32 %v6206_v12, %v2212_v18  ;;  %v6267_v9 = vmul.f32 %v6034_v58, %v2007_v42 }
 0x2a4   : > { %v2902_v60 = vadd.f32 3.0, %v2854_v7  ;;  %v2425_v43 = vadd.f32 %v6162_v52, %v2318_v2  ;;  %v2484_v50 = vmul.f32 %v6047_v40, %v1751_v62  ;;  %v2485_v37 = vmul.f32 %v6047_v40, %v1752_v22  ;;  %v2009_v22 = vld [vmem:[#allocation2 + $0x191] sm:$0xff] }
 0x2a5   : > { %3898 = vmatmul.mubr.bf16.gmra.mrb[32].mxu1 %v3123_v4  ;;  %v2591_v63 = vmul.f32 %v6056_v46, %v1854_v16  ;;  %v2903_v15 = vadd.f32 3.0, %v2855_v44  ;;  %v2426_v20 = vadd.f32 %v6216_v6, %v2319_v56  ;;  %v2592_v12 = vmul.f32 %v6056_v46, %v1855_v34 }
 0x2a6   : > { %v2950_v19 = vmax.f32 %v2902_v60, 0.0  ;;  %v2532_v5 = vadd.f32 %v2484_v50, %v2425_v43  ;;  %v2698_v27 = vmul.f32 %v6065_v28, %v2006_v54  ;;  %v2699_v52 = vmul.f32 %v6065_v28, %v2007_v42 }
 0x2a7   : > { %v1808_v62 = vmul.f32 %v5927_v47, %v1753_v1  ;;  %v2951_v32 = vmax.f32 %v2903_v15, 0.0  ;;  %v2533_v23 = vadd.f32 %v2485_v37, %v2426_v20  ;;  %v1809_v26 = vmul.f32 %v5927_v47, %v1754_v31 }
 0x2a8   : > { %v2998_v16 = vmin.f32 %v2950_v19, 6.0  ;;  %v2639_v35 = vadd.f32 %v2591_v63, %v2532_v5  ;;  %v1912_v6 = vmul.f32 %v5934_v61, %v1856_v29  ;;  %v1913_v34 = vmul.f32 %v5934_v61, %v1857_v48 }
 0x2a9   : > { %v2064_v53 = vmul.f32 %v5991_v49, %v2008_v30  ;;  %v2999_v18 = vmin.f32 %v2951_v32, 6.0  ;;  %v2640_v54 = vadd.f32 %v2592_v12, %v2533_v23  ;;  %v2065_v42 = vmul.f32 %v5991_v49, %v2009_v22 }
 0x2aa   : > { %v3046_v4 = vmul.f32 %v2998_v16, %v2854_v7  ;;  %v2746_v2 = vadd.f32 %v2698_v27, %v2639_v35  ;;  %v1960_v60 = vadd.f32 %v1912_v6, %v1808_v62  ;;  %v1961_v56 = vadd.f32 %v1913_v34, %v1809_v26 }
 0x2ab   : > { %v2168_v43 = vmul.f32 %v5999_v14, %v1753_v1  ;;  %v3047_v50 = vmul.f32 %v2999_v18, %v2855_v44  ;;  %v2747_v47 = vadd.f32 %v2699_v52, %v2640_v54  ;;  %v6285_v63 = vmul.f32 %v5999_v14, %v1754_v31  ;;  %v2115_v18 = vld [vmem:[#allocation2 + $0x19f] sm:$0xff] }
 0x2ac   : > { %v3094_v37 = vmul.f32 0.16666667, %v3046_v4  ;;  %v2801_v61 = vmul.f32 %v6087_v13, %v2746_v2  ;;  %v6288_v15 = vadd.f32 %v2064_v53, %v1960_v60  ;;  %v6290_v19 = vadd.f32 %v2065_v42, %v1961_v56  ;;  %v2114_v53 = vld [vmem:[#allocation2 + $0x197] sm:$0xff] }
 0x2ad   : > { %v2213_v49 = vadd.f32 %v6197_v36, %v6138_v25  ;;  %v3095_v20 = vmul.f32 0.16666667, %v3047_v50  ;;  %v2802_v12 = vmul.f32 %v6087_v13, %v2747_v47  ;;  %v2214_v44 = vadd.f32 %v6238_v59, %v6140_v57  ;;  %v2221_v50 = vld [vmem:[#allocation2 + $0x198] sm:$0xff] }
 0x2ae   : > { %v2275_v5 = vmul.f32 %v6019_v11, %v1856_v29  ;;  %v2856_v52 = vadd.f32 %v6103_v24, %v2801_v61  ;;  %v6304_v62 = vmul.f32 %v6019_v11, %v1857_v48  ;;  %v2382_v25 = vmul.f32 %v6034_v58, %v2008_v30 }
 0x2af   : > { %v2320_v32 = vadd.f32 %v6210_v10, %v2213_v49  ;;  %v3124_v16 = vpack.c.bf16 %v3095_v20, %v3094_v37  ;;  %v2857_v23 = vadd.f32 %v6103_v24, %v2802_v12  ;;  %v2321_v57 = vadd.f32 %v6255_v17, %v2214_v44  ;;  %v2328_v20 = vld [vmem:[#allocation2 + $0x199] sm:$0xff] }
 0x2b0   : > { %v6294_v7 = vpop.f32.mrb[4].mxu1  ;;  %v6313_v59 = vmul.f32 %v6034_v58, %v2009_v22  ;;  %v2904_v35 = vadd.f32 3.0, %v2856_v52  ;;  %v2486_v34 = vmul.f32 %v6047_v40, %v1753_v1  ;;  %v2487_v10 = vmul.f32 %v6047_v40, %v1754_v31  ;;  %v2222_v1 = vld [vmem:[#allocation2 + $0x1a0] sm:$0xff] }
 0x2b1   : > { %v6300_v27 = vpop.f32.mrb[5].mxu1  ;;  %v2427_v6 = vadd.f32 %v6220_v55, %v2320_v32  ;;  %3901 = vmatprep.mubr.bf16.mxu1 %v3124_v16  ;;  %v2905_v4 = vadd.f32 3.0, %v2857_v23  ;;  %v2428_v54 = vadd.f32 %v6262_v41, %v2321_v57  ;;  %v2593_v17 = vmul.f32 %v6056_v46, %v1856_v29 }
 0x2b2   : > { %v6308_v36 = vpop.f32.mrb[6].mxu1  ;;  %v2594_v42 = vmul.f32 %v6056_v46, %v1857_v48  ;;  %v2952_v2 = vmax.f32 %v2904_v35, 0.0  ;;  %v2700_v56 = vmul.f32 %v6065_v28, %v2008_v30  ;;  %v2701_v55 = vmul.f32 %v6065_v28, %v2009_v22  ;;  %v2329_v30 = vld [vmem:[#allocation2 + $0x1a1] sm:$0xff] }
 0x2b3   : > { %v6315_v26 = vpop.f32.mrb[7].mxu1  ;;  %v2534_v60 = vadd.f32 %v2486_v34, %v2427_v6  ;;  %v2953_v37 = vmax.f32 %v2905_v4, 0.0  ;;  %v2535_v31 = vadd.f32 %v2487_v10, %v2428_v54  ;;  %v2170_v47 = vmul.f32 %v5999_v14, %v2114_v53 }
 0x2b4   : > { %v6327_v61 = vmul.f32 %v5999_v14, %v2115_v18  ;;  %v3000_v41 = vmin.f32 %v2952_v2, 6.0  ;;  %v2215_v29 = vadd.f32 %v6244_v39, %v6192_v3  ;;  %v2216_v48 = vadd.f32 %v2168_v43, %v6194_v0 }
 0x2b5   : > { %v2641_v49 = vadd.f32 %v2593_v17, %v2534_v60  ;;  %v3001_v12 = vmin.f32 %v2953_v37, 6.0  ;;  %v2642_v22 = vadd.f32 %v2594_v42, %v2535_v31  ;;  %v2277_v44 = vmul.f32 %v6019_v11, %v2221_v50  ;;  %v2223_v31 = vld [vmem:[#allocation2 + $0x1a8] sm:$0xff] }
 0x2b6   : > { %v6334_v32 = vmul.f32 %v6019_v11, %v2222_v1  ;;  %v3048_v16 = vmul.f32 %v3000_v41, %v2856_v52  ;;  %v2322_v35 = vadd.f32 %v6258_v8, %v2215_v29  ;;  %v2323_v6 = vadd.f32 %v2275_v5, %v2216_v48  ;;  %v2116_v5 = vld [vmem:[#allocation2 + $0x1a7] sm:$0xff] }
 0x2b7   : > { %v2748_v57 = vadd.f32 %v2700_v56, %v2641_v49  ;;  %v3049_v34 = vmul.f32 %v3001_v12, %v2857_v23  ;;  %v2749_v10 = vadd.f32 %v2701_v55, %v2642_v22  ;;  %v2384_v3 = vmul.f32 %v6034_v58, %v2328_v20  ;;  %v2330_v41 = vld [vmem:[#allocation2 + $0x1a9] sm:$0xff] }
 0x2b8   : > { %v6339_v0 = vmul.f32 %v6034_v58, %v2329_v30  ;;  %v3096_v39 = vmul.f32 0.16666667, %v3048_v16  ;;  %v2429_v4 = vadd.f32 %v6267_v9, %v2322_v35  ;;  %v2430_v54 = vadd.f32 %v2382_v25, %v2323_v6  ;;  %v2435_v12 = vld [vmem:[#allocation2 + $0x1af] sm:$0xff] }
 0x2b9   : > { %v2803_v43 = vmul.f32 %v6087_v13, %v2748_v57  ;;  %v3097_v17 = vmul.f32 0.16666667, %v3049_v34  ;;  %v2804_v52 = vmul.f32 %v6087_v13, %v2749_v10  ;;  %v2488_v42 = vmul.f32 %v6047_v40, %v2114_v53  ;;  %v2542_v10 = vld [vmem:[#allocation2 + $0x1b0] sm:$0xff] }
 0x2ba   : > { %v2489_v8 = vmul.f32 %v6047_v40, %v2115_v18  ;;  %v2595_v2 = vmul.f32 %v6056_v46, %v2221_v50  ;;  %v2596_v60 = vmul.f32 %v6056_v46, %v2222_v1  ;;  %v2702_v56 = vmul.f32 %v6065_v28, %v2328_v20 }
 0x2bb   : > { %v2858_v23 = vadd.f32 %v6103_v24, %v2803_v43  ;;  %v3125_v55 = vpack.c.bf16 %v3097_v17, %v3096_v39  ;;  %v2859_v9 = vadd.f32 %v6103_v24, %v2804_v52  ;;  %v2536_v25 = vadd.f32 %v2488_v42, %v2429_v4  ;;  %v2649_v4 = vld [vmem:[#allocation2 + $0x1b1] sm:$0xff] }
 0x2bc   : > { %v2537_v37 = vadd.f32 %v2489_v8, %v2430_v54  ;;  %v2703_v53 = vmul.f32 %v6065_v28, %v2329_v30  ;;  %v2172_v18 = vmul.f32 %v5999_v14, %v2116_v5  ;;  %v2217_v29 = vadd.f32 %v6285_v63, %v6241_v51 }
 0x2bd   : > { %v2906_v49 = vadd.f32 3.0, %v2858_v23  ;;  %3902 = vmatmul.mubr.bf16.gmra.mrb[36].mxu1 %v3125_v55  ;;  %v2907_v50 = vadd.f32 3.0, %v2859_v9  ;;  %v2643_v1 = vadd.f32 %v2595_v2, %v2536_v25  ;;  %v2218_v20 = vadd.f32 %v2170_v47, %v6246_v21 }
 0x2be   : > { %v2644_v48 = vadd.f32 %v2596_v60, %v2537_v37  ;;  %v2279_v16 = vmul.f32 %v6019_v11, %v2223_v31  ;;  %v2324_v57 = vadd.f32 %v6304_v62, %v2217_v29  ;;  %v2386_v35 = vmul.f32 %v6034_v58, %v2330_v41 }
 0x2bf   : > { %v2954_v22 = vmax.f32 %v2906_v49, 0.0  ;;  %v2955_v30 = vmax.f32 %v2907_v50, 0.0  ;;  %v2750_v6 = vadd.f32 %v2702_v56, %v2643_v1  ;;  %v2325_v34 = vadd.f32 %v2277_v44, %v2218_v20  ;;  %v2543_v50 = vld [vmem:[#allocation2 + $0x1b8] sm:$0xff] }
 0x2c0   : > { %v2751_v14 = vadd.f32 %v2703_v53, %v2644_v48  ;;  %v2431_v63 = vadd.f32 %v6313_v59, %v2324_v57  ;;  %v2490_v39 = vmul.f32 %v6047_v40, %v2116_v5  ;;  %v2491_v21 = vmul.f32 %v6047_v40, %v2435_v12  ;;  %v2436_v5 = vld [vmem:[#allocation2 + $0x1b7] sm:$0xff]  ;;  %v2544_v12 = vld [vmem:[#allocation2 + $0x1c0] sm:$0xff] }
 0x2c1   : > { %v3002_v51 = vmin.f32 %v2954_v22, 6.0  ;;  %v3003_v47 = vmin.f32 %v2955_v30, 6.0  ;;  %v2805_v43 = vmul.f32 %v6087_v13, %v2750_v6  ;;  %v2432_v62 = vadd.f32 %v2384_v3, %v2325_v34  ;;  %v2651_v34 = vld [vmem:[#allocation2 + $0x1c1] sm:$0xff] }
 0x2c2   : > { %v2806_v11 = vmul.f32 %v6087_v13, %v2751_v14  ;;  %v2538_v54 = vadd.f32 %v2490_v39, %v2431_v63  ;;  %v2597_v17 = vmul.f32 %v6056_v46, %v2223_v31  ;;  %v2598_v44 = vmul.f32 %v6056_v46, %v2542_v10  ;;  %v2437_v31 = vld [vmem:[#allocation2 + $0x1bf] sm:$0xff] }
 0x2c3   : > { %v3050_v58 = vmul.f32 %v3002_v51, %v2858_v23  ;;  %v3051_v52 = vmul.f32 %v3003_v47, %v2859_v9  ;;  %v2860_v59 = vadd.f32 %v6103_v24, %v2805_v43  ;;  %v2539_v8 = vadd.f32 %v2491_v21, %v2432_v62  ;;  %v2650_v14 = vld [vmem:[#allocation2 + $0x1b9] sm:$0xff] }
 0x2c4   : > { %v2861_v42 = vadd.f32 %v6103_v24, %v2806_v11  ;;  %v2645_v60 = vadd.f32 %v2597_v17, %v2538_v54  ;;  %v2704_v56 = vmul.f32 %v6065_v28, %v2330_v41  ;;  %v2705_v3 = vmul.f32 %v6065_v28, %v2649_v4 }
 0x2c5   : > { %v3098_v2 = vmul.f32 0.16666667, %v3050_v58  ;;  %v3099_v55 = vmul.f32 0.16666667, %v3051_v52  ;;  %v2908_v23 = vadd.f32 3.0, %v2860_v59  ;;  %v2646_v37 = vadd.f32 %v2598_v44, %v2539_v8 }
 0x2c6   : > { %v2909_v25 = vadd.f32 3.0, %v2861_v42  ;;  %v2752_v49 = vadd.f32 %v2704_v56, %v2645_v60  ;;  %v2219_v9 = vadd.f32 %v6327_v61, %v6288_v15  ;;  %v2220_v53 = vadd.f32 %v2172_v18, %v6290_v19  ;;  %v6745_v60 = vld [vmem:[#allocation14_spill] sm:$0xff] }
 0x2c7   : > { %v2492_v29 = vmul.f32 %v6047_v40, %v2436_v5  ;;  %v3126_v1 = vpack.c.bf16 %v3099_v55, %v3098_v2  ;;  %v2956_v48 = vmax.f32 %v2908_v23, 0.0  ;;  %v2753_v41 = vadd.f32 %v2705_v3, %v2646_v37 }
 0x2c8   : > { %v2957_v20 = vmax.f32 %v2909_v25, 0.0  ;;  %v2807_v22 = vmul.f32 %v6087_v13, %v2752_v49  ;;  %v2326_v57 = vadd.f32 %v6334_v32, %v2219_v9  ;;  %v2327_v30 = vadd.f32 %v2279_v16, %v2220_v53 }
 0x2c9   : > { %v2493_v6 = vmul.f32 %v6047_v40, %v2437_v31  ;;  %3905 = vmatprep.mubr.bf16.mxu1 %v3126_v1  ;;  %v3004_v15 = vmin.f32 %v2956_v48, 6.0  ;;  %v2808_v19 = vmul.f32 %v6087_v13, %v2753_v41  ;;  %v2599_v18 = vmul.f32 %v6056_v46, %v2543_v50  ;;  %v6385_v40 = vld [vmem:[%s6664_s9] ss:$0 sm:$0xff]  ;;  %v3998_v48 = vld [vmem:[%s4312_s30 + $0x30] sm:$0xff] }
 0x2ca   : > { %v3005_v61 = vmin.f32 %v2957_v20, 6.0  ;;  %v2862_v10 = vadd.f32 %v6103_v24, %v2807_v22  ;;  %v2433_v51 = vadd.f32 %v6339_v0, %v2326_v57  ;;  %v2434_v63 = vadd.f32 %v2386_v35, %v2327_v30  ;;  %v3997_v31 = vld [vmem:[%s4312_s30 + $0x40] sm:$0xff] }
 0x2cb   : > { %v2600_v32 = vmul.f32 %v6056_v46, %v2544_v12  ;;  %v3052_v16 = vmul.f32 %v3004_v15, %v2860_v59  ;;  %v2863_v21 = vadd.f32 %v6103_v24, %v2808_v19  ;;  %v2706_v47 = vmul.f32 %v6065_v28, %v2650_v14  ;;  %v6394_v46 = vld [vmem:[%s6665_s10] ss:$0 sm:$0xff]  ;;  %v3999_v12 = vld [vmem:[%s4312_s30 + $0x48] sm:$0xff] }
 0x2cc   : > { %v3053_v39 = vmul.f32 %v3005_v61, %v2861_v42  ;;  %v2910_v43 = vadd.f32 3.0, %v2862_v10  ;;  %v2540_v11 = vadd.f32 %v2492_v29, %v2433_v51  ;;  %v2541_v62 = vadd.f32 %v2493_v6, %v2434_v63  ;;  %v4000_v61 = vld [vmem:[%s4312_s30 + $0x38] sm:$0xff]  ;;  %v4001_v63 = vld [vmem:[%s4312_s30 + $0x60] sm:$0xff] }
 0x2cd   : > { %v2707_v4 = vmul.f32 %v6065_v28, %v2651_v34  ;;  %v3100_v0 = vmul.f32 0.16666667, %v3052_v16  ;;  %v2911_v58 = vadd.f32 3.0, %v2863_v21  ;;  %v3388_v54 = vmul.f32 %v6175_v33, %v6385_v40 }
 0x2ce   : > { %v3101_v35 = vmul.f32 0.16666667, %v3053_v39  ;;  %v2958_v44 = vmax.f32 %v2910_v43, 0.0  ;;  %v2647_v52 = vadd.f32 %v2599_v18, %v2540_v11  ;;  %v2648_v59 = vadd.f32 %v2600_v32, %v2541_v62 }
 0x2cf   : > { %v3386_v28 = vmul.f32 %v6385_v40, %v6177_v45  ;;  %v2959_v5 = vmax.f32 %v2911_v58, 0.0  ;;  %v3443_v2 = vadd.f32 %v6394_v46, %v3388_v54  ;;  %v3389_v56 = vmul.f32 %v6745_v60, %v6385_v40 }
 0x2d0   : > { %v3127_v8 = vpack.c.bf16 %v3101_v35, %v3100_v0  ;;  %v3006_v55 = vmin.f32 %v2958_v44, 6.0  ;;  %v2754_v33 = vadd.f32 %v2706_v47, %v2647_v52  ;;  %v2755_v23 = vadd.f32 %v2707_v4, %v2648_v59  ;;  %v4002_v47 = vld [vmem:[%s4312_s30 + $0x50] sm:$0xff]  ;;  %v4005_v59 = vld [vmem:[%s4312_s30 + $0x80] sm:$0xff] }
 0x2d1   : > { %v3875_v17 = vpop.f32.mrb[8].mxu1  ;;  %v3441_v25 = vadd.f32 %v6394_v46, %v3386_v28  ;;  %v3007_v45 = vmin.f32 %v2959_v5, 6.0  ;;  %v3491_v49 = vadd.f32 %v3997_v31, %v3443_v2  ;;  %v3444_v9 = vadd.f32 %v6394_v46, %v3389_v56  ;;  %v4006_v56 = vld [vmem:[%s4312_s30 + $0x70] sm:$0xff] }
 0x2d2   : > { %v3220_v42 = vpop.f32.mrb[9].mxu1  ;;  %3906 = vmatmul.mubr.bf16.gmra.mrb[40].mxu1 %v3127_v8  ;;  %v3387_v53 = vmul.f32 %v6385_v40, %v6186_v38  ;;  %v3054_v29 = vmul.f32 %v3006_v55, %v2862_v10  ;;  %v2809_v50 = vmul.f32 %v6087_v13, %v2754_v33  ;;  %v2810_v1 = vmul.f32 %v6087_v13, %v2755_v23  ;;  %v4007_v55 = vld [vmem:[%s4312_s30 + $0x88] sm:$0xff] }
 0x2d3   : > { %v3876_v3 = vpop.f32.mrb[10].mxu1  ;;  %v3489_v20 = vadd.f32 %v3998_v48, %v3441_v25  ;;  %v3055_v41 = vmul.f32 %v3007_v45, %v2863_v21  ;;  %3539 = vst [vmem:[%s6413_s25 + $0x10] sm:$0xff] %v3491_v49  ;;  %v3492_v22 = vadd.f32 %v3999_v12, %v3444_v9  ;;  %v3392_v57 = vmul.f32 %v6294_v7, %v6385_v40 }
 0x2d4   : > { %v3223_v37 = vpop.f32.mrb[11].mxu1  ;;  %v3442_v38 = vadd.f32 %v6394_v46, %v3387_v53  ;;  %v3102_v30 = vmul.f32 0.16666667, %v3054_v29  ;;  %v2864_v13 = vadd.f32 %v6103_v24, %v2809_v50  ;;  %v2865_v6 = vadd.f32 %v6103_v24, %v2810_v1 }
 0x2d5   : > { %3537 = vst [vmem:[%s6413_s25] sm:$0xff] %v3489_v20  ;;  %v3390_v14 = vmul.f32 %v6385_v40, %v6300_v27  ;;  %v3103_v15 = vmul.f32 0.16666667, %v3055_v41  ;;  %3540 = vst [vmem:[%s6413_s25 + $0x18] sm:$0xff] %v3492_v22  ;;  %v3447_v18 = vadd.f32 %v6394_v46, %v3392_v57  ;;  %v3393_v7 = vmul.f32 %v6308_v36, %v6385_v40  ;;  %v4009_v22 = vld [vmem:[%s4312_s30 + $0xa0] sm:$0xff] }
 0x2d6   : > { %v3490_v19 = vadd.f32 %v4000_v61, %v3442_v38  ;;  %v2912_v34 = vadd.f32 3.0, %v2864_v13  ;;  %v2913_v10 = vadd.f32 3.0, %v2865_v6  ;;  %v3391_v51 = vmul.f32 %v6385_v40, %v6315_v26  ;;  %v4003_v26 = vld [vmem:[%s4312_s30 + $0x68] sm:$0xff]  ;;  %v4012_v61 = vld [vmem:[%s4312_s30 + $0x98] sm:$0xff] }
 0x2d7   : > { %v3445_v24 = vadd.f32 %v6394_v46, %v3390_v14  ;;  %v3128_v27 = vpack.c.bf16 %v3103_v15, %v3102_v30  ;;  %v3495_v32 = vadd.f32 %v4001_v63, %v3447_v18  ;;  %v3448_v16 = vadd.f32 %v6394_v46, %v3393_v7  ;;  %v4010_v30 = vld [vmem:[%s4312_s30 + $0x90] sm:$0xff]  ;;  %v4011_v14 = vld [vmem:[%s4312_s30 + $0xa8] sm:$0xff] }
 0x2d8   : > { %3538 = vst [vmem:[%s6413_s25 + $0x8] sm:$0xff] %v3490_v19  ;;  %v3396_v39 = vmul.f32 %v3875_v17, %v6385_v40  ;;  %v2960_v36 = vmax.f32 %v2912_v34, 0.0  ;;  %v2961_v21 = vmax.f32 %v2913_v10, 0.0  ;;  %v3446_v11 = vadd.f32 %v6394_v46, %v3391_v51  ;;  %v4004_v17 = vld [vmem:[%s4312_s30 + $0x58] sm:$0xff] }
 0x2d9   : > { %v3493_v43 = vadd.f32 %v4002_v47, %v3445_v24  ;;  %3909 = vmatprep.mubr.bf16.mxu1 %v3128_v27  ;;  %3543 = vst [vmem:[%s6413_s25 + $0x30] sm:$0xff] %v3495_v32  ;;  %v3496_v62 = vadd.f32 %v4003_v26, %v3448_v16  ;;  %v3394_v0 = vmul.f32 %v6385_v40, %v3220_v42  ;;  %v4014_v47 = vld [vmem:[%s4312_s30 + $0xb0] sm:$0xff]  ;;  %v4015_v26 = vld [vmem:[%s4312_s30 + $0xc8] sm:$0xff] }
 0x2da   : > { %v3451_v4 = vadd.f32 %v6394_v46, %v3396_v39  ;;  %v3397_v35 = vmul.f32 %v3876_v3, %v6385_v40  ;;  %v3008_v58 = vmin.f32 %v2960_v36, 6.0  ;;  %v3009_v54 = vmin.f32 %v2961_v21, 6.0  ;;  %v4013_v39 = vld [vmem:[%s4312_s30 + $0xc0] sm:$0xff] }
 0x2db   : > { %3541 = vst [vmem:[%s6413_s25 + $0x20] sm:$0xff] %v3493_v43  ;;  %v3494_v44 = vadd.f32 %v4004_v17, %v3446_v11  ;;  %v3395_v52 = vmul.f32 %v6385_v40, %v3223_v37  ;;  %3544 = vst [vmem:[%s6413_s25 + $0x38] sm:$0xff] %v3496_v62  ;;  %v3449_v8 = vadd.f32 %v6394_v46, %v3394_v0  ;;  %v4008_v37 = vld [vmem:[%s4312_s30 + $0x78] sm:$0xff] }
 0x2dc   : > { %v3499_v28 = vadd.f32 %v4005_v59, %v3451_v4  ;;  %v3452_v42 = vadd.f32 %v6394_v46, %v3397_v35  ;;  %v3056_v5 = vmul.f32 %v3008_v58, %v2864_v13  ;;  %v3057_v2 = vmul.f32 %v3009_v54, %v2865_v6  ;;  %v4016_v4 = vld [vmem:[%s4312_s30 + $0xb8] sm:$0xff] }
 0x2dd   : > { %3542 = vst [vmem:[%s6413_s25 + $0x28] sm:$0xff] %v3494_v44  ;;  %v3450_v60 = vadd.f32 %v6394_v46, %v3395_v52  ;;  %v3497_v3 = vadd.f32 %v4006_v56, %v3449_v8  ;;  %v4018_v56 = vld [vmem:[%s4312_s30 + $0xd0] sm:$0xff] }
 0x2de   : > { %3547 = vst [vmem:[%s6413_s25 + $0x50] sm:$0xff] %v3499_v28  ;;  %v3500_v33 = vadd.f32 %v4007_v55, %v3452_v42  ;;  %v3104_v23 = vmul.f32 0.16666667, %v3056_v5  ;;  %v3105_v25 = vmul.f32 0.16666667, %v3057_v2  ;;  %v4017_v5 = vld [vmem:[%s4312_s30 + $0xe0] sm:$0xff] }
 0x2df   : > { %v3498_v45 = vadd.f32 %v4008_v37, %v3450_v60  ;;  %3545 = vst [vmem:[%s6413_s25 + $0x40] sm:$0xff] %v3497_v3 }
 0x2e0   : > { %3548 = vst [vmem:[%s6413_s25 + $0x58] sm:$0xff] %v3500_v33  ;;  %v3129_v31 = vpack.c.bf16 %v3105_v25, %v3104_v23  ;;  %v4019_v33 = vld [vmem:[%s4312_s30 + $0xe8] sm:$0xff]  ;;  %v4020_v25 = vld [vmem:[%s4312_s30 + $0xd8] sm:$0xff] }
 0x2e1   : > { %3546 = vst [vmem:[%s6413_s25 + $0x48] sm:$0xff] %v3498_v45 }
 0x2e2   : > { %3910 = vmatmul.mubr.bf16.gmra.mrb[44].mxu1 %v3129_v31 }
 0x2f2   : > { %v3879_v49 = vpop.f32.mrb[12].mxu1 }
 0x2f3   : > { %v3400_v9 = vmul.f32 %v3879_v49, %v6385_v40  ;;  %v3236_v53 = vpop.f32.mrb[13].mxu1 }
 0x2f4   : > { %v3398_v29 = vmul.f32 %v6385_v40, %v3236_v53  ;;  %v3880_v50 = vpop.f32.mrb[14].mxu1 }
 0x2f5   : > { %v3455_v1 = vadd.f32 %v6394_v46, %v3400_v9  ;;  %v3401_v48 = vmul.f32 %v3880_v50, %v6385_v40  ;;  %v3239_v20 = vpop.f32.mrb[15].mxu1 }
 0x2f6   : > { %v3453_v41 = vadd.f32 %v6394_v46, %v3398_v29  ;;  %v3399_v12 = vmul.f32 %v6385_v40, %v3239_v20 }
 0x2f7   : > { %v3503_v38 = vadd.f32 %v4009_v22, %v3455_v1  ;;  %v3456_v57 = vadd.f32 %v6394_v46, %v3401_v48 }
 0x2f8   : > { %v3501_v13 = vadd.f32 %v4010_v30, %v3453_v41  ;;  %v3454_v6 = vadd.f32 %v6394_v46, %v3399_v12  ;;  %v4021_v41 = vld [vmem:[%s4312_s30 + $0x100] sm:$0xff] }
 0x2f9   : > { %3551 = vst [vmem:[%s6413_s25 + $0x70] sm:$0xff] %v3503_v38  ;;  %v3504_v15 = vadd.f32 %v4011_v14, %v3456_v57  ;;  %v4022_v38 = vld [vmem:[%s4312_s30 + $0xf0] sm:$0xff]  ;;  %v4024_v14 = vld [vmem:[%s4312_s30 + $0xf8] sm:$0xff] }
 0x2fa   : > { %3549 = vst [vmem:[%s6413_s25 + $0x60] sm:$0xff] %v3501_v13  ;;  %v3502_v19 = vadd.f32 %v4012_v61, %v3454_v6  ;;  %v4023_v13 = vld [vmem:[%s4312_s30 + $0x108] sm:$0xff] }
 0x2fb   : > { %3552 = vst [vmem:[%s6413_s25 + $0x78] sm:$0xff] %v3504_v15 }
 0x2fc   : > { %3550 = vst [vmem:[%s6413_s25 + $0x68] sm:$0xff] %v3502_v19 }
 0x312   : > { %v3883_v18 = vpop.f32.mrb[16].mxu1 }
 0x313   : > { %v3404_v7 = vmul.f32 %v3883_v18, %v6385_v40  ;;  %v3252_v34 = vpop.f32.mrb[17].mxu1 }
 0x314   : > { %v3402_v10 = vmul.f32 %v6385_v40, %v3252_v34  ;;  %v3884_v24 = vpop.f32.mrb[18].mxu1 }
 0x315   : > { %v3459_v51 = vadd.f32 %v6394_v46, %v3404_v7  ;;  %v3405_v27 = vmul.f32 %v3884_v24, %v6385_v40  ;;  %v3255_v63 = vpop.f32.mrb[19].mxu1 }
 0x316   : > { %v3457_v32 = vadd.f32 %v6394_v46, %v3402_v10  ;;  %v3403_v16 = vmul.f32 %v6385_v40, %v3255_v63 }
 0x317   : > { %v3507_v36 = vadd.f32 %v4013_v39, %v3459_v51  ;;  %v3460_v21 = vadd.f32 %v6394_v46, %v3405_v27 }
 0x318   : > { %v3505_v43 = vadd.f32 %v4014_v47, %v3457_v32  ;;  %v3458_v11 = vadd.f32 %v6394_v46, %v3403_v16  ;;  %v4025_v32 = vld [vmem:[%s4312_s30 + $0x120] sm:$0xff] }
 0x319   : > { %3555 = vst [vmem:[%s6413_s25 + $0x90] sm:$0xff] %v3507_v36  ;;  %v3508_v62 = vadd.f32 %v4015_v26, %v3460_v21  ;;  %v4026_v36 = vld [vmem:[%s4312_s30 + $0x110] sm:$0xff]  ;;  %v4028_v26 = vld [vmem:[%s4312_s30 + $0x118] sm:$0xff] }
 0x31a   : > { %3553 = vst [vmem:[%s6413_s25 + $0x80] sm:$0xff] %v3505_v43  ;;  %v3506_v0 = vadd.f32 %v4016_v4, %v3458_v11  ;;  %v4027_v43 = vld [vmem:[%s4312_s30 + $0x128] sm:$0xff] }
 0x31b   : > { %3556 = vst [vmem:[%s6413_s25 + $0x98] sm:$0xff] %v3508_v62 }
 0x31c   : > { %3554 = vst [vmem:[%s6413_s25 + $0x88] sm:$0xff] %v3506_v0 }
 0x32f   : > { %v3887_v35 = vpop.f32.mrb[20].mxu1 }
 0x330   : > { %v3408_v58 = vmul.f32 %v3887_v35, %v6385_v40  ;;  %v3268_v54 = vpop.f32.mrb[21].mxu1 }
 0x331   : > { %v3406_v17 = vmul.f32 %v6385_v40, %v3268_v54  ;;  %v3888_v44 = vpop.f32.mrb[22].mxu1 }
 0x332   : > { %v3463_v52 = vadd.f32 %v6394_v46, %v3408_v58  ;;  %v3409_v59 = vmul.f32 %v3888_v44, %v6385_v40  ;;  %v3271_v28 = vpop.f32.mrb[23].mxu1 }
 0x333   : > { %v3461_v8 = vadd.f32 %v6394_v46, %v3406_v17  ;;  %v3407_v42 = vmul.f32 %v6385_v40, %v3271_v28 }
 0x334   : > { %v3511_v2 = vadd.f32 %v4017_v5, %v3463_v52  ;;  %v3464_v60 = vadd.f32 %v6394_v46, %v3409_v59 }
 0x335   : > { %v3509_v3 = vadd.f32 %v4018_v56, %v3461_v8  ;;  %v3462_v55 = vadd.f32 %v6394_v46, %v3407_v42  ;;  %v4029_v8 = vld [vmem:[%s4312_s30 + $0x140] sm:$0xff] }
 0x336   : > { %3559 = vst [vmem:[%s6413_s25 + $0xb0] sm:$0xff] %v3511_v2  ;;  %v3512_v23 = vadd.f32 %v4019_v33, %v3464_v60  ;;  %v4030_v2 = vld [vmem:[%s4312_s30 + $0x130] sm:$0xff]  ;;  %v4032_v33 = vld [vmem:[%s4312_s30 + $0x138] sm:$0xff] }
 0x337   : > { %3557 = vst [vmem:[%s6413_s25 + $0xa0] sm:$0xff] %v3509_v3  ;;  %v3510_v37 = vadd.f32 %v4020_v25, %v3462_v55  ;;  %v4031_v3 = vld [vmem:[%s4312_s30 + $0x148] sm:$0xff] }
 0x338   : > { %3560 = vst [vmem:[%s6413_s25 + $0xb8] sm:$0xff] %v3512_v23 }
 0x339   : > { %3558 = vst [vmem:[%s6413_s25 + $0xa8] sm:$0xff] %v3510_v37 }
 0x347   : > { %v3891_v45 = vpop.f32.mrb[24].mxu1 }
 0x348   : > { %v3412_v31 = vmul.f32 %v3891_v45, %v6385_v40  ;;  %v3284_v49 = vpop.f32.mrb[25].mxu1 }
 0x349   : > { %v3410_v9 = vmul.f32 %v6385_v40, %v3284_v49  ;;  %v3892_v53 = vpop.f32.mrb[26].mxu1 }
 0x34a   : > { %v3467_v29 = vadd.f32 %v6394_v46, %v3412_v31  ;;  %v3413_v50 = vmul.f32 %v3892_v53, %v6385_v40  ;;  %v3287_v1 = vpop.f32.mrb[27].mxu1 }
 0x34b   : > { %v3465_v48 = vadd.f32 %v6394_v46, %v3410_v9  ;;  %v3411_v20 = vmul.f32 %v6385_v40, %v3287_v1 }
 0x34c   : > { %v3515_v12 = vadd.f32 %v4021_v41, %v3467_v29  ;;  %v3468_v22 = vadd.f32 %v6394_v46, %v3413_v50 }
 0x34d   : > { %v3513_v57 = vadd.f32 %v4022_v38, %v3465_v48  ;;  %v3466_v30 = vadd.f32 %v6394_v46, %v3411_v20  ;;  %v4033_v48 = vld [vmem:[%s4312_s30 + $0x160] sm:$0xff] }
 0x34e   : > { %3563 = vst [vmem:[%s6413_s25 + $0xd0] sm:$0xff] %v3515_v12  ;;  %v3516_v6 = vadd.f32 %v4023_v13, %v3468_v22  ;;  %v4034_v12 = vld [vmem:[%s4312_s30 + $0x150] sm:$0xff]  ;;  %v4036_v13 = vld [vmem:[%s4312_s30 + $0x158] sm:$0xff] }
 0x34f   : > { %3561 = vst [vmem:[%s6413_s25 + $0xc0] sm:$0xff] %v3513_v57  ;;  %v3514_v15 = vadd.f32 %v4024_v14, %v3466_v30  ;;  %v4035_v57 = vld [vmem:[%s4312_s30 + $0x168] sm:$0xff] }
 0x350   : > { %3564 = vst [vmem:[%s6413_s25 + $0xd8] sm:$0xff] %v3516_v6 }
 0x351   : > { %3562 = vst [vmem:[%s6413_s25 + $0xc8] sm:$0xff] %v3514_v15 }
 0x35f   : > { %v3895_v61 = vpop.f32.mrb[28].mxu1 }
 0x360   : > { %v3416_v19 = vmul.f32 %v3895_v61, %v6385_v40  ;;  %v3300_v18 = vpop.f32.mrb[29].mxu1 }
 0x361   : > { %v3414_v7 = vmul.f32 %v6385_v40, %v3300_v18  ;;  %v3896_v34 = vpop.f32.mrb[30].mxu1 }
 0x362   : > { %v3471_v10 = vadd.f32 %v6394_v46, %v3416_v19  ;;  %v3417_v24 = vmul.f32 %v3896_v34, %v6385_v40  ;;  %v3303_v51 = vpop.f32.mrb[31].mxu1 }
 0x363   : > { %v3469_v27 = vadd.f32 %v6394_v46, %v3414_v7  ;;  %v3415_v63 = vmul.f32 %v6385_v40, %v3303_v51 }
 0x364   : > { %v3519_v16 = vadd.f32 %v4025_v32, %v3471_v10  ;;  %v3472_v39 = vadd.f32 %v6394_v46, %v3417_v24 }
 0x365   : > { %v3517_v21 = vadd.f32 %v4026_v36, %v3469_v27  ;;  %v3470_v47 = vadd.f32 %v6394_v46, %v3415_v63  ;;  %v4037_v27 = vld [vmem:[%s4312_s30 + $0x180] sm:$0xff] }
 0x366   : > { %3567 = vst [vmem:[%s6413_s25 + $0xf0] sm:$0xff] %v3519_v16  ;;  %v3520_v11 = vadd.f32 %v4027_v43, %v3472_v39  ;;  %v4038_v16 = vld [vmem:[%s4312_s30 + $0x170] sm:$0xff]  ;;  %v4040_v43 = vld [vmem:[%s4312_s30 + $0x178] sm:$0xff] }
 0x367   : > { %3565 = vst [vmem:[%s6413_s25 + $0xe0] sm:$0xff] %v3517_v21  ;;  %v3518_v62 = vadd.f32 %v4028_v26, %v3470_v47  ;;  %v4039_v21 = vld [vmem:[%s4312_s30 + $0x188] sm:$0xff] }
 0x368   : > { %3568 = vst [vmem:[%s6413_s25 + $0xf8] sm:$0xff] %v3520_v11 }
 0x369   : > { %3566 = vst [vmem:[%s6413_s25 + $0xe8] sm:$0xff] %v3518_v62 }
 0x378   : > { %v3899_v4 = vpop.f32.mrb[32].mxu1 }
 0x379   : > { %v3420_v0 = vmul.f32 %v3899_v4, %v6385_v40  ;;  %v3316_v35 = vpop.f32.mrb[33].mxu1 }
 0x37a   : > { %v3418_v58 = vmul.f32 %v6385_v40, %v3316_v35  ;;  %v3900_v54 = vpop.f32.mrb[34].mxu1 }
 0x37b   : > { %v3475_v17 = vadd.f32 %v6394_v46, %v3420_v0  ;;  %v3421_v44 = vmul.f32 %v3900_v54, %v6385_v40  ;;  %v3319_v52 = vpop.f32.mrb[35].mxu1 }
 0x37c   : > { %v3473_v59 = vadd.f32 %v6394_v46, %v3418_v58  ;;  %v3419_v28 = vmul.f32 %v6385_v40, %v3319_v52 }
 0x37d   : > { %v3523_v42 = vadd.f32 %v4029_v8, %v3475_v17  ;;  %v3476_v5 = vadd.f32 %v6394_v46, %v3421_v44 }
 0x37e   : > { %v3521_v60 = vadd.f32 %v4030_v2, %v3473_v59  ;;  %v3474_v56 = vadd.f32 %v6394_v46, %v3419_v28  ;;  %v4041_v59 = vld [vmem:[%s4312_s30 + $0x1a0] sm:$0xff] }
 0x37f   : > { %3571 = vst [vmem:[%s6413_s25 + $0x110] sm:$0xff] %v3523_v42  ;;  %v3524_v55 = vadd.f32 %v4031_v3, %v3476_v5  ;;  %v4042_v42 = vld [vmem:[%s4312_s30 + $0x190] sm:$0xff] }
 0x380   : > { %3569 = vst [vmem:[%s6413_s25 + $0x100] sm:$0xff] %v3521_v60  ;;  %v3522_v23 = vadd.f32 %v4032_v33, %v3474_v56  ;;  %v4043_v60 = vld [vmem:[%s4312_s30 + $0x1a8] sm:$0xff] }
 0x381   : > { %3572 = vst [vmem:[%s6413_s25 + $0x118] sm:$0xff] %v3524_v55 }
 0x382   : > { %3570 = vst [vmem:[%s6413_s25 + $0x108] sm:$0xff] %v3522_v23 }
 0x390   : > { %v3903_v25 = vpop.f32.mrb[36].mxu1 }
 0x391   : > { %v3424_v37 = vmul.f32 %v3903_v25, %v6385_v40  ;;  %v3332_v45 = vpop.f32.mrb[37].mxu1 }
 0x392   : > { %v3422_v31 = vmul.f32 %v6385_v40, %v3332_v45  ;;  %v3904_v49 = vpop.f32.mrb[38].mxu1 }
 0x393   : > { %v3479_v9 = vadd.f32 %v6394_v46, %v3424_v37  ;;  %v3425_v53 = vmul.f32 %v3904_v49, %v6385_v40  ;;  %v3335_v29 = vpop.f32.mrb[39].mxu1 }
 0x394   : > { %v3477_v50 = vadd.f32 %v6394_v46, %v3422_v31  ;;  %v3423_v1 = vmul.f32 %v6385_v40, %v3335_v29 }
 0x395   : > { %v3527_v20 = vadd.f32 %v4033_v48, %v3479_v9  ;;  %v3480_v41 = vadd.f32 %v6394_v46, %v3425_v53 }
 0x396   : > { %v3525_v22 = vadd.f32 %v4034_v12, %v3477_v50  ;;  %v3478_v38 = vadd.f32 %v6394_v46, %v3423_v1 }
 0x397   : > { %3575 = vst [vmem:[%s6413_s25 + $0x130] sm:$0xff] %v3527_v20  ;;  %v3528_v30 = vadd.f32 %v4035_v57, %v3480_v41 }
 0x398   : > { %3573 = vst [vmem:[%s6413_s25 + $0x120] sm:$0xff] %v3525_v22  ;;  %v3526_v6 = vadd.f32 %v4036_v13, %v3478_v38 }
 0x399   : > { %3576 = vst [vmem:[%s6413_s25 + $0x138] sm:$0xff] %v3528_v30 }
 0x39a   : > { %3574 = vst [vmem:[%s6413_s25 + $0x128] sm:$0xff] %v3526_v6 }
 0x3a5   : > { %v3907_v14 = vpop.f32.mrb[40].mxu1 }
 0x3a6   : > { %v3428_v15 = vmul.f32 %v3907_v14, %v6385_v40  ;;  %v3348_v61 = vpop.f32.mrb[41].mxu1 }
 0x3a7   : > { %v3426_v19 = vmul.f32 %v6385_v40, %v3348_v61  ;;  %v3908_v18 = vpop.f32.mrb[42].mxu1 }
 0x3a8   : > { %v3483_v7 = vadd.f32 %v6394_v46, %v3428_v15  ;;  %v3429_v34 = vmul.f32 %v3908_v18, %v6385_v40  ;;  %v3351_v10 = vpop.f32.mrb[43].mxu1 }
 0x3a9   : > { %v3481_v24 = vadd.f32 %v6394_v46, %v3426_v19  ;;  %v3427_v51 = vmul.f32 %v6385_v40, %v3351_v10 }
 0x3aa   : > { %v3531_v63 = vadd.f32 %v4037_v27, %v3483_v7  ;;  %v3484_v32 = vadd.f32 %v6394_v46, %v3429_v34 }
 0x3ab   : > { %v3529_v39 = vadd.f32 %v4038_v16, %v3481_v24  ;;  %v3482_v36 = vadd.f32 %v6394_v46, %v3427_v51 }
 0x3ac   : > { %3579 = vst [vmem:[%s6413_s25 + $0x150] sm:$0xff] %v3531_v63  ;;  %v3532_v47 = vadd.f32 %v4039_v21, %v3484_v32 }
 0x3ad   : > { %3577 = vst [vmem:[%s6413_s25 + $0x140] sm:$0xff] %v3529_v39  ;;  %v3530_v11 = vadd.f32 %v4040_v43, %v3482_v36 }
 0x3ae   : > { %3580 = vst [vmem:[%s6413_s25 + $0x158] sm:$0xff] %v3532_v47 }
 0x3af   : > { %3578 = vst [vmem:[%s6413_s25 + $0x148] sm:$0xff] %v3530_v11 }
 0x3b5   : > { %v3911_v26 = vpop.f32.mrb[44].mxu1 }
 0x3b6   : > { %v3432_v62 = vmul.f32 %v3911_v26, %v6385_v40  ;;  %v3364_v4 = vpop.f32.mrb[45].mxu1 }
 0x3b7   : > { %v3430_v0 = vmul.f32 %v6385_v40, %v3364_v4  ;;  %v3912_v35 = vpop.f32.mrb[46].mxu1 }
 0x3b8   : > { %v3487_v58 = vadd.f32 %v6394_v46, %v3432_v62  ;;  %v3433_v54 = vmul.f32 %v3912_v35, %v6385_v40  ;;  %v3367_v17 = vpop.f32.mrb[47].mxu1 }
 0x3b9   : > { %v3485_v44 = vadd.f32 %v6394_v46, %v3430_v0  ;;  %v3431_v52 = vmul.f32 %v6385_v40, %v3367_v17  ;;  %v4044_v40 = vld [vmem:[%s4312_s30 + $0x198] sm:$0xff] }
 0x3ba   : > { %v3535_v28 = vadd.f32 %v4041_v59, %v3487_v58  ;;  %v3488_v8 = vadd.f32 %v6394_v46, %v3433_v54 }
 0x3bb   : > { %v3533_v5 = vadd.f32 %v4042_v42, %v3485_v44  ;;  %v3486_v2 = vadd.f32 %v6394_v46, %v3431_v52 }
 0x3bc   : > { %3583 = vst [vmem:[%s6413_s25 + $0x170] sm:$0xff] %v3535_v28  ;;  %v3536_v56 = vadd.f32 %v4043_v60, %v3488_v8 }
 0x3bd   : > { %3581 = vst [vmem:[%s6413_s25 + $0x160] sm:$0xff] %v3533_v5  ;;  %v3534_v3 = vadd.f32 %v4044_v40, %v3486_v2 }
 0x3be   : > { %3584 = vst [vmem:[%s6413_s25 + $0x178] sm:$0xff] %v3536_v56 }
 0x3bf   : > { %3582 = vst [vmem:[%s6413_s25 + $0x168] sm:$0xff] %v3534_v3 }
 0x3c0   : > { %4088 = shalt.err (!%p4085_p2)
}
 0x3c1   : > { %s4089_s30 = scalar_lea.hbm %s6605_s19, 6144  ;;  %s4093_s25 = scalar_lea.hbm %s6666_s11, 12288 }
 0x3c2   : > { %p4090_p4 = scmp.ne.s32.totalorder %s6605_s19, %s4089_s30  ;;  %p4094_p9 = scmp.lt.u32.totalorder %s6605_s19, %s6666_s11 }
 0x3c3   : > { %p4095_p1 = scmp.lt.u32.totalorder %s4093_s25, %s4089_s30  ;;  %p4097_p6 = scmp.lt.u32.totalorder %s4089_s30, %s6605_s19 }
 0x3c4   : > { %p4091_p5 = pnand %p4090_p4, %p6746_p11 }
 0x3c5   : > { %p4096_p3 = por %p4095_p1, %p4094_p9 }
 0x3c6   : > { %p4092_p7 = pneg %p4091_p5 }
 0x3c7   : > { %p4098_p12 = por %p4097_p6, %p4096_p3 }
 0x3c9   : > { %p4099_p13 = pnand %p4098_p12, %p4092_p7 }
 0x3cb   : > { %4102 = shalt.err (!%p4099_p13)
}
 0x3cc   : > { %s4148_s23 = smov 128   ;;  %s4149_s29 = smov 8  }
 0x3cd   : > { %3920 = dma.vmem_to_hbm [thread:$0]  (%p6746_p11), %s6609_s24, 6144, %s6605_s19, %s3586_s27, %s4148_s23, %s4148_s23, %s4149_s29  }
 0x3ce PF: > { %s6747_s14 = sld [smem:[#allocation12_spill]]  ;;  %s3614_s15 = sand.u32 1, %s4129_s17  }
 0x3cf   : > { %p6749_p10 = scmp.ge.s32.totalorder %s4141_s20, 2  ;;  %s3615_s26 = scalar_lea.sflag [#allocation5], %s3614_s15 }
 0x3d4   : > { %p6748_p8 = scmp.ne.s32.totalorder %s6747_s14, 0 }
 0x3d6   : > { %p3927_p0 = pnand %p6749_p10, %p6748_p8 }
 0x3d8   : > { %4124 = dma.done.wait (!%p3927_p0), %s3615_s26, 6144  }
 0x3d9   : > { %4126 = vsyncadd (!%p3927_p0), %s3615_s26, 4294961152  ;;  %s6750_s20 = sld [smem:[#allocation10_spill]]  ;;  %s6751_s30 = sld [smem:[#allocation9_spill]] }
 0x3da   : > { %s6752_s19 = sld [smem:[#allocation11_spill]]  ;;  %s6753_s17 = smov %s4133_s18 }
 0x3df   : > { %p24_p2 = scmp.ge.s32.totalorder %s6750_s20, 4   ;;  %s6754_s18 = smov %s6751_s30 }
 0x3e1   :  { %26 = sbr.rel (!%p24_p2) target bundleno = 5 (0x5), region = 117 }
 0x3e8   :  { %3620 = vsyncpa [#allocation4], 1 }
 0x3e9   :  { %3622 = vsyncpa [#allocation4 + $0x1], 1 }
 0x3ea   :  { %3623 = vsyncpa [#allocation5], 1 }
 0x3eb   :  { %3625 = vsyncpa [#allocation5 + $0x1], 1 }

</bundles_post_ra>
